<compile_context>
chip_gen: v5e
topology: v5e:2x2
jax: 0.10.0
libtpu: 0.0.40
codegen_flags: <defaults>
</compile_context>

<pallas_src>
import math

import jax
import jax.numpy as jnp
from jax import lax
from jax.experimental import pallas as pl
from jax.experimental.pallas import tpu as pltpu

NUM_HEADS = 4
NUM_SA_LAYERS = 4
BN_EPS = 1e-5


# --------------------------------------------------------------------------
# Kernel
# --------------------------------------------------------------------------
def _sa_layer(x, wqkv, wt, shift):
    """One SA_MH_Layer forward on a (C, N) f32 slab; returns (C, N) f32.

    wqkv: (3C, C) bf16, q rows pre-scaled by 1/sqrt(dh).
    wt:   (C, C)  bf16, BN scale folded.
    shift:(C, 1)  f32,  BN shift + folded trans_conv bias.
    """
    C, N = x.shape
    dh = C // NUM_HEADS

    # Stacked q/k/v projection: one (3C, C) @ (C, N) MXU matmul, then a
    # single f32 -> bf16 cast that all heads slice from.
    qkv = jnp.dot(wqkv, x.astype(jnp.bfloat16),
                  preferred_element_type=jnp.float32)            # (3C, N) f32
    qkv_bf = qkv.astype(jnp.bfloat16)

    heads = []
    for h in range(NUM_HEADS):                                   # static, H=4
        qh = qkv_bf[h * dh:(h + 1) * dh, :]                      # (dh, N)
        kh = qkv_bf[C + h * dh:C + (h + 1) * dh, :]              # (dh, N)
        vh = qkv_bf[2 * C + h * dh:2 * C + (h + 1) * dh, :]      # (dh, N)

        # scoresT[j, i] = sum_d kh[d, j] * qh[d, i]  (keys j on sublanes).
        # The 1/sqrt(dh) softmax scale is already folded into the q weights.
        scores_t = lax.dot_general(
            kh, qh, dimension_numbers=(((0,), (0,)), ((), ())),
            preferred_element_type=jnp.float32)                  # (N, N) f32

        # Softmax over keys == sublane axis; the (1, N) reductions broadcast
        # for free and need no (N,1) -> (1,N) relayout.
        scores_t = scores_t - jnp.max(scores_t, axis=0, keepdims=True)
        p_exp = jnp.exp(scores_t)                                # (N, N) f32
        inv_sum = pl.reciprocal(
            jnp.sum(p_exp, axis=0, keepdims=True), approx=True)  # (1, N)

        # Deferred normalization: PV matmul on un-normalized probabilities,
        # then scale the small (dh, N) result instead of the (N, N) matrix.
        oh = jnp.dot(vh, p_exp.astype(jnp.bfloat16),
                     preferred_element_type=jnp.float32)         # (dh, N)
        heads.append(oh * inv_sum)

    xyz = jnp.concatenate(heads, axis=0)                         # (C, N) f32

    # trans_conv(xyz - x) with BN scale folded into wt and bias folded into
    # shift, then ReLU and residual add.
    t = jnp.dot(wt, (xyz - x).astype(jnp.bfloat16),
                preferred_element_type=jnp.float32)
    return x + jnp.maximum(t + shift, 0.0)


def fused_stacked_attention_kernel(x_ref, w1_ref, sh1_ref, w2_ref, sh2_ref,
                                   wqkv_ref, wt_ref, sht_ref, o_ref):
    """Stem + 4 SA layers for one batch item.  x: (C, N); out: (4*C, N)."""
    x = x_ref[...]
    C = x.shape[0]

    # Stem: relu(bn2(conv2(relu(bn1(conv1(x)))))), BN scale folded into conv.
    h = jnp.dot(w1_ref[...], x.astype(jnp.bfloat16),
                preferred_element_type=jnp.float32)
    h = jnp.maximum(h + sh1_ref[...], 0.0)
    h = jnp.dot(w2_ref[...], h.astype(jnp.bfloat16),
                preferred_element_type=jnp.float32)
    h = jnp.maximum(h + sh2_ref[...], 0.0)

    cur = h
    for l in range(NUM_SA_LAYERS):                                # static
        cur = _sa_layer(cur, wqkv_ref[l], wt_ref[l], sht_ref[l])
        o_ref[pl.ds(l * C, C), :] = cur                           # fused concat


# --------------------------------------------------------------------------
# Wrapper
# --------------------------------------------------------------------------
def _vmem_bytes_estimate(C, N, L):
    """Rough per-grid-step VMEM footprint (double-buffered I/O + live values)."""
    f32, bf16 = 4, 2
    io = 2 * (C * N * f32) + 2 * (L * C * N * f32)            # x, out blocks
    wts = 2 * (2 * C * C * bf16 + 2 * C * f32
               + L * 3 * C * C * bf16 + L * C * C * bf16 + L * C * f32)
    live = (3 * C * N * (f32 + bf16)                           # qkv f32 + bf16
            + 2 * N * N * f32 + N * N * bf16                   # scores / p_exp
            + 6 * C * N * f32)                                 # x, cur, xyz, t
    return io + wts + live


def stacked_attention(x, params):
    bs, C, N = x.shape
    L = NUM_SA_LAYERS
    # v7x has only 64 MiB physical VMEM (32 MiB default scoped); guard the
    # fully-resident design before N is scaled up.  Beyond this a flash-style
    # tiled softmax over N would be needed.
    assert _vmem_bytes_estimate(C, N, L) < 32 * 1024 * 1024, (
        "per-step activation/score slabs exceed the scoped VMEM budget; "
        "tile the attention over N")

    return pl.pallas_call(
        fused_stacked_attention_kernel,
        out_shape=jax.ShapeDtypeStruct((bs, L * C, N), jnp.float32),
        grid_spec=pltpu.PrefetchScalarGridSpec(
            num_scalar_prefetch=0,
            grid=(bs,),
            in_specs=[
                pl.BlockSpec((None, C, N), lambda b: (b, 0, 0)),      # x (f32)
                pl.BlockSpec((C, C), lambda b: (0, 0)),               # w1 bf16
                pl.BlockSpec((C, 1), lambda b: (0, 0)),               # sh1 f32
                pl.BlockSpec((C, C), lambda b: (0, 0)),               # w2 bf16
                pl.BlockSpec((C, 1), lambda b: (0, 0)),               # sh2 f32
                pl.BlockSpec((L, 3 * C, C), lambda b: (0, 0, 0)),     # wqkv bf16
                pl.BlockSpec((L, C, C), lambda b: (0, 0, 0)),         # wt bf16
                pl.BlockSpec((L, C, 1), lambda b: (0, 0, 0)),         # shift f32
            ],
            out_specs=pl.BlockSpec((None, L * C, N), lambda b: (b, 0, 0)),
        ),
        compiler_params=pltpu.CompilerParams(
            dimension_semantics=("parallel",)),
    )(x, params["w1f"], params["sh1"], params["w2f"], params["sh2"],
      params["wqkv"], params["wtf"], params["sht"])


# --------------------------------------------------------------------------
# Parameter construction (deterministic, synthetic) + host-side folding
# --------------------------------------------------------------------------
def _fold_bn(gamma, beta, mean, var):
    scale = gamma / jnp.sqrt(var + BN_EPS)
    shift = beta - mean * scale
    return scale, shift


def _make_bn(key, C):
    k1, k2, k3, k4 = jax.random.split(key, 4)
    gamma = 1.0 + 0.1 * jax.random.normal(k1, (C,), jnp.float32)
    beta = 0.1 * jax.random.normal(k2, (C,), jnp.float32)
    mean = 0.1 * jax.random.normal(k3, (C,), jnp.float32)
    var = jnp.abs(1.0 + 0.1 * jax.random.normal(k4, (C,), jnp.float32))
    return _fold_bn(gamma, beta, mean, var)


def make_stacked_attention_params(key, C):
    ks = jax.random.split(key, 8)
    std = 1.0 / math.sqrt(C)
    dh = C // NUM_HEADS
    inv_sqrt_dh = 1.0 / math.sqrt(float(dh))

    w1 = std * jax.random.normal(ks[0], (C, C), jnp.float32)
    w2 = std * jax.random.normal(ks[1], (C, C), jnp.float32)
    s1, sh1 = _make_bn(ks[2], C)
    s2, sh2 = _make_bn(ks[3], C)

    params = {
        "w1f": (s1[:, None] * w1).astype(jnp.bfloat16),   # bn1 scale folded
        "sh1": sh1.reshape(C, 1),
        "w2f": (s2[:, None] * w2).astype(jnp.bfloat16),   # bn2 scale folded
        "sh2": sh2.reshape(C, 1),
    }

    wqkv_l, wtf_l, sht_l = [], [], []
    for i in range(NUM_SA_LAYERS):
        kk = jax.random.split(ks[4 + i], 6)
        wq = std * jax.random.normal(kk[0], (C, C), jnp.float32)
        wk = std * jax.random.normal(kk[1], (C, C), jnp.float32)
        wv = std * jax.random.normal(kk[2], (C, C), jnp.float32)
        wt = std * jax.random.normal(kk[3], (C, C), jnp.float32)
        bt = std * jax.random.normal(kk[4], (C,), jnp.float32)
        s, sh = _make_bn(kk[5], C)
        # 1/sqrt(dh) softmax scale folded into the q projection rows.
        wqkv_l.append(jnp.concatenate([inv_sqrt_dh * wq, wk, wv], axis=0))
        wtf_l.append(s[:, None] * wt)                             # bn folded
        sht_l.append((s * bt + sh).reshape(C, 1))                 # bias folded

    params["wqkv"] = jnp.stack(wqkv_l, axis=0).astype(jnp.bfloat16)  # (L,3C,C)
    params["wtf"] = jnp.stack(wtf_l, axis=0).astype(jnp.bfloat16)    # (L,C,C)
    params["sht"] = jnp.stack(sht_l, axis=0)                         # (L,C,1)
    return params


# --------------------------------------------------------------------------
if __name__ == "__main__":
    bs, C, N = 2, 32, 128          # channels must be divisible by 4 heads
    key = jax.random.PRNGKey(0)
    kx, kp = jax.random.split(key)

    x = jax.random.normal(kx, (bs, C, N), jnp.float32)
    params = make_stacked_attention_params(kp, C)

    fwd = jax.jit(stacked_attention)
    out = jax.block_until_ready(fwd(x, params))

    assert out.shape == (bs, 4 * C, N), out.shape
    assert bool(jnp.all(jnp.isfinite(out)))
    print("KERNEL_OK")
</pallas_src>

<mosaic_0001>
module attributes {stable_mosaic.version = 11 : i64} {
  func.func @fused_stacked_attention_kernel(%arg0: i32, %arg1: memref<1x32x128xf32, #tpu.memory_space<vmem>>, %arg2: memref<32x32xbf16, #tpu.memory_space<vmem>>, %arg3: memref<32x1xf32, #tpu.memory_space<vmem>>, %arg4: memref<32x32xbf16, #tpu.memory_space<vmem>>, %arg5: memref<32x1xf32, #tpu.memory_space<vmem>>, %arg6: memref<4x96x32xbf16, #tpu.memory_space<vmem>>, %arg7: memref<4x32x32xbf16, #tpu.memory_space<vmem>>, %arg8: memref<4x32x1xf32, #tpu.memory_space<vmem>>, %arg9: memref<1x128x128xf32, #tpu.memory_space<vmem>>) attributes {dimension_semantics = [#tpu.dimension_semantics<parallel>], iteration_bounds = array<i64: 2>, scalar_prefetch = 0 : i64, scratch_operands = 0 : i64, tpu.core_type = #tpu.core_type<tc>, window_params = [{transform_indices = @transform_0, window_bounds = array<i64: 1, 32, 128>}, {pipeline_mode = #tpu.pipeline_mode<synchronous>, transform_indices = @transform_1, window_bounds = array<i64: 32, 32>}, {pipeline_mode = #tpu.pipeline_mode<synchronous>, transform_indices = @transform_2, window_bounds = array<i64: 32, 1>}, {pipeline_mode = #tpu.pipeline_mode<synchronous>, transform_indices = @transform_3, window_bounds = array<i64: 32, 32>}, {pipeline_mode = #tpu.pipeline_mode<synchronous>, transform_indices = @transform_4, window_bounds = array<i64: 32, 1>}, {pipeline_mode = #tpu.pipeline_mode<synchronous>, transform_indices = @transform_5, window_bounds = array<i64: 4, 96, 32>}, {pipeline_mode = #tpu.pipeline_mode<synchronous>, transform_indices = @transform_6, window_bounds = array<i64: 4, 32, 32>}, {pipeline_mode = #tpu.pipeline_mode<synchronous>, transform_indices = @transform_7, window_bounds = array<i64: 4, 32, 1>}, {transform_indices = @transform_8, window_bounds = array<i64: 1, 128, 128>}]} {
    %c0 = arith.constant 0 : index
    %c0_0 = arith.constant 0 : index
    %c0_1 = arith.constant 0 : index
    %0 = vector.load %arg1[%c0, %c0_0, %c0_1] : memref<1x32x128xf32, #tpu.memory_space<vmem>>, vector<1x32x128xf32>
    %1 = vector.shape_cast %0 : vector<1x32x128xf32> to vector<32x128xf32>
    %c0_2 = arith.constant 0 : index
    %c0_3 = arith.constant 0 : index
    %2 = vector.load %arg2[%c0_2, %c0_3] : memref<32x32xbf16, #tpu.memory_space<vmem>>, vector<32x32xbf16>
    %3 = arith.truncf %1 : vector<32x128xf32> to vector<32x128xbf16>
    %cst = arith.constant dense<0.000000e+00> : vector<32x128xf32>
    %4 = tpu.matmul %2, %3, %cst {dimension_numbers = #tpu.dot_dimension_numbers<[1], [0], [0], [1], [0, 0, 1, 1], [], []>} : vector<32x32xbf16>, vector<32x128xbf16>, vector<32x128xf32> -> vector<32x128xf32>
    %c0_4 = arith.constant 0 : index
    %c0_5 = arith.constant 0 : index
    %5 = vector.load %arg3[%c0_4, %c0_5] : memref<32x1xf32, #tpu.memory_space<vmem>>, vector<32x1xf32>
    %6 = vector.broadcast %5 : vector<32x1xf32> to vector<32x128xf32>
    %7 = arith.addf %4, %6 : vector<32x128xf32>
    %cst_6 = arith.constant 0.000000e+00 : f32
    %8 = vector.broadcast %cst_6 : f32 to vector<32x128xf32>
    %9 = arith.maximumf %7, %8 : vector<32x128xf32>
    %c0_7 = arith.constant 0 : index
    %c0_8 = arith.constant 0 : index
    %10 = vector.load %arg4[%c0_7, %c0_8] : memref<32x32xbf16, #tpu.memory_space<vmem>>, vector<32x32xbf16>
    %11 = arith.truncf %9 : vector<32x128xf32> to vector<32x128xbf16>
    %cst_9 = arith.constant dense<0.000000e+00> : vector<32x128xf32>
    %12 = tpu.matmul %10, %11, %cst_9 {dimension_numbers = #tpu.dot_dimension_numbers<[1], [0], [0], [1], [0, 0, 1, 1], [], []>} : vector<32x32xbf16>, vector<32x128xbf16>, vector<32x128xf32> -> vector<32x128xf32>
    %c0_10 = arith.constant 0 : index
    %c0_11 = arith.constant 0 : index
    %13 = vector.load %arg5[%c0_10, %c0_11] : memref<32x1xf32, #tpu.memory_space<vmem>>, vector<32x1xf32>
    %14 = vector.broadcast %13 : vector<32x1xf32> to vector<32x128xf32>
    %15 = arith.addf %12, %14 : vector<32x128xf32>
    %cst_12 = arith.constant 0.000000e+00 : f32
    %16 = vector.broadcast %cst_12 : f32 to vector<32x128xf32>
    %17 = arith.maximumf %15, %16 : vector<32x128xf32>
    %c0_13 = arith.constant 0 : index
    %c0_14 = arith.constant 0 : index
    %c0_15 = arith.constant 0 : index
    %18 = vector.load %arg6[%c0_13, %c0_14, %c0_15] : memref<4x96x32xbf16, #tpu.memory_space<vmem>>, vector<1x96x32xbf16>
    %19 = vector.shape_cast %18 : vector<1x96x32xbf16> to vector<96x32xbf16>
    %c0_16 = arith.constant 0 : index
    %c0_17 = arith.constant 0 : index
    %c0_18 = arith.constant 0 : index
    %20 = vector.load %arg7[%c0_16, %c0_17, %c0_18] : memref<4x32x32xbf16, #tpu.memory_space<vmem>>, vector<1x32x32xbf16>
    %21 = vector.shape_cast %20 : vector<1x32x32xbf16> to vector<32x32xbf16>
    %c0_19 = arith.constant 0 : index
    %c0_20 = arith.constant 0 : index
    %c0_21 = arith.constant 0 : index
    %22 = vector.load %arg8[%c0_19, %c0_20, %c0_21] : memref<4x32x1xf32, #tpu.memory_space<vmem>>, vector<1x32x1xf32>
    %23 = vector.shape_cast %22 : vector<1x32x1xf32> to vector<32x1xf32>
    %24 = arith.truncf %17 : vector<32x128xf32> to vector<32x128xbf16>
    %cst_22 = arith.constant dense<0.000000e+00> : vector<96x128xf32>
    %25 = tpu.matmul %19, %24, %cst_22 {dimension_numbers = #tpu.dot_dimension_numbers<[1], [0], [0], [1], [0, 0, 1, 1], [], []>} : vector<96x32xbf16>, vector<32x128xbf16>, vector<96x128xf32> -> vector<96x128xf32>
    %26 = arith.truncf %25 : vector<96x128xf32> to vector<96x128xbf16>
    %27 = vector.extract_strided_slice %26 {offsets = [0, 0], sizes = [8, 128], strides = [1, 1]} : vector<96x128xbf16> to vector<8x128xbf16>
    %28 = vector.extract_strided_slice %26 {offsets = [32, 0], sizes = [8, 128], strides = [1, 1]} : vector<96x128xbf16> to vector<8x128xbf16>
    %29 = vector.extract_strided_slice %26 {offsets = [64, 0], sizes = [8, 128], strides = [1, 1]} : vector<96x128xbf16> to vector<8x128xbf16>
    %cst_23 = arith.constant dense<0.000000e+00> : vector<128x128xf32>
    %30 = tpu.matmul %28, %27, %cst_23 {dimension_numbers = #tpu.dot_dimension_numbers<[0], [0], [1], [1], [0, 1, 1, 1], [], []>} : vector<8x128xbf16>, vector<8x128xbf16>, vector<128x128xf32> -> vector<128x128xf32>
    %cst_24 = arith.constant dense<0xFF800000> : vector<128xf32>
    %31 = vector.multi_reduction <maximumf>, %30, %cst_24 [0] : vector<128x128xf32> to vector<128xf32>
    %32 = vector.shape_cast %31 : vector<128xf32> to vector<1x128xf32>
    %33 = vector.broadcast %32 : vector<1x128xf32> to vector<128x128xf32>
    %34 = arith.subf %30, %33 : vector<128x128xf32>
    %35 = math.exp %34 : vector<128x128xf32>
    %cst_25 = arith.constant dense<0.000000e+00> : vector<128xf32>
    %36 = vector.multi_reduction <add>, %35, %cst_25 [0] : vector<128x128xf32> to vector<128xf32>
    %37 = vector.shape_cast %36 : vector<128xf32> to vector<1x128xf32>
    %38 = tpu.reciprocal %37 {approx = true} : vector<1x128xf32> -> vector<1x128xf32>
    %39 = arith.truncf %35 : vector<128x128xf32> to vector<128x128xbf16>
    %cst_26 = arith.constant dense<0.000000e+00> : vector<8x128xf32>
    %40 = tpu.matmul %29, %39, %cst_26 {dimension_numbers = #tpu.dot_dimension_numbers<[1], [0], [0], [1], [0, 0, 1, 1], [], []>} : vector<8x128xbf16>, vector<128x128xbf16>, vector<8x128xf32> -> vector<8x128xf32>
    %41 = vector.broadcast %38 : vector<1x128xf32> to vector<8x128xf32>
    %42 = arith.mulf %40, %41 : vector<8x128xf32>
    %43 = vector.extract_strided_slice %26 {offsets = [8, 0], sizes = [8, 128], strides = [1, 1]} : vector<96x128xbf16> to vector<8x128xbf16>
    %44 = vector.extract_strided_slice %26 {offsets = [40, 0], sizes = [8, 128], strides = [1, 1]} : vector<96x128xbf16> to vector<8x128xbf16>
    %45 = vector.extract_strided_slice %26 {offsets = [72, 0], sizes = [8, 128], strides = [1, 1]} : vector<96x128xbf16> to vector<8x128xbf16>
    %cst_27 = arith.constant dense<0.000000e+00> : vector<128x128xf32>
    %46 = tpu.matmul %44, %43, %cst_27 {dimension_numbers = #tpu.dot_dimension_numbers<[0], [0], [1], [1], [0, 1, 1, 1], [], []>} : vector<8x128xbf16>, vector<8x128xbf16>, vector<128x128xf32> -> vector<128x128xf32>
    %cst_28 = arith.constant dense<0xFF800000> : vector<128xf32>
    %47 = vector.multi_reduction <maximumf>, %46, %cst_28 [0] : vector<128x128xf32> to vector<128xf32>
    %48 = vector.shape_cast %47 : vector<128xf32> to vector<1x128xf32>
    %49 = vector.broadcast %48 : vector<1x128xf32> to vector<128x128xf32>
    %50 = arith.subf %46, %49 : vector<128x128xf32>
    %51 = math.exp %50 : vector<128x128xf32>
    %cst_29 = arith.constant dense<0.000000e+00> : vector<128xf32>
    %52 = vector.multi_reduction <add>, %51, %cst_29 [0] : vector<128x128xf32> to vector<128xf32>
    %53 = vector.shape_cast %52 : vector<128xf32> to vector<1x128xf32>
    %54 = tpu.reciprocal %53 {approx = true} : vector<1x128xf32> -> vector<1x128xf32>
    %55 = arith.truncf %51 : vector<128x128xf32> to vector<128x128xbf16>
    %cst_30 = arith.constant dense<0.000000e+00> : vector<8x128xf32>
    %56 = tpu.matmul %45, %55, %cst_30 {dimension_numbers = #tpu.dot_dimension_numbers<[1], [0], [0], [1], [0, 0, 1, 1], [], []>} : vector<8x128xbf16>, vector<128x128xbf16>, vector<8x128xf32> -> vector<8x128xf32>
    %57 = vector.broadcast %54 : vector<1x128xf32> to vector<8x128xf32>
    %58 = arith.mulf %56, %57 : vector<8x128xf32>
    %59 = vector.extract_strided_slice %26 {offsets = [16, 0], sizes = [8, 128], strides = [1, 1]} : vector<96x128xbf16> to vector<8x128xbf16>
    %60 = vector.extract_strided_slice %26 {offsets = [48, 0], sizes = [8, 128], strides = [1, 1]} : vector<96x128xbf16> to vector<8x128xbf16>
    %61 = vector.extract_strided_slice %26 {offsets = [80, 0], sizes = [8, 128], strides = [1, 1]} : vector<96x128xbf16> to vector<8x128xbf16>
    %cst_31 = arith.constant dense<0.000000e+00> : vector<128x128xf32>
    %62 = tpu.matmul %60, %59, %cst_31 {dimension_numbers = #tpu.dot_dimension_numbers<[0], [0], [1], [1], [0, 1, 1, 1], [], []>} : vector<8x128xbf16>, vector<8x128xbf16>, vector<128x128xf32> -> vector<128x128xf32>
    %cst_32 = arith.constant dense<0xFF800000> : vector<128xf32>
    %63 = vector.multi_reduction <maximumf>, %62, %cst_32 [0] : vector<128x128xf32> to vector<128xf32>
    %64 = vector.shape_cast %63 : vector<128xf32> to vector<1x128xf32>
    %65 = vector.broadcast %64 : vector<1x128xf32> to vector<128x128xf32>
    %66 = arith.subf %62, %65 : vector<128x128xf32>
    %67 = math.exp %66 : vector<128x128xf32>
    %cst_33 = arith.constant dense<0.000000e+00> : vector<128xf32>
    %68 = vector.multi_reduction <add>, %67, %cst_33 [0] : vector<128x128xf32> to vector<128xf32>
    %69 = vector.shape_cast %68 : vector<128xf32> to vector<1x128xf32>
    %70 = tpu.reciprocal %69 {approx = true} : vector<1x128xf32> -> vector<1x128xf32>
    %71 = arith.truncf %67 : vector<128x128xf32> to vector<128x128xbf16>
    %cst_34 = arith.constant dense<0.000000e+00> : vector<8x128xf32>
    %72 = tpu.matmul %61, %71, %cst_34 {dimension_numbers = #tpu.dot_dimension_numbers<[1], [0], [0], [1], [0, 0, 1, 1], [], []>} : vector<8x128xbf16>, vector<128x128xbf16>, vector<8x128xf32> -> vector<8x128xf32>
    %73 = vector.broadcast %70 : vector<1x128xf32> to vector<8x128xf32>
    %74 = arith.mulf %72, %73 : vector<8x128xf32>
    %75 = vector.extract_strided_slice %26 {offsets = [24, 0], sizes = [8, 128], strides = [1, 1]} : vector<96x128xbf16> to vector<8x128xbf16>
    %76 = vector.extract_strided_slice %26 {offsets = [56, 0], sizes = [8, 128], strides = [1, 1]} : vector<96x128xbf16> to vector<8x128xbf16>
    %77 = vector.extract_strided_slice %26 {offsets = [88, 0], sizes = [8, 128], strides = [1, 1]} : vector<96x128xbf16> to vector<8x128xbf16>
    %cst_35 = arith.constant dense<0.000000e+00> : vector<128x128xf32>
    %78 = tpu.matmul %76, %75, %cst_35 {dimension_numbers = #tpu.dot_dimension_numbers<[0], [0], [1], [1], [0, 1, 1, 1], [], []>} : vector<8x128xbf16>, vector<8x128xbf16>, vector<128x128xf32> -> vector<128x128xf32>
    %cst_36 = arith.constant dense<0xFF800000> : vector<128xf32>
    %79 = vector.multi_reduction <maximumf>, %78, %cst_36 [0] : vector<128x128xf32> to vector<128xf32>
    %80 = vector.shape_cast %79 : vector<128xf32> to vector<1x128xf32>
    %81 = vector.broadcast %80 : vector<1x128xf32> to vector<128x128xf32>
    %82 = arith.subf %78, %81 : vector<128x128xf32>
    %83 = math.exp %82 : vector<128x128xf32>
    %cst_37 = arith.constant dense<0.000000e+00> : vector<128xf32>
    %84 = vector.multi_reduction <add>, %83, %cst_37 [0] : vector<128x128xf32> to vector<128xf32>
    %85 = vector.shape_cast %84 : vector<128xf32> to vector<1x128xf32>
    %86 = tpu.reciprocal %85 {approx = true} : vector<1x128xf32> -> vector<1x128xf32>
    %87 = arith.truncf %83 : vector<128x128xf32> to vector<128x128xbf16>
    %cst_38 = arith.constant dense<0.000000e+00> : vector<8x128xf32>
    %88 = tpu.matmul %77, %87, %cst_38 {dimension_numbers = #tpu.dot_dimension_numbers<[1], [0], [0], [1], [0, 0, 1, 1], [], []>} : vector<8x128xbf16>, vector<128x128xbf16>, vector<8x128xf32> -> vector<8x128xf32>
    %89 = vector.broadcast %86 : vector<1x128xf32> to vector<8x128xf32>
    %90 = arith.mulf %88, %89 : vector<8x128xf32>
    %91 = tpu.concatenate %42, %58, %74, %90 in 0 : vector<8x128xf32>, vector<8x128xf32>, vector<8x128xf32>, vector<8x128xf32> -> vector<32x128xf32>
    %92 = arith.subf %91, %17 : vector<32x128xf32>
    %93 = arith.truncf %92 : vector<32x128xf32> to vector<32x128xbf16>
    %cst_39 = arith.constant dense<0.000000e+00> : vector<32x128xf32>
    %94 = tpu.matmul %21, %93, %cst_39 {dimension_numbers = #tpu.dot_dimension_numbers<[1], [0], [0], [1], [0, 0, 1, 1], [], []>} : vector<32x32xbf16>, vector<32x128xbf16>, vector<32x128xf32> -> vector<32x128xf32>
    %95 = vector.broadcast %23 : vector<32x1xf32> to vector<32x128xf32>
    %96 = arith.addf %94, %95 : vector<32x128xf32>
    %cst_40 = arith.constant 0.000000e+00 : f32
    %97 = vector.broadcast %cst_40 : f32 to vector<32x128xf32>
    %98 = arith.maximumf %96, %97 : vector<32x128xf32>
    %99 = arith.addf %17, %98 : vector<32x128xf32>
    %c0_41 = arith.constant 0 : index
    %c0_42 = arith.constant 0 : index
    %c0_43 = arith.constant 0 : index
    %100 = vector.load %arg9[%c0_41, %c0_42, %c0_43] : memref<1x128x128xf32, #tpu.memory_space<vmem>>, vector<1x32x128xf32>
    %101 = vector.shape_cast %100 : vector<1x32x128xf32> to vector<32x128xf32>
    %102 = vector.shape_cast %99 : vector<32x128xf32> to vector<1x32x128xf32>
    tpu.vector_store %arg9[%c0_41, %c0_42, %c0_43], %102 {strides = array<i32>} : memref<1x128x128xf32, #tpu.memory_space<vmem>>, vector<1x32x128xf32>,
    %c1 = arith.constant 1 : index
    %c0_44 = arith.constant 0 : index
    %c0_45 = arith.constant 0 : index
    %103 = vector.load %arg6[%c1, %c0_44, %c0_45] : memref<4x96x32xbf16, #tpu.memory_space<vmem>>, vector<1x96x32xbf16>
    %104 = vector.shape_cast %103 : vector<1x96x32xbf16> to vector<96x32xbf16>
    %c1_46 = arith.constant 1 : index
    %c0_47 = arith.constant 0 : index
    %c0_48 = arith.constant 0 : index
    %105 = vector.load %arg7[%c1_46, %c0_47, %c0_48] : memref<4x32x32xbf16, #tpu.memory_space<vmem>>, vector<1x32x32xbf16>
    %106 = vector.shape_cast %105 : vector<1x32x32xbf16> to vector<32x32xbf16>
    %c1_49 = arith.constant 1 : index
    %c0_50 = arith.constant 0 : index
    %c0_51 = arith.constant 0 : index
    %107 = vector.load %arg8[%c1_49, %c0_50, %c0_51] : memref<4x32x1xf32, #tpu.memory_space<vmem>>, vector<1x32x1xf32>
    %108 = vector.shape_cast %107 : vector<1x32x1xf32> to vector<32x1xf32>
    %109 = arith.truncf %99 : vector<32x128xf32> to vector<32x128xbf16>
    %cst_52 = arith.constant dense<0.000000e+00> : vector<96x128xf32>
    %110 = tpu.matmul %104, %109, %cst_52 {dimension_numbers = #tpu.dot_dimension_numbers<[1], [0], [0], [1], [0, 0, 1, 1], [], []>} : vector<96x32xbf16>, vector<32x128xbf16>, vector<96x128xf32> -> vector<96x128xf32>
    %111 = arith.truncf %110 : vector<96x128xf32> to vector<96x128xbf16>
    %112 = vector.extract_strided_slice %111 {offsets = [0, 0], sizes = [8, 128], strides = [1, 1]} : vector<96x128xbf16> to vector<8x128xbf16>
    %113 = vector.extract_strided_slice %111 {offsets = [32, 0], sizes = [8, 128], strides = [1, 1]} : vector<96x128xbf16> to vector<8x128xbf16>
    %114 = vector.extract_strided_slice %111 {offsets = [64, 0], sizes = [8, 128], strides = [1, 1]} : vector<96x128xbf16> to vector<8x128xbf16>
    %cst_53 = arith.constant dense<0.000000e+00> : vector<128x128xf32>
    %115 = tpu.matmul %113, %112, %cst_53 {dimension_numbers = #tpu.dot_dimension_numbers<[0], [0], [1], [1], [0, 1, 1, 1], [], []>} : vector<8x128xbf16>, vector<8x128xbf16>, vector<128x128xf32> -> vector<128x128xf32>
    %cst_54 = arith.constant dense<0xFF800000> : vector<128xf32>
    %116 = vector.multi_reduction <maximumf>, %115, %cst_54 [0] : vector<128x128xf32> to vector<128xf32>
    %117 = vector.shape_cast %116 : vector<128xf32> to vector<1x128xf32>
    %118 = vector.broadcast %117 : vector<1x128xf32> to vector<128x128xf32>
    %119 = arith.subf %115, %118 : vector<128x128xf32>
    %120 = math.exp %119 : vector<128x128xf32>
    %cst_55 = arith.constant dense<0.000000e+00> : vector<128xf32>
    %121 = vector.multi_reduction <add>, %120, %cst_55 [0] : vector<128x128xf32> to vector<128xf32>
    %122 = vector.shape_cast %121 : vector<128xf32> to vector<1x128xf32>
    %123 = tpu.reciprocal %122 {approx = true} : vector<1x128xf32> -> vector<1x128xf32>
    %124 = arith.truncf %120 : vector<128x128xf32> to vector<128x128xbf16>
    %cst_56 = arith.constant dense<0.000000e+00> : vector<8x128xf32>
    %125 = tpu.matmul %114, %124, %cst_56 {dimension_numbers = #tpu.dot_dimension_numbers<[1], [0], [0], [1], [0, 0, 1, 1], [], []>} : vector<8x128xbf16>, vector<128x128xbf16>, vector<8x128xf32> -> vector<8x128xf32>
    %126 = vector.broadcast %123 : vector<1x128xf32> to vector<8x128xf32>
    %127 = arith.mulf %125, %126 : vector<8x128xf32>
    %128 = vector.extract_strided_slice %111 {offsets = [8, 0], sizes = [8, 128], strides = [1, 1]} : vector<96x128xbf16> to vector<8x128xbf16>
    %129 = vector.extract_strided_slice %111 {offsets = [40, 0], sizes = [8, 128], strides = [1, 1]} : vector<96x128xbf16> to vector<8x128xbf16>
    %130 = vector.extract_strided_slice %111 {offsets = [72, 0], sizes = [8, 128], strides = [1, 1]} : vector<96x128xbf16> to vector<8x128xbf16>
    %cst_57 = arith.constant dense<0.000000e+00> : vector<128x128xf32>
    %131 = tpu.matmul %129, %128, %cst_57 {dimension_numbers = #tpu.dot_dimension_numbers<[0], [0], [1], [1], [0, 1, 1, 1], [], []>} : vector<8x128xbf16>, vector<8x128xbf16>, vector<128x128xf32> -> vector<128x128xf32>
    %cst_58 = arith.constant dense<0xFF800000> : vector<128xf32>
    %132 = vector.multi_reduction <maximumf>, %131, %cst_58 [0] : vector<128x128xf32> to vector<128xf32>
    %133 = vector.shape_cast %132 : vector<128xf32> to vector<1x128xf32>
    %134 = vector.broadcast %133 : vector<1x128xf32> to vector<128x128xf32>
    %135 = arith.subf %131, %134 : vector<128x128xf32>
    %136 = math.exp %135 : vector<128x128xf32>
    %cst_59 = arith.constant dense<0.000000e+00> : vector<128xf32>
    %137 = vector.multi_reduction <add>, %136, %cst_59 [0] : vector<128x128xf32> to vector<128xf32>
    %138 = vector.shape_cast %137 : vector<128xf32> to vector<1x128xf32>
    %139 = tpu.reciprocal %138 {approx = true} : vector<1x128xf32> -> vector<1x128xf32>
    %140 = arith.truncf %136 : vector<128x128xf32> to vector<128x128xbf16>
    %cst_60 = arith.constant dense<0.000000e+00> : vector<8x128xf32>
    %141 = tpu.matmul %130, %140, %cst_60 {dimension_numbers = #tpu.dot_dimension_numbers<[1], [0], [0], [1], [0, 0, 1, 1], [], []>} : vector<8x128xbf16>, vector<128x128xbf16>, vector<8x128xf32> -> vector<8x128xf32>
    %142 = vector.broadcast %139 : vector<1x128xf32> to vector<8x128xf32>
    %143 = arith.mulf %141, %142 : vector<8x128xf32>
    %144 = vector.extract_strided_slice %111 {offsets = [16, 0], sizes = [8, 128], strides = [1, 1]} : vector<96x128xbf16> to vector<8x128xbf16>
    %145 = vector.extract_strided_slice %111 {offsets = [48, 0], sizes = [8, 128], strides = [1, 1]} : vector<96x128xbf16> to vector<8x128xbf16>
    %146 = vector.extract_strided_slice %111 {offsets = [80, 0], sizes = [8, 128], strides = [1, 1]} : vector<96x128xbf16> to vector<8x128xbf16>
    %cst_61 = arith.constant dense<0.000000e+00> : vector<128x128xf32>
    %147 = tpu.matmul %145, %144, %cst_61 {dimension_numbers = #tpu.dot_dimension_numbers<[0], [0], [1], [1], [0, 1, 1, 1], [], []>} : vector<8x128xbf16>, vector<8x128xbf16>, vector<128x128xf32> -> vector<128x128xf32>
    %cst_62 = arith.constant dense<0xFF800000> : vector<128xf32>
    %148 = vector.multi_reduction <maximumf>, %147, %cst_62 [0] : vector<128x128xf32> to vector<128xf32>
    %149 = vector.shape_cast %148 : vector<128xf32> to vector<1x128xf32>
    %150 = vector.broadcast %149 : vector<1x128xf32> to vector<128x128xf32>
    %151 = arith.subf %147, %150 : vector<128x128xf32>
    %152 = math.exp %151 : vector<128x128xf32>
    %cst_63 = arith.constant dense<0.000000e+00> : vector<128xf32>
    %153 = vector.multi_reduction <add>, %152, %cst_63 [0] : vector<128x128xf32> to vector<128xf32>
    %154 = vector.shape_cast %153 : vector<128xf32> to vector<1x128xf32>
    %155 = tpu.reciprocal %154 {approx = true} : vector<1x128xf32> -> vector<1x128xf32>
    %156 = arith.truncf %152 : vector<128x128xf32> to vector<128x128xbf16>
    %cst_64 = arith.constant dense<0.000000e+00> : vector<8x128xf32>
    %157 = tpu.matmul %146, %156, %cst_64 {dimension_numbers = #tpu.dot_dimension_numbers<[1], [0], [0], [1], [0, 0, 1, 1], [], []>} : vector<8x128xbf16>, vector<128x128xbf16>, vector<8x128xf32> -> vector<8x128xf32>
    %158 = vector.broadcast %155 : vector<1x128xf32> to vector<8x128xf32>
    %159 = arith.mulf %157, %158 : vector<8x128xf32>
    %160 = vector.extract_strided_slice %111 {offsets = [24, 0], sizes = [8, 128], strides = [1, 1]} : vector<96x128xbf16> to vector<8x128xbf16>
    %161 = vector.extract_strided_slice %111 {offsets = [56, 0], sizes = [8, 128], strides = [1, 1]} : vector<96x128xbf16> to vector<8x128xbf16>
    %162 = vector.extract_strided_slice %111 {offsets = [88, 0], sizes = [8, 128], strides = [1, 1]} : vector<96x128xbf16> to vector<8x128xbf16>
    %cst_65 = arith.constant dense<0.000000e+00> : vector<128x128xf32>
    %163 = tpu.matmul %161, %160, %cst_65 {dimension_numbers = #tpu.dot_dimension_numbers<[0], [0], [1], [1], [0, 1, 1, 1], [], []>} : vector<8x128xbf16>, vector<8x128xbf16>, vector<128x128xf32> -> vector<128x128xf32>
    %cst_66 = arith.constant dense<0xFF800000> : vector<128xf32>
    %164 = vector.multi_reduction <maximumf>, %163, %cst_66 [0] : vector<128x128xf32> to vector<128xf32>
    %165 = vector.shape_cast %164 : vector<128xf32> to vector<1x128xf32>
    %166 = vector.broadcast %165 : vector<1x128xf32> to vector<128x128xf32>
    %167 = arith.subf %163, %166 : vector<128x128xf32>
    %168 = math.exp %167 : vector<128x128xf32>
    %cst_67 = arith.constant dense<0.000000e+00> : vector<128xf32>
    %169 = vector.multi_reduction <add>, %168, %cst_67 [0] : vector<128x128xf32> to vector<128xf32>
    %170 = vector.shape_cast %169 : vector<128xf32> to vector<1x128xf32>
    %171 = tpu.reciprocal %170 {approx = true} : vector<1x128xf32> -> vector<1x128xf32>
    %172 = arith.truncf %168 : vector<128x128xf32> to vector<128x128xbf16>
    %cst_68 = arith.constant dense<0.000000e+00> : vector<8x128xf32>
    %173 = tpu.matmul %162, %172, %cst_68 {dimension_numbers = #tpu.dot_dimension_numbers<[1], [0], [0], [1], [0, 0, 1, 1], [], []>} : vector<8x128xbf16>, vector<128x128xbf16>, vector<8x128xf32> -> vector<8x128xf32>
    %174 = vector.broadcast %171 : vector<1x128xf32> to vector<8x128xf32>
    %175 = arith.mulf %173, %174 : vector<8x128xf32>
    %176 = tpu.concatenate %127, %143, %159, %175 in 0 : vector<8x128xf32>, vector<8x128xf32>, vector<8x128xf32>, vector<8x128xf32> -> vector<32x128xf32>
    %177 = arith.subf %176, %99 : vector<32x128xf32>
    %178 = arith.truncf %177 : vector<32x128xf32> to vector<32x128xbf16>
    %cst_69 = arith.constant dense<0.000000e+00> : vector<32x128xf32>
    %179 = tpu.matmul %106, %178, %cst_69 {dimension_numbers = #tpu.dot_dimension_numbers<[1], [0], [0], [1], [0, 0, 1, 1], [], []>} : vector<32x32xbf16>, vector<32x128xbf16>, vector<32x128xf32> -> vector<32x128xf32>
    %180 = vector.broadcast %108 : vector<32x1xf32> to vector<32x128xf32>
    %181 = arith.addf %179, %180 : vector<32x128xf32>
    %cst_70 = arith.constant 0.000000e+00 : f32
    %182 = vector.broadcast %cst_70 : f32 to vector<32x128xf32>
    %183 = arith.maximumf %181, %182 : vector<32x128xf32>
    %184 = arith.addf %99, %183 : vector<32x128xf32>
    %c0_71 = arith.constant 0 : index
    %c32 = arith.constant 32 : index
    %c0_72 = arith.constant 0 : index
    %185 = vector.load %arg9[%c0_71, %c32, %c0_72] : memref<1x128x128xf32, #tpu.memory_space<vmem>>, vector<1x32x128xf32>
    %186 = vector.shape_cast %185 : vector<1x32x128xf32> to vector<32x128xf32>
    %187 = vector.shape_cast %184 : vector<32x128xf32> to vector<1x32x128xf32>
    tpu.vector_store %arg9[%c0_71, %c32, %c0_72], %187 {strides = array<i32>} : memref<1x128x128xf32, #tpu.memory_space<vmem>>, vector<1x32x128xf32>,
    %c2 = arith.constant 2 : index
    %c0_73 = arith.constant 0 : index
    %c0_74 = arith.constant 0 : index
    %188 = vector.load %arg6[%c2, %c0_73, %c0_74] : memref<4x96x32xbf16, #tpu.memory_space<vmem>>, vector<1x96x32xbf16>
    %189 = vector.shape_cast %188 : vector<1x96x32xbf16> to vector<96x32xbf16>
    %c2_75 = arith.constant 2 : index
    %c0_76 = arith.constant 0 : index
    %c0_77 = arith.constant 0 : index
    %190 = vector.load %arg7[%c2_75, %c0_76, %c0_77] : memref<4x32x32xbf16, #tpu.memory_space<vmem>>, vector<1x32x32xbf16>
    %191 = vector.shape_cast %190 : vector<1x32x32xbf16> to vector<32x32xbf16>
    %c2_78 = arith.constant 2 : index
    %c0_79 = arith.constant 0 : index
    %c0_80 = arith.constant 0 : index
    %192 = vector.load %arg8[%c2_78, %c0_79, %c0_80] : memref<4x32x1xf32, #tpu.memory_space<vmem>>, vector<1x32x1xf32>
    %193 = vector.shape_cast %192 : vector<1x32x1xf32> to vector<32x1xf32>
    %194 = arith.truncf %184 : vector<32x128xf32> to vector<32x128xbf16>
    %cst_81 = arith.constant dense<0.000000e+00> : vector<96x128xf32>
    %195 = tpu.matmul %189, %194, %cst_81 {dimension_numbers = #tpu.dot_dimension_numbers<[1], [0], [0], [1], [0, 0, 1, 1], [], []>} : vector<96x32xbf16>, vector<32x128xbf16>, vector<96x128xf32> -> vector<96x128xf32>
    %196 = arith.truncf %195 : vector<96x128xf32> to vector<96x128xbf16>
    %197 = vector.extract_strided_slice %196 {offsets = [0, 0], sizes = [8, 128], strides = [1, 1]} : vector<96x128xbf16> to vector<8x128xbf16>
    %198 = vector.extract_strided_slice %196 {offsets = [32, 0], sizes = [8, 128], strides = [1, 1]} : vector<96x128xbf16> to vector<8x128xbf16>
    %199 = vector.extract_strided_slice %196 {offsets = [64, 0], sizes = [8, 128], strides = [1, 1]} : vector<96x128xbf16> to vector<8x128xbf16>
    %cst_82 = arith.constant dense<0.000000e+00> : vector<128x128xf32>
    %200 = tpu.matmul %198, %197, %cst_82 {dimension_numbers = #tpu.dot_dimension_numbers<[0], [0], [1], [1], [0, 1, 1, 1], [], []>} : vector<8x128xbf16>, vector<8x128xbf16>, vector<128x128xf32> -> vector<128x128xf32>
    %cst_83 = arith.constant dense<0xFF800000> : vector<128xf32>
    %201 = vector.multi_reduction <maximumf>, %200, %cst_83 [0] : vector<128x128xf32> to vector<128xf32>
    %202 = vector.shape_cast %201 : vector<128xf32> to vector<1x128xf32>
    %203 = vector.broadcast %202 : vector<1x128xf32> to vector<128x128xf32>
    %204 = arith.subf %200, %203 : vector<128x128xf32>
    %205 = math.exp %204 : vector<128x128xf32>
    %cst_84 = arith.constant dense<0.000000e+00> : vector<128xf32>
    %206 = vector.multi_reduction <add>, %205, %cst_84 [0] : vector<128x128xf32> to vector<128xf32>
    %207 = vector.shape_cast %206 : vector<128xf32> to vector<1x128xf32>
    %208 = tpu.reciprocal %207 {approx = true} : vector<1x128xf32> -> vector<1x128xf32>
    %209 = arith.truncf %205 : vector<128x128xf32> to vector<128x128xbf16>
    %cst_85 = arith.constant dense<0.000000e+00> : vector<8x128xf32>
    %210 = tpu.matmul %199, %209, %cst_85 {dimension_numbers = #tpu.dot_dimension_numbers<[1], [0], [0], [1], [0, 0, 1, 1], [], []>} : vector<8x128xbf16>, vector<128x128xbf16>, vector<8x128xf32> -> vector<8x128xf32>
    %211 = vector.broadcast %208 : vector<1x128xf32> to vector<8x128xf32>
    %212 = arith.mulf %210, %211 : vector<8x128xf32>
    %213 = vector.extract_strided_slice %196 {offsets = [8, 0], sizes = [8, 128], strides = [1, 1]} : vector<96x128xbf16> to vector<8x128xbf16>
    %214 = vector.extract_strided_slice %196 {offsets = [40, 0], sizes = [8, 128], strides = [1, 1]} : vector<96x128xbf16> to vector<8x128xbf16>
    %215 = vector.extract_strided_slice %196 {offsets = [72, 0], sizes = [8, 128], strides = [1, 1]} : vector<96x128xbf16> to vector<8x128xbf16>
    %cst_86 = arith.constant dense<0.000000e+00> : vector<128x128xf32>
    %216 = tpu.matmul %214, %213, %cst_86 {dimension_numbers = #tpu.dot_dimension_numbers<[0], [0], [1], [1], [0, 1, 1, 1], [], []>} : vector<8x128xbf16>, vector<8x128xbf16>, vector<128x128xf32> -> vector<128x128xf32>
    %cst_87 = arith.constant dense<0xFF800000> : vector<128xf32>
    %217 = vector.multi_reduction <maximumf>, %216, %cst_87 [0] : vector<128x128xf32> to vector<128xf32>
    %218 = vector.shape_cast %217 : vector<128xf32> to vector<1x128xf32>
    %219 = vector.broadcast %218 : vector<1x128xf32> to vector<128x128xf32>
    %220 = arith.subf %216, %219 : vector<128x128xf32>
    %221 = math.exp %220 : vector<128x128xf32>
    %cst_88 = arith.constant dense<0.000000e+00> : vector<128xf32>
    %222 = vector.multi_reduction <add>, %221, %cst_88 [0] : vector<128x128xf32> to vector<128xf32>
    %223 = vector.shape_cast %222 : vector<128xf32> to vector<1x128xf32>
    %224 = tpu.reciprocal %223 {approx = true} : vector<1x128xf32> -> vector<1x128xf32>
    %225 = arith.truncf %221 : vector<128x128xf32> to vector<128x128xbf16>
    %cst_89 = arith.constant dense<0.000000e+00> : vector<8x128xf32>
    %226 = tpu.matmul %215, %225, %cst_89 {dimension_numbers = #tpu.dot_dimension_numbers<[1], [0], [0], [1], [0, 0, 1, 1], [], []>} : vector<8x128xbf16>, vector<128x128xbf16>, vector<8x128xf32> -> vector<8x128xf32>
    %227 = vector.broadcast %224 : vector<1x128xf32> to vector<8x128xf32>
    %228 = arith.mulf %226, %227 : vector<8x128xf32>
    %229 = vector.extract_strided_slice %196 {offsets = [16, 0], sizes = [8, 128], strides = [1, 1]} : vector<96x128xbf16> to vector<8x128xbf16>
    %230 = vector.extract_strided_slice %196 {offsets = [48, 0], sizes = [8, 128], strides = [1, 1]} : vector<96x128xbf16> to vector<8x128xbf16>
    %231 = vector.extract_strided_slice %196 {offsets = [80, 0], sizes = [8, 128], strides = [1, 1]} : vector<96x128xbf16> to vector<8x128xbf16>
    %cst_90 = arith.constant dense<0.000000e+00> : vector<128x128xf32>
    %232 = tpu.matmul %230, %229, %cst_90 {dimension_numbers = #tpu.dot_dimension_numbers<[0], [0], [1], [1], [0, 1, 1, 1], [], []>} : vector<8x128xbf16>, vector<8x128xbf16>, vector<128x128xf32> -> vector<128x128xf32>
    %cst_91 = arith.constant dense<0xFF800000> : vector<128xf32>
    %233 = vector.multi_reduction <maximumf>, %232, %cst_91 [0] : vector<128x128xf32> to vector<128xf32>
    %234 = vector.shape_cast %233 : vector<128xf32> to vector<1x128xf32>
    %235 = vector.broadcast %234 : vector<1x128xf32> to vector<128x128xf32>
    %236 = arith.subf %232, %235 : vector<128x128xf32>
    %237 = math.exp %236 : vector<128x128xf32>
    %cst_92 = arith.constant dense<0.000000e+00> : vector<128xf32>
    %238 = vector.multi_reduction <add>, %237, %cst_92 [0] : vector<128x128xf32> to vector<128xf32>
    %239 = vector.shape_cast %238 : vector<128xf32> to vector<1x128xf32>
    %240 = tpu.reciprocal %239 {approx = true} : vector<1x128xf32> -> vector<1x128xf32>
    %241 = arith.truncf %237 : vector<128x128xf32> to vector<128x128xbf16>
    %cst_93 = arith.constant dense<0.000000e+00> : vector<8x128xf32>
    %242 = tpu.matmul %231, %241, %cst_93 {dimension_numbers = #tpu.dot_dimension_numbers<[1], [0], [0], [1], [0, 0, 1, 1], [], []>} : vector<8x128xbf16>, vector<128x128xbf16>, vector<8x128xf32> -> vector<8x128xf32>
    %243 = vector.broadcast %240 : vector<1x128xf32> to vector<8x128xf32>
    %244 = arith.mulf %242, %243 : vector<8x128xf32>
    %245 = vector.extract_strided_slice %196 {offsets = [24, 0], sizes = [8, 128], strides = [1, 1]} : vector<96x128xbf16> to vector<8x128xbf16>
    %246 = vector.extract_strided_slice %196 {offsets = [56, 0], sizes = [8, 128], strides = [1, 1]} : vector<96x128xbf16> to vector<8x128xbf16>
    %247 = vector.extract_strided_slice %196 {offsets = [88, 0], sizes = [8, 128], strides = [1, 1]} : vector<96x128xbf16> to vector<8x128xbf16>
    %cst_94 = arith.constant dense<0.000000e+00> : vector<128x128xf32>
    %248 = tpu.matmul %246, %245, %cst_94 {dimension_numbers = #tpu.dot_dimension_numbers<[0], [0], [1], [1], [0, 1, 1, 1], [], []>} : vector<8x128xbf16>, vector<8x128xbf16>, vector<128x128xf32> -> vector<128x128xf32>
    %cst_95 = arith.constant dense<0xFF800000> : vector<128xf32>
    %249 = vector.multi_reduction <maximumf>, %248, %cst_95 [0] : vector<128x128xf32> to vector<128xf32>
    %250 = vector.shape_cast %249 : vector<128xf32> to vector<1x128xf32>
    %251 = vector.broadcast %250 : vector<1x128xf32> to vector<128x128xf32>
    %252 = arith.subf %248, %251 : vector<128x128xf32>
    %253 = math.exp %252 : vector<128x128xf32>
    %cst_96 = arith.constant dense<0.000000e+00> : vector<128xf32>
    %254 = vector.multi_reduction <add>, %253, %cst_96 [0] : vector<128x128xf32> to vector<128xf32>
    %255 = vector.shape_cast %254 : vector<128xf32> to vector<1x128xf32>
    %256 = tpu.reciprocal %255 {approx = true} : vector<1x128xf32> -> vector<1x128xf32>
    %257 = arith.truncf %253 : vector<128x128xf32> to vector<128x128xbf16>
    %cst_97 = arith.constant dense<0.000000e+00> : vector<8x128xf32>
    %258 = tpu.matmul %247, %257, %cst_97 {dimension_numbers = #tpu.dot_dimension_numbers<[1], [0], [0], [1], [0, 0, 1, 1], [], []>} : vector<8x128xbf16>, vector<128x128xbf16>, vector<8x128xf32> -> vector<8x128xf32>
    %259 = vector.broadcast %256 : vector<1x128xf32> to vector<8x128xf32>
    %260 = arith.mulf %258, %259 : vector<8x128xf32>
    %261 = tpu.concatenate %212, %228, %244, %260 in 0 : vector<8x128xf32>, vector<8x128xf32>, vector<8x128xf32>, vector<8x128xf32> -> vector<32x128xf32>
    %262 = arith.subf %261, %184 : vector<32x128xf32>
    %263 = arith.truncf %262 : vector<32x128xf32> to vector<32x128xbf16>
    %cst_98 = arith.constant dense<0.000000e+00> : vector<32x128xf32>
    %264 = tpu.matmul %191, %263, %cst_98 {dimension_numbers = #tpu.dot_dimension_numbers<[1], [0], [0], [1], [0, 0, 1, 1], [], []>} : vector<32x32xbf16>, vector<32x128xbf16>, vector<32x128xf32> -> vector<32x128xf32>
    %265 = vector.broadcast %193 : vector<32x1xf32> to vector<32x128xf32>
    %266 = arith.addf %264, %265 : vector<32x128xf32>
    %cst_99 = arith.constant 0.000000e+00 : f32
    %267 = vector.broadcast %cst_99 : f32 to vector<32x128xf32>
    %268 = arith.maximumf %266, %267 : vector<32x128xf32>
    %269 = arith.addf %184, %268 : vector<32x128xf32>
    %c0_100 = arith.constant 0 : index
    %c64 = arith.constant 64 : index
    %c0_101 = arith.constant 0 : index
    %270 = vector.load %arg9[%c0_100, %c64, %c0_101] : memref<1x128x128xf32, #tpu.memory_space<vmem>>, vector<1x32x128xf32>
    %271 = vector.shape_cast %270 : vector<1x32x128xf32> to vector<32x128xf32>
    %272 = vector.shape_cast %269 : vector<32x128xf32> to vector<1x32x128xf32>
    tpu.vector_store %arg9[%c0_100, %c64, %c0_101], %272 {strides = array<i32>} : memref<1x128x128xf32, #tpu.memory_space<vmem>>, vector<1x32x128xf32>,
    %c3 = arith.constant 3 : index
    %c0_102 = arith.constant 0 : index
    %c0_103 = arith.constant 0 : index
    %273 = vector.load %arg6[%c3, %c0_102, %c0_103] : memref<4x96x32xbf16, #tpu.memory_space<vmem>>, vector<1x96x32xbf16>
    %274 = vector.shape_cast %273 : vector<1x96x32xbf16> to vector<96x32xbf16>
    %c3_104 = arith.constant 3 : index
    %c0_105 = arith.constant 0 : index
    %c0_106 = arith.constant 0 : index
    %275 = vector.load %arg7[%c3_104, %c0_105, %c0_106] : memref<4x32x32xbf16, #tpu.memory_space<vmem>>, vector<1x32x32xbf16>
    %276 = vector.shape_cast %275 : vector<1x32x32xbf16> to vector<32x32xbf16>
    %c3_107 = arith.constant 3 : index
    %c0_108 = arith.constant 0 : index
    %c0_109 = arith.constant 0 : index
    %277 = vector.load %arg8[%c3_107, %c0_108, %c0_109] : memref<4x32x1xf32, #tpu.memory_space<vmem>>, vector<1x32x1xf32>
    %278 = vector.shape_cast %277 : vector<1x32x1xf32> to vector<32x1xf32>
    %279 = arith.truncf %269 : vector<32x128xf32> to vector<32x128xbf16>
    %cst_110 = arith.constant dense<0.000000e+00> : vector<96x128xf32>
    %280 = tpu.matmul %274, %279, %cst_110 {dimension_numbers = #tpu.dot_dimension_numbers<[1], [0], [0], [1], [0, 0, 1, 1], [], []>} : vector<96x32xbf16>, vector<32x128xbf16>, vector<96x128xf32> -> vector<96x128xf32>
    %281 = arith.truncf %280 : vector<96x128xf32> to vector<96x128xbf16>
    %282 = vector.extract_strided_slice %281 {offsets = [0, 0], sizes = [8, 128], strides = [1, 1]} : vector<96x128xbf16> to vector<8x128xbf16>
    %283 = vector.extract_strided_slice %281 {offsets = [32, 0], sizes = [8, 128], strides = [1, 1]} : vector<96x128xbf16> to vector<8x128xbf16>
    %284 = vector.extract_strided_slice %281 {offsets = [64, 0], sizes = [8, 128], strides = [1, 1]} : vector<96x128xbf16> to vector<8x128xbf16>
    %cst_111 = arith.constant dense<0.000000e+00> : vector<128x128xf32>
    %285 = tpu.matmul %283, %282, %cst_111 {dimension_numbers = #tpu.dot_dimension_numbers<[0], [0], [1], [1], [0, 1, 1, 1], [], []>} : vector<8x128xbf16>, vector<8x128xbf16>, vector<128x128xf32> -> vector<128x128xf32>
    %cst_112 = arith.constant dense<0xFF800000> : vector<128xf32>
    %286 = vector.multi_reduction <maximumf>, %285, %cst_112 [0] : vector<128x128xf32> to vector<128xf32>
    %287 = vector.shape_cast %286 : vector<128xf32> to vector<1x128xf32>
    %288 = vector.broadcast %287 : vector<1x128xf32> to vector<128x128xf32>
    %289 = arith.subf %285, %288 : vector<128x128xf32>
    %290 = math.exp %289 : vector<128x128xf32>
    %cst_113 = arith.constant dense<0.000000e+00> : vector<128xf32>
    %291 = vector.multi_reduction <add>, %290, %cst_113 [0] : vector<128x128xf32> to vector<128xf32>
    %292 = vector.shape_cast %291 : vector<128xf32> to vector<1x128xf32>
    %293 = tpu.reciprocal %292 {approx = true} : vector<1x128xf32> -> vector<1x128xf32>
    %294 = arith.truncf %290 : vector<128x128xf32> to vector<128x128xbf16>
    %cst_114 = arith.constant dense<0.000000e+00> : vector<8x128xf32>
    %295 = tpu.matmul %284, %294, %cst_114 {dimension_numbers = #tpu.dot_dimension_numbers<[1], [0], [0], [1], [0, 0, 1, 1], [], []>} : vector<8x128xbf16>, vector<128x128xbf16>, vector<8x128xf32> -> vector<8x128xf32>
    %296 = vector.broadcast %293 : vector<1x128xf32> to vector<8x128xf32>
    %297 = arith.mulf %295, %296 : vector<8x128xf32>
    %298 = vector.extract_strided_slice %281 {offsets = [8, 0], sizes = [8, 128], strides = [1, 1]} : vector<96x128xbf16> to vector<8x128xbf16>
    %299 = vector.extract_strided_slice %281 {offsets = [40, 0], sizes = [8, 128], strides = [1, 1]} : vector<96x128xbf16> to vector<8x128xbf16>
    %300 = vector.extract_strided_slice %281 {offsets = [72, 0], sizes = [8, 128], strides = [1, 1]} : vector<96x128xbf16> to vector<8x128xbf16>
    %cst_115 = arith.constant dense<0.000000e+00> : vector<128x128xf32>
    %301 = tpu.matmul %299, %298, %cst_115 {dimension_numbers = #tpu.dot_dimension_numbers<[0], [0], [1], [1], [0, 1, 1, 1], [], []>} : vector<8x128xbf16>, vector<8x128xbf16>, vector<128x128xf32> -> vector<128x128xf32>
    %cst_116 = arith.constant dense<0xFF800000> : vector<128xf32>
    %302 = vector.multi_reduction <maximumf>, %301, %cst_116 [0] : vector<128x128xf32> to vector<128xf32>
    %303 = vector.shape_cast %302 : vector<128xf32> to vector<1x128xf32>
    %304 = vector.broadcast %303 : vector<1x128xf32> to vector<128x128xf32>
    %305 = arith.subf %301, %304 : vector<128x128xf32>
    %306 = math.exp %305 : vector<128x128xf32>
    %cst_117 = arith.constant dense<0.000000e+00> : vector<128xf32>
    %307 = vector.multi_reduction <add>, %306, %cst_117 [0] : vector<128x128xf32> to vector<128xf32>
    %308 = vector.shape_cast %307 : vector<128xf32> to vector<1x128xf32>
    %309 = tpu.reciprocal %308 {approx = true} : vector<1x128xf32> -> vector<1x128xf32>
    %310 = arith.truncf %306 : vector<128x128xf32> to vector<128x128xbf16>
    %cst_118 = arith.constant dense<0.000000e+00> : vector<8x128xf32>
    %311 = tpu.matmul %300, %310, %cst_118 {dimension_numbers = #tpu.dot_dimension_numbers<[1], [0], [0], [1], [0, 0, 1, 1], [], []>} : vector<8x128xbf16>, vector<128x128xbf16>, vector<8x128xf32> -> vector<8x128xf32>
    %312 = vector.broadcast %309 : vector<1x128xf32> to vector<8x128xf32>
    %313 = arith.mulf %311, %312 : vector<8x128xf32>
    %314 = vector.extract_strided_slice %281 {offsets = [16, 0], sizes = [8, 128], strides = [1, 1]} : vector<96x128xbf16> to vector<8x128xbf16>
    %315 = vector.extract_strided_slice %281 {offsets = [48, 0], sizes = [8, 128], strides = [1, 1]} : vector<96x128xbf16> to vector<8x128xbf16>
    %316 = vector.extract_strided_slice %281 {offsets = [80, 0], sizes = [8, 128], strides = [1, 1]} : vector<96x128xbf16> to vector<8x128xbf16>
    %cst_119 = arith.constant dense<0.000000e+00> : vector<128x128xf32>
    %317 = tpu.matmul %315, %314, %cst_119 {dimension_numbers = #tpu.dot_dimension_numbers<[0], [0], [1], [1], [0, 1, 1, 1], [], []>} : vector<8x128xbf16>, vector<8x128xbf16>, vector<128x128xf32> -> vector<128x128xf32>
    %cst_120 = arith.constant dense<0xFF800000> : vector<128xf32>
    %318 = vector.multi_reduction <maximumf>, %317, %cst_120 [0] : vector<128x128xf32> to vector<128xf32>
    %319 = vector.shape_cast %318 : vector<128xf32> to vector<1x128xf32>
    %320 = vector.broadcast %319 : vector<1x128xf32> to vector<128x128xf32>
    %321 = arith.subf %317, %320 : vector<128x128xf32>
    %322 = math.exp %321 : vector<128x128xf32>
    %cst_121 = arith.constant dense<0.000000e+00> : vector<128xf32>
    %323 = vector.multi_reduction <add>, %322, %cst_121 [0] : vector<128x128xf32> to vector<128xf32>
    %324 = vector.shape_cast %323 : vector<128xf32> to vector<1x128xf32>
    %325 = tpu.reciprocal %324 {approx = true} : vector<1x128xf32> -> vector<1x128xf32>
    %326 = arith.truncf %322 : vector<128x128xf32> to vector<128x128xbf16>
    %cst_122 = arith.constant dense<0.000000e+00> : vector<8x128xf32>
    %327 = tpu.matmul %316, %326, %cst_122 {dimension_numbers = #tpu.dot_dimension_numbers<[1], [0], [0], [1], [0, 0, 1, 1], [], []>} : vector<8x128xbf16>, vector<128x128xbf16>, vector<8x128xf32> -> vector<8x128xf32>
    %328 = vector.broadcast %325 : vector<1x128xf32> to vector<8x128xf32>
    %329 = arith.mulf %327, %328 : vector<8x128xf32>
    %330 = vector.extract_strided_slice %281 {offsets = [24, 0], sizes = [8, 128], strides = [1, 1]} : vector<96x128xbf16> to vector<8x128xbf16>
    %331 = vector.extract_strided_slice %281 {offsets = [56, 0], sizes = [8, 128], strides = [1, 1]} : vector<96x128xbf16> to vector<8x128xbf16>
    %332 = vector.extract_strided_slice %281 {offsets = [88, 0], sizes = [8, 128], strides = [1, 1]} : vector<96x128xbf16> to vector<8x128xbf16>
    %cst_123 = arith.constant dense<0.000000e+00> : vector<128x128xf32>
    %333 = tpu.matmul %331, %330, %cst_123 {dimension_numbers = #tpu.dot_dimension_numbers<[0], [0], [1], [1], [0, 1, 1, 1], [], []>} : vector<8x128xbf16>, vector<8x128xbf16>, vector<128x128xf32> -> vector<128x128xf32>
    %cst_124 = arith.constant dense<0xFF800000> : vector<128xf32>
    %334 = vector.multi_reduction <maximumf>, %333, %cst_124 [0] : vector<128x128xf32> to vector<128xf32>
    %335 = vector.shape_cast %334 : vector<128xf32> to vector<1x128xf32>
    %336 = vector.broadcast %335 : vector<1x128xf32> to vector<128x128xf32>
    %337 = arith.subf %333, %336 : vector<128x128xf32>
    %338 = math.exp %337 : vector<128x128xf32>
    %cst_125 = arith.constant dense<0.000000e+00> : vector<128xf32>
    %339 = vector.multi_reduction <add>, %338, %cst_125 [0] : vector<128x128xf32> to vector<128xf32>
    %340 = vector.shape_cast %339 : vector<128xf32> to vector<1x128xf32>
    %341 = tpu.reciprocal %340 {approx = true} : vector<1x128xf32> -> vector<1x128xf32>
    %342 = arith.truncf %338 : vector<128x128xf32> to vector<128x128xbf16>
    %cst_126 = arith.constant dense<0.000000e+00> : vector<8x128xf32>
    %343 = tpu.matmul %332, %342, %cst_126 {dimension_numbers = #tpu.dot_dimension_numbers<[1], [0], [0], [1], [0, 0, 1, 1], [], []>} : vector<8x128xbf16>, vector<128x128xbf16>, vector<8x128xf32> -> vector<8x128xf32>
    %344 = vector.broadcast %341 : vector<1x128xf32> to vector<8x128xf32>
    %345 = arith.mulf %343, %344 : vector<8x128xf32>
    %346 = tpu.concatenate %297, %313, %329, %345 in 0 : vector<8x128xf32>, vector<8x128xf32>, vector<8x128xf32>, vector<8x128xf32> -> vector<32x128xf32>
    %347 = arith.subf %346, %269 : vector<32x128xf32>
    %348 = arith.truncf %347 : vector<32x128xf32> to vector<32x128xbf16>
    %cst_127 = arith.constant dense<0.000000e+00> : vector<32x128xf32>
    %349 = tpu.matmul %276, %348, %cst_127 {dimension_numbers = #tpu.dot_dimension_numbers<[1], [0], [0], [1], [0, 0, 1, 1], [], []>} : vector<32x32xbf16>, vector<32x128xbf16>, vector<32x128xf32> -> vector<32x128xf32>
    %350 = vector.broadcast %278 : vector<32x1xf32> to vector<32x128xf32>
    %351 = arith.addf %349, %350 : vector<32x128xf32>
    %cst_128 = arith.constant 0.000000e+00 : f32
    %352 = vector.broadcast %cst_128 : f32 to vector<32x128xf32>
    %353 = arith.maximumf %351, %352 : vector<32x128xf32>
    %354 = arith.addf %269, %353 : vector<32x128xf32>
    %c0_129 = arith.constant 0 : index
    %c96 = arith.constant 96 : index
    %c0_130 = arith.constant 0 : index
    %355 = vector.load %arg9[%c0_129, %c96, %c0_130] : memref<1x128x128xf32, #tpu.memory_space<vmem>>, vector<1x32x128xf32>
    %356 = vector.shape_cast %355 : vector<1x32x128xf32> to vector<32x128xf32>
    %357 = vector.shape_cast %354 : vector<32x128xf32> to vector<1x32x128xf32>
    tpu.vector_store %arg9[%c0_129, %c96, %c0_130], %357 {strides = array<i32>} : memref<1x128x128xf32, #tpu.memory_space<vmem>>, vector<1x32x128xf32>,
    return
  }
  func.func @transform_0(%arg0: i32) -> (i32, i32, i32) {
    %c0_i32 = arith.constant 0 : i32
    %c0_i32_0 = arith.constant 0 : i32
    %c0_i32_1 = arith.constant 0 : i32
    return %arg0, %c0_i32, %c0_i32_0 : i32, i32, i32
  }
  func.func @transform_1(%arg0: i32) -> (i32, i32) {
    %c0_i32 = arith.constant 0 : i32
    %c0_i32_0 = arith.constant 0 : i32
    %c0_i32_1 = arith.constant 0 : i32
    return %c0_i32, %c0_i32_0 : i32, i32
  }
  func.func @transform_2(%arg0: i32) -> (i32, i32) {
    %c0_i32 = arith.constant 0 : i32
    %c0_i32_0 = arith.constant 0 : i32
    %c0_i32_1 = arith.constant 0 : i32
    return %c0_i32, %c0_i32_0 : i32, i32
  }
  func.func @transform_3(%arg0: i32) -> (i32, i32) {
    %c0_i32 = arith.constant 0 : i32
    %c0_i32_0 = arith.constant 0 : i32
    %c0_i32_1 = arith.constant 0 : i32
    return %c0_i32, %c0_i32_0 : i32, i32
  }
  func.func @transform_4(%arg0: i32) -> (i32, i32) {
    %c0_i32 = arith.constant 0 : i32
    %c0_i32_0 = arith.constant 0 : i32
    %c0_i32_1 = arith.constant 0 : i32
    return %c0_i32, %c0_i32_0 : i32, i32
  }
  func.func @transform_5(%arg0: i32) -> (i32, i32, i32) {
    %c0_i32 = arith.constant 0 : i32
    %c0_i32_0 = arith.constant 0 : i32
    %c0_i32_1 = arith.constant 0 : i32
    %c0_i32_2 = arith.constant 0 : i32
    return %c0_i32, %c0_i32_0, %c0_i32_1 : i32, i32, i32
  }
  func.func @transform_6(%arg0: i32) -> (i32, i32, i32) {
    %c0_i32 = arith.constant 0 : i32
    %c0_i32_0 = arith.constant 0 : i32
    %c0_i32_1 = arith.constant 0 : i32
    %c0_i32_2 = arith.constant 0 : i32
    return %c0_i32, %c0_i32_0, %c0_i32_1 : i32, i32, i32
  }
  func.func @transform_7(%arg0: i32) -> (i32, i32, i32) {
    %c0_i32 = arith.constant 0 : i32
    %c0_i32_0 = arith.constant 0 : i32
    %c0_i32_1 = arith.constant 0 : i32
    %c0_i32_2 = arith.constant 0 : i32
    return %c0_i32, %c0_i32_0, %c0_i32_1 : i32, i32, i32
  }
  func.func @transform_8(%arg0: i32) -> (i32, i32, i32) {
    %c0_i32 = arith.constant 0 : i32
    %c0_i32_0 = arith.constant 0 : i32
    %c0_i32_1 = arith.constant 0 : i32
    return %arg0, %c0_i32, %c0_i32_0 : i32, i32, i32
  }
}

</mosaic_0001>

<bundles_post_ra>
// kernel: stacked_attention.1
= control target key start
LH: loop header
LB: loop body
LE: loop exit
PB: predicated region body
PF: predicated region fallthrough
CT: control target
= control target key end

     0   :  { %13 = vsyncpa [#allocation3], 0  ;;  %s7322_s0 = inlined_call_operand.vmem [shape: f32[2,32,128], index: 0, kind: input, shape index: {}]   ;;  %s7323_s1 = inlined_call_operand.vmem [shape: bf16[32,32], index: 1, kind: input, shape index: {}]   ;;  %s7324_s2 = inlined_call_operand.vmem [shape: f32[32,1], index: 2, kind: input, shape index: {}]   ;;  %s7325_s3 = inlined_call_operand.vmem [shape: bf16[32,32], index: 3, kind: input, shape index: {}]   ;;  %s7326_s4 = inlined_call_operand.vmem [shape: f32[32,1], index: 4, kind: input, shape index: {}]   ;;  %s7327_s5 = inlined_call_operand.vmem [shape: bf16[4,96,32], index: 5, kind: input, shape index: {}]   ;;  %s7328_s6 = inlined_call_operand.vmem [shape: bf16[4,32,32], index: 6, kind: input, shape index: {}]   ;;  %s7329_s7 = inlined_call_operand.vmem [shape: f32[4,32,1], index: 7, kind: input, shape index: {}]   ;;  %s7330_s8 = inlined_call_operand.hbm [shape: f32[2,128,128], index: 8, kind: output, shape index: {}]  }
   0x1   :  { %15 = vsyncpa [#allocation3 + $0x1], 0  ;;  %s5758_s27 = smov 0   ;;  %s5760_s28 = smov 0  }
   0x2   :  { %s5762_s29 = smov 0   ;;  %s5764_s30 = smov 0  }
   0x3 LB: > { %s5779_s9 = sadd.s32 4294967295, %s5708_s30   ;;  %s4593_s10 = sadd.s32 4294967294, %s5708_s30   ;;  %s5708_s30 = sphi %s5764_s30, %s7336_s30   ;;  %s5704_s29 = sphi %s5762_s29, %s7335_s29   ;;  %s5700_s28 = sphi %s5760_s28, %s7334_s28   ;;  %s5696_s27 = sphi %s5758_s27, %s7333_s27  }
   0x4   : > { %s5783_s11 = sadd.s32 1, %s5708_s30   ;;  %s201_s12 = sadd.s32 1, %s5704_s29 }
   0x5   : > { %s198_s13 = ssub.s32 %s5708_s30, %s5783_s11  ;;  %p211_p0 = scmp.ne.s32.totalorder %s5704_s29, %s5700_s28 }
   0x6   : > { %p199_p1 = scmp.eq.s32.totalorder %s198_s13, 0  ;;  %p212_p2 = scmp.eq.s32.totalorder %s5779_s9, 1 }
   0x7   : > { %p217_p3 = scmp.ne.s32.totalorder %s5700_s28, %s5696_s27  ;;  %p218_p4 = scmp.eq.s32.totalorder %s4593_s10, 1 }
   0x8   : > { %s5794_s14 = scalar_select %p199_p1, %s5704_s29, %s201_s12  }
   0x9   : > { %p5796_p5 = por %p212_p2, %p211_p0  ;;  %p5800_p6 = por %p218_p4, %p217_p3 }
   0xa   : > { %p4596_p7 = scmp.ge.s32.totalorder %s5708_s30, 1  ;;  %p265_p8 = scmp.lt.s32.totalorder %s5708_s30, 3 }
   0xc   : > { %p266_p9 = pnand %p4596_p7, %p265_p8 }
   0xd   : > { %p299_p10 = scmp.lt.s32.totalorder (!%p266_p9), %s5779_s9, 1  ;;  %s296_s24 = sand.u32 (!%p266_p9), 1, %s5700_s28  }
   0xe   : > { %269 = sbr.rel (%p266_p9) target bundleno = 7552 (0x1d80), region = 52  ;;  %s5010_s10 = sshll.u32 (!%p266_p9), %s5779_s9, 7 }
   0xf   : > { %s4527_s17 = scalar_lea.hbm (!%p266_p9), %s7330_s8, %s5010_s10  ;;  %s4516_s20 = scalar_lea.sflag (!%p266_p9), [#allocation3], %s296_s24 }
  0x10   : > { %s4530_s19 = sshll.u32 (!%p266_p9), %s4527_s17, 4  ;;  %s4531_s19 = int_to_ptr.hbm [resolvable:$true] %s4530_s19 }
  0x13   : > { %v317_v0 = vld [vmem:[%s7324_s2 + $0x10] sm:$0xff]  ;;  %v315_v1 = vld [vmem:[%s7324_s2] sm:$0xff]  ;;  %v5710_v2 = vmov 0   ;;  %s300_s21 = scalar_select %p299_p10, %s5779_s9, 1  ;;  %v318_v8 = vld [vmem:[%s7324_s2 + $0x18] sm:$0xff]  ;;  %vm349_vm0 = vcmask 261120  }
  0x14   : > { %5054 = vset.pattern.permute.xlu1 %v5710_v2  ;;  %5053 = vset.pattern.permute.xlu0 %v5710_v2  ;;  %v316_v9 = vld [vmem:[%s7324_s2 + $0x8] sm:$0xff]  ;;  %v4974_v11 = vld [vmem:[%s7323_s1] sm:$0xff]  ;;  %v387_v21 = vld [vmem:[%s7326_s4 + $0x10] sm:$0xff]  ;;  %vm610_vm1 = vcmask 1043456   ;;  %vm585_vm2 = vcmask 64512   ;;  %s5660_s9 = sshra.s32 %s4531_s19, 4  ;;  %s5661_s9 = int_to_ptr.hbm [resolvable:$true] %s5660_s9 }
  0x15   : > { %331 = vperm.xlu0 %5053, %v317_v0   ;;  %321 = vperm.xlu1 %5054, %v315_v1   ;;  %s4973_s22 = sshll.u32 %s300_s21, 5  ;;  %v385_v12 = vld [vmem:[%s7326_s4] sm:$0xff]  ;;  %v386_v13 = vld [vmem:[%s7326_s4 + $0x8] sm:$0xff]  ;;  %v388_v30 = vld [vmem:[%s7326_s4 + $0x18] sm:$0xff]  ;;  %s5662_s21 = scalar_lea.hbm %s5661_s9, 128 }
  0x16   : > { %5055 = vset.pattern.permute.xlu2 %v5710_v2  ;;  %s303_s25 = scalar_lea.vmem %s7322_s0, %s4973_s22  ;;  %v4975_v14 = vld [vmem:[%s7323_s1 + $0x8] sm:$0xff]  ;;  %v4976_v35 = vld [vmem:[%s7325_s3] sm:$0xff]  ;;  %v4980_v57 = vld [vmem:[%s7327_s5 + $0x10] sm:$0xff]  ;;  %p5663_p11 = scmp.ne.s32.totalorder %s5661_s9, %s5662_s21 }
  0x17   : > { %v307_v3 = vld [vmem:[%s303_s25 + $0x10] sm:$0xff]  ;;  %v308_v4 = vld [vmem:[%s303_s25 + $0x18] sm:$0xff]  ;;  %v305_v5 = vld [vmem:[%s303_s25] sm:$0xff]  ;;  %401 = vperm.xlu2 %5055, %v387_v21   ;;  %p5667_p0 = scmp.lt.s32.totalorder %s5661_s9, %s7330_s8 }
  0x18   : > { %v314_v6 = vpack.c.bf16 %v308_v4, %v307_v3  ;;  %v306_v7 = vld [vmem:[%s303_s25 + $0x8] sm:$0xff]  ;;  %v4978_v55 = vld [vmem:[%s7327_s5] sm:$0xff]  ;;  %v4981_v58 = vld [vmem:[%s7327_s5 + $0x18] sm:$0xff]  ;;  %s4597_s25 = sshll.u32 %s296_s24, 7  ;;  %p5664_p12 = pnand %p5663_p11, %p5796_p5 }
  0x19   : > { %v313_v10 = vpack.c.bf16 %v306_v7, %v305_v5  ;;  %v4977_v36 = vld [vmem:[%s7325_s3 + $0x8] sm:$0xff]  ;;  %v4982_v21 = vld [vmem:[%s7327_s5 + $0x20] sm:$0xff]  ;;  %s6161_s26 = scalar_lea.vmem [#allocation2], %s4597_s25  ;;  %s5666_s25 = scalar_lea.hbm %s7330_s8, 256 }
  0x1a   : > { %362 = vmatpush.bf16.msra.mxu0 %v314_v6  ;;  %v4979_v56 = vld [vmem:[%s7327_s5 + $0x8] sm:$0xff]  ;;  %s4528_s18 = sshll.u32 %s6161_s26, 4  ;;  %p5665_p13 = pneg %p5664_p12  ;;  %s4529_s18 = int_to_ptr.vmem [resolvable:$true] %s4528_s18 }
  0x1b   : > { %p5668_p1 = scmp.lt.s32.totalorder %s5666_s25, %s5662_s21 }
  0x1d   : > { %336 = vperm.xlu0 %5053, %v318_v8   ;;  %326 = vperm.xlu1 %5054, %v316_v9   ;;  %p5669_p2 = por %p5668_p1, %p5667_p0 }
  0x1e   : > { %363 = vmatpush.bf16.msra.mxu0 %v313_v10 }
  0x1f   : > { %406 = vperm.xlu2 %5055, %v388_v30   ;;  %v4711_v30 = vld [vmem:[%s7329_s7 + $0x38] sm:$0xff]  ;;  %p5670_p3 = pnand %p5669_p2, %p5665_p13 }
  0x21   : > { %4608 = vmatmul.msk.bf16.vlgmr.msra.gmra.mxu0 %vm349_vm0, %v4974_v11 }
  0x25   : > { %391 = vperm.xlu0 %5053, %v385_v12   ;;  %396 = vperm.xlu1 %5054, %v386_v13   ;;  %v467_v13 = vld [vmem:[%s7329_s7 + $0x18] sm:$0xff] }
  0x31   : > { %4609 = vmatmul.msk.bf16.gmra.mxu0 %vm349_vm0, %v4975_v14  ;;  %v465_v14 = vld [vmem:[%s7329_s7 + $0x8] sm:$0xff] }
  0x71   : > { %v402_v39 = vpop.permute.xlu2 %401 }
  0x79   : > { %v407_v43 = vpop.permute.xlu2 %406 }
  0x87   : > { %v322_v17 = vpop.permute.xlu1 %321  ;;  %v332_v18 = vpop.permute.xlu0 %331 }
  0x8f   : > { %v327_v20 = vpop.permute.xlu1 %326  ;;  %v337_v23 = vpop.permute.xlu0 %336 }
  0x97   : > { %v397_v41 = vpop.permute.xlu1 %396  ;;  %v392_v47 = vpop.permute.xlu0 %391 }
  0x9e   : > { %v365_v15 = vpop.f32.mrf.mxu0 }
  0x9f   : > { %v366_v27 = vadd.f32 %v365_v15, %v322_v17 }
  0xa1   : > { %v375_v33 = vmax.f32 %v366_v27, 0.0 }
  0xa6   : > { %v367_v16 = vpop.f32.mrf.mxu0 }
  0xa7   : > { %v368_v25 = vadd.f32 %v367_v16, %v327_v20  ;;  %v466_v16 = vld [vmem:[%s7329_s7 + $0x10] sm:$0xff] }
  0xa9   : > { %v376_v31 = vmax.f32 %v368_v25, 0.0 }
  0xab   : > { %v383_v34 = vpack.c.bf16 %v376_v31, %v375_v33 }
  0xae   : > { %v370_v19 = vpop.f32.mrf.mxu0 }
  0xaf   : > { %v371_v22 = vadd.f32 %v370_v19, %v332_v18 }
  0xb1   : > { %v377_v28 = vmax.f32 %v371_v22, 0.0 }
  0xb6   : > { %v372_v24 = vpop.f32.mrf.mxu0 }
  0xb7   : > { %v373_v26 = vadd.f32 %v372_v24, %v337_v23 }
  0xb9   : > { %v378_v29 = vmax.f32 %v373_v26, 0.0 }
  0xbb   : > { %v384_v32 = vpack.c.bf16 %v378_v29, %v377_v28  ;;  %v464_v28 = vld [vmem:[%s7329_s7] sm:$0xff] }
  0xbd   : > { %431 = vmatpush.bf16.msra.mxu1 %v384_v32  ;;  %v4708_v32 = vld [vmem:[%s7329_s7 + $0x20] sm:$0xff] }
  0xc1   : > { %432 = vmatpush.bf16.msra.mxu1 %v383_v34  ;;  %v4709_v34 = vld [vmem:[%s7329_s7 + $0x28] sm:$0xff] }
  0xc4   : > { %4618 = vmatmul.msk.bf16.vlgmr.msra.gmra.mxu1 %vm349_vm0, %v4976_v35 }
  0xd4   : > { %4619 = vmatmul.msk.bf16.gmra.mxu1 %vm349_vm0, %v4977_v36 }
 0x141   : > { %v434_v37 = vpop.f32.mrf.mxu1 }
 0x142   : > { %v435_v48 = vadd.f32 %v434_v37, %v392_v47 }
 0x144   : > { %v5859_v53 = vmax.f32 %v435_v48, 0.0 }
 0x149   : > { %v436_v38 = vpop.f32.mrf.mxu1 }
 0x14a   : > { %v437_v45 = vadd.f32 %v436_v38, %v397_v41 }
 0x14c   : > { %v5855_v51 = vmax.f32 %v437_v45, 0.0 }
 0x14e   : > { %v468_v54 = vpack.c.bf16 %v5855_v51, %v5859_v53 }
 0x151   : > { %v439_v40 = vpop.f32.mrf.mxu1 }
 0x152   : > { %v440_v42 = vadd.f32 %v439_v40, %v402_v39 }
 0x154   : > { %v5851_v49 = vmax.f32 %v440_v42, 0.0 }
 0x159   : > { %v441_v44 = vpop.f32.mrf.mxu1 }
 0x15a   : > { %v442_v46 = vadd.f32 %v441_v44, %v407_v43 }
 0x15c   : > { %v5853_v50 = vmax.f32 %v442_v46, 0.0 }
 0x15e   : > { %v469_v52 = vpack.c.bf16 %v5853_v50, %v5851_v49 }
 0x160   : > { %524 = vmatpush.bf16.msra.mxu2 %v469_v52 }
 0x164   : > { %525 = vmatpush.bf16.msra.mxu2 %v468_v54 }
 0x167   : > { %4644 = vmatmul.msk.bf16.vlgmr.msra.gmra.mxu2 %vm349_vm0, %v4978_v55 }
 0x177   : > { %4645 = vmatmul.msk.bf16.gmra.mxu2 %vm349_vm0, %v4979_v56 }
 0x187   : > { %4646 = vmatmul.msk.bf16.gmra.mxu2 %vm349_vm0, %v4980_v57 }
 0x197   : > { %4647 = vmatmul.msk.bf16.gmra.mxu2 %vm349_vm0, %v4981_v58 }
 0x1a7   : > { %4648 = vmatmul.msk.bf16.gmra.mxu2 %vm349_vm0, %v4982_v21 }
 0x1ea   : > { %v527_v59 = vpop.f32.mrf.mxu2 }
 0x1eb   : > { %v557_v60 = vpack.c.bf16 %v527_v59, %v527_v59 }
 0x1ed   : > { %v612_v61 = vsel %vm610_vm1, %v557_v60, 0 }
 0x1ee   : > { %621 = vmatpush.bf16.msra.mxu3 %v612_v61 }
 0x1f2   : > { %v5880_v62 = vpop.f32.mrf.mxu2 }
 0x1fa   : > { %v5882_v63 = vpop.f32.mrf.mxu2 }
 0x202   : > { %v5884_v0 = vpop.f32.mrf.mxu2 }
 0x20a   : > { %v537_v1 = vpop.f32.mrf.mxu2 }
 0x20b   : > { %v561_v2 = vpack.c.bf16 %v537_v1, %v537_v1 }
 0x20d   : > { %569 = vxpose.xlu2.c.b16.start.end [1/1] (short) %v561_v2, 128 }
 0x212   : > { %v539_v3 = vpop.f32.mrf.mxu2 }
 0x213   : > { %v562_v4 = vpack.c.bf16 %v539_v3, %v539_v3 }
 0x215   : > { %776 = vxpose.xlu0.c.b16.start.end [1/1] (short) %v562_v4, 128 }
 0x21a   : > { %v542_v5 = vpop.f32.mrf.mxu2 }
 0x21b   : > { %v563_v6 = vpack.c.bf16 %v542_v5, %v542_v5 }
 0x21d   : > { %981 = vxpose.xlu1.c.b16.start.end [1/1] (short) %v563_v6, 128 }
 0x222   : > { %v544_v7 = vpop.f32.mrf.mxu2 }
 0x223   : > { %v564_v8 = vpack.c.bf16 %v544_v7, %v544_v7 }
 0x28d   : > { %1186 = vxpose.xlu2.c.b16.start.end [1/1] (short) %v564_v8, 128 }
 0x2ae   : > { %v577_v9 = vpop.trf.xlu2 }
 0x2af   : > { %4650 = vmatmul.msk.bf16.vlgmr.msra.gmra.mxu3 %vm585_vm2, %v577_v9 }
 0x2be   : > { %v578_v10 = vpop.trf.xlu2 }
 0x2bf   : > { %4651 = vmatmul.msk.bf16.gmra.mxu3 %vm585_vm2, %v578_v10 }
 0x2ce   : > { %v579_v11 = vpop.trf.xlu2 }
 0x2cf   : > { %4652 = vmatmul.msk.bf16.gmra.mxu3 %vm585_vm2, %v579_v11 }
 0x2de   : > { %v580_v12 = vpop.trf.xlu2 }
 0x2df   : > { %4653 = vmatmul.msk.bf16.gmra.mxu3 %vm585_vm2, %v580_v12 }
 0x2e7   : > { %1414 = vperm.xlu1 %5054, %v467_v13  }
 0x2ee   : > { %v581_v15 = vpop.trf.xlu2 }
 0x2ef   : > { %4654 = vmatmul.msk.bf16.gmra.mxu3 %vm585_vm2, %v581_v15  ;;  %1404 = vperm.xlu1 %5054, %v465_v14  }
 0x2f3   : > { %1409 = vperm.xlu0 %5053, %v466_v16  }
 0x2fe   : > { %v582_v17 = vpop.trf.xlu2 }
 0x2ff   : > { %4655 = vmatmul.msk.bf16.gmra.mxu3 %vm585_vm2, %v582_v17 }
 0x30e   : > { %v583_v18 = vpop.trf.xlu2 }
 0x30f   : > { %4656 = vmatmul.msk.bf16.gmra.mxu3 %vm585_vm2, %v583_v18 }
 0x31e   : > { %v584_v19 = vpop.trf.xlu2 }
 0x31f   : > { %4657 = vmatmul.msk.bf16.gmra.mxu3 %vm585_vm2, %v584_v19 }
 0x332   : > { %v5903_v20 = vpop.f32.mrf.mxu3 }
 0x33a   : > { %v5908_v22 = vpop.f32.mrf.mxu3 }
 0x342   : > { %v5911_v23 = vpop.f32.mrf.mxu3 }
 0x34a   : > { %v5913_v24 = vpop.f32.mrf.mxu3 }
 0x352   : > { %v5915_v25 = vpop.f32.mrf.mxu3 }
 0x353   : > { %v663_v41 = vmax.f32 %v5903_v20, %v5915_v25 }
 0x35a   : > { %v5917_v26 = vpop.f32.mrf.mxu3 }
 0x35b   : > { %v664_v40 = vmax.f32 %v5908_v22, %v5917_v26 }
 0x362   : > { %v5919_v27 = vpop.f32.mrf.mxu3 }
 0x363   : > { %v665_v42 = vmax.f32 %v5911_v23, %v5919_v27 }
 0x366   : > { %1399 = vperm.xlu2 %5055, %v464_v28  }
 0x36a   : > { %v5924_v29 = vpop.f32.mrf.mxu3 }
 0x36b   : > { %v666_v43 = vmax.f32 %v5913_v24, %v5924_v29 }
 0x36e   : > { %2431 = vperm.xlu2 %5055, %v4711_v30  }
 0x372   : > { %v643_v31 = vpop.f32.mrf.mxu3 }
 0x373   : > { %v667_v45 = vmax.f32 %v663_v41, %v643_v31 }
 0x376   : > { %2416 = vperm.xlu2 %5055, %v4708_v32  }
 0x37a   : > { %v645_v33 = vpop.f32.mrf.mxu3 }
 0x37b   : > { %v668_v44 = vmax.f32 %v664_v40, %v645_v33 }
 0x37e   : > { %2421 = vperm.xlu2 %5055, %v4709_v34  }
 0x382   : > { %v648_v35 = vpop.f32.mrf.mxu3 }
 0x383   : > { %v669_v46 = vmax.f32 %v665_v42, %v648_v35 }
 0x38a   : > { %v650_v36 = vpop.f32.mrf.mxu3 }
 0x38b   : > { %v670_v47 = vmax.f32 %v666_v43, %v650_v36 }
 0x392   : > { %v653_v37 = vpop.f32.mrf.mxu3 }
 0x393   : > { %v671_v54 = vmax.f32 %v667_v45, %v653_v37 }
 0x39a   : > { %v655_v38 = vpop.f32.mrf.mxu3 }
 0x39b   : > { %v672_v48 = vmax.f32 %v668_v44, %v655_v38 }
 0x39d   : > { %v675_v57 = vmax.f32 %v671_v54, %v672_v48 }
 0x3a2   : > { %v658_v39 = vpop.f32.mrf.mxu3 }
 0x3a3   : > { %v673_v55 = vmax.f32 %v669_v46, %v658_v39 }
 0x3aa   : > { %v660_v52 = vpop.f32.mrf.mxu3 }
 0x3ab   : > { %v674_v56 = vmax.f32 %v670_v47, %v660_v52 }
 0x3ad   : > { %v676_v58 = vmax.f32 %v673_v55, %v674_v56 }
 0x3af   : > { %v677_v59 = vmax.f32 %v675_v57, %v676_v58 }
 0x3b1   : > { %v678_v60 = vrot.slane %v677_v59, 4 }
 0x3b3   : > { %v679_v61 = vmax.f32 %v677_v59, %v678_v60 }
 0x3b5   : > { %v680_v1 = vrot.slane %v679_v61, 2 }
 0x3b7   : > { %v681_v2 = vmax.f32 %v679_v61, %v680_v1 }
 0x3b9   : > { %v682_v3 = vrot.slane %v681_v2, 1 }
 0x3bb   : > { %v683_v4 = vmax.f32 %v681_v2, %v682_v3 }
 0x3bd   : > { %v699_v5 = vsub.f32 %v660_v52, %v683_v4  ;;  %v698_v6 = vsub.f32 %v658_v39, %v683_v4  ;;  %v696_v7 = vsub.f32 %v653_v37, %v683_v4  ;;  %v697_v8 = vsub.f32 %v655_v38, %v683_v4 }
 0x3be   : > { %v694_v12 = vsub.f32 %v648_v35, %v683_v4  ;;  %v695_v14 = vsub.f32 %v650_v36, %v683_v4  ;;  %v692_v16 = vsub.f32 %v643_v31, %v683_v4  ;;  %v693_v18 = vsub.f32 %v645_v33, %v683_v4 }
 0x3bf   : > { %v730_v9 = vmul.f32 1.442695, %v699_v5  ;;  %v728_v10 = vmul.f32 1.442695, %v698_v6  ;;  %v724_v11 = vmul.f32 1.442695, %v696_v7  ;;  %v690_v19 = vsub.f32 %v5919_v27, %v683_v4 }
 0x3c0   : > { %v726_v13 = vmul.f32 1.442695, %v697_v8  ;;  %v720_v15 = vmul.f32 1.442695, %v694_v12  ;;  %v722_v17 = vmul.f32 1.442695, %v695_v14  ;;  %v691_v21 = vsub.f32 %v5924_v29, %v683_v4 }
 0x3c1   : > { %5090 = vpow2.f32 %v730_v9  ;;  %v716_v30 = vmul.f32 1.442695, %v692_v16  ;;  %v684_v32 = vsub.f32 %v5903_v20, %v683_v4  ;;  %v718_v35 = vmul.f32 1.442695, %v693_v18 }
 0x3c2   : > { %5092 = vpow2.f32 %v728_v10  ;;  %v685_v36 = vsub.f32 %v5908_v22, %v683_v4  ;;  %v712_v27 = vmul.f32 1.442695, %v690_v19  ;;  %v688_v29 = vsub.f32 %v5915_v25, %v683_v4 }
 0x3c3   : > { %5094 = vpow2.f32 %v724_v11  ;;  %v714_v38 = vmul.f32 1.442695, %v691_v21  ;;  %v686_v39 = vsub.f32 %v5911_v23, %v683_v4  ;;  %v689_v20 = vsub.f32 %v5917_v26, %v683_v4  ;;  %v547_v11 = vpop.f32.mrf.mxu2 }
 0x3c4   : > { %5096 = vpow2.f32 %v726_v13  ;;  %v700_v40 = vmul.f32 1.442695, %v684_v32  ;;  %v687_v22 = vsub.f32 %v5913_v24, %v683_v4  ;;  %v702_v41 = vmul.f32 1.442695, %v685_v36  ;;  %v784_v32 = vpop.trf.xlu0 }
 0x3c5   : > { %5098 = vpow2.f32 %v720_v15  ;;  %v708_v25 = vmul.f32 1.442695, %v688_v29  ;;  %v704_v45 = vmul.f32 1.442695, %v686_v39  ;;  %v710_v23 = vmul.f32 1.442695, %v689_v20 }
 0x3c6   : > { %5100 = vpow2.f32 %v722_v17  ;;  %v706_v46 = vmul.f32 1.442695, %v687_v22  ;;  %v558_v9 = vpack.c.bf16 %v5880_v62, %v5880_v62  ;;  %v565_v14 = vpack.c.bf16 %v547_v11, %v547_v11 }
 0x3c7   : > { %v5945_v28 = vpop.eup %5090  ;;  %5102 = vpow2.f32 %v716_v30 }
 0x3c8   : > { %v5948_v34 = vpop.eup %5092  ;;  %5104 = vpow2.f32 %v718_v35  ;;  %v817_v15 = vsel %vm610_vm1, %v558_v9, 0 }
 0x3c9   : > { %v5951_v31 = vpop.eup %5094  ;;  %v761_v33 = vpack.c.bf16 %v5945_v28, %v5948_v34  ;;  %5106 = vpow2.f32 %v712_v27 }
 0x3ca   : > { %v5956_v37 = vpop.eup %5096  ;;  %5108 = vpow2.f32 %v714_v38 }
 0x3cb   : > { %762 = vmatpush.bf16.msrb.mxu1 %v761_v33  ;;  %v5099_v42 = vpop.eup %5098  ;;  %v760_v43 = vpack.c.bf16 %v5956_v37, %v5951_v31  ;;  %5110 = vpow2.f32 %v700_v40 }
 0x3cc   : > { %v5101_v44 = vpop.eup %5100  ;;  %5112 = vpow2.f32 %v702_v41  ;;  %v785_v35 = vpop.trf.xlu0 }
 0x3cd   : > { %v5103_v26 = vpop.eup %5102  ;;  %v759_v47 = vpack.c.bf16 %v5101_v44, %v5099_v42  ;;  %5114 = vpow2.f32 %v708_v25 }
 0x3ce   : > { %v5105_v48 = vpop.eup %5104  ;;  %5116 = vpow2.f32 %v704_v45 }
 0x3cf   : > { %763 = vmatpush.bf16.msrb.mxu1 %v760_v43  ;;  %v5107_v24 = vpop.eup %5106  ;;  %5118 = vpow2.f32 %v710_v23  ;;  %v758_v55 = vpack.c.bf16 %v5105_v48, %v5103_v26 }
 0x3d0   : > { %v5109_v52 = vpop.eup %5108  ;;  %5120 = vpow2.f32 %v706_v46 }
 0x3d1   : > { %v5111_v54 = vpop.eup %5110  ;;  %v757_v61 = vpack.c.bf16 %v5109_v52, %v5107_v24 }
 0x3d2   : > { %v5113_v56 = vpop.eup %5112 }
 0x3d3   : > { %764 = vmatpush.bf16.msrb.mxu1 %v759_v47  ;;  %v5115_v57 = vpop.eup %5114  ;;  %v732_v58 = vadd.f32 %v5113_v56, %v5111_v54  ;;  %v754_v12 = vpack.c.bf16 %v5113_v56, %v5111_v54 }
 0x3d4   : > { %v5117_v59 = vpop.eup %5116  ;;  %v786_v36 = vpop.trf.xlu0 }
 0x3d5   : > { %v5119_v60 = vpop.eup %5118  ;;  %v733_v1 = vadd.f32 %v5117_v59, %v732_v58 }
 0x3d6   : > { %v5121_v2 = vpop.eup %5120  ;;  %v756_v4 = vpack.c.bf16 %v5119_v60, %v5115_v57 }
 0x3d7   : > { %765 = vmatpush.bf16.msrb.mxu1 %v758_v55  ;;  %v734_v3 = vadd.f32 %v5121_v2, %v733_v1  ;;  %v755_v7 = vpack.c.bf16 %v5121_v2, %v5117_v59 }
 0x3d9   : > { %v735_v5 = vadd.f32 %v5115_v57, %v734_v3 }
 0x3db   : > { %766 = vmatpush.bf16.msrb.mxu1 %v757_v61  ;;  %v736_v6 = vadd.f32 %v5119_v60, %v735_v5 }
 0x3dc   : > { %v787_v33 = vpop.trf.xlu0 }
 0x3dd   : > { %v737_v8 = vadd.f32 %v5107_v24, %v736_v6 }
 0x3df   : > { %767 = vmatpush.bf16.msrb.mxu1 %v756_v4  ;;  %v738_v10 = vadd.f32 %v5109_v52, %v737_v8 }
 0x3e1   : > { %v739_v13 = vadd.f32 %v5103_v26, %v738_v10 }
 0x3e3   : > { %768 = vmatpush.bf16.msrb.mxu1 %v755_v7  ;;  %v740_v16 = vadd.f32 %v5105_v48, %v739_v13 }
 0x3e4   : > { %v788_v27 = vpop.trf.xlu0 }
 0x3e5   : > { %v741_v17 = vadd.f32 %v5099_v42, %v740_v16 }
 0x3e7   : > { %769 = vmatpush.bf16.msrb.mxu1 %v754_v12  ;;  %v742_v18 = vadd.f32 %v5101_v44, %v741_v17 }
 0x3e9   : > { %v743_v19 = vadd.f32 %v5951_v31, %v742_v18 }
 0x3ea   : > { %770 = vmatmul.bf16.vlgmr.msrb.gmra.mxu1 %v565_v14 }
 0x3eb   : > { %826 = vmatpush.bf16.msra.mxu1 %v817_v15  ;;  %v744_v21 = vadd.f32 %v5956_v37, %v743_v19 }
 0x3ec   : > { %v789_v31 = vpop.trf.xlu0 }
 0x3ed   : > { %v745_v62 = vadd.f32 %v5948_v34, %v744_v21 }
 0x3ef   : > { %v746_v30 = vadd.f32 %v5945_v28, %v745_v62 }
 0x3f1   : > { %v747_v29 = vrot.slane %v746_v30, 4 }
 0x3f3   : > { %v748_v28 = vadd.f32 %v747_v29, %v746_v30 }
 0x3f4   : > { %v790_v38 = vpop.trf.xlu0 }
 0x3f5   : > { %v749_v34 = vrot.slane %v748_v28, 2 }
 0x3f7   : > { %v750_v37 = vadd.f32 %v749_v34, %v748_v28 }
 0x3f9   : > { %v751_v39 = vrot.slane %v750_v37, 1 }
 0x3fa   : > { %4658 = vmatmul.msk.bf16.vlgmr.msra.gmra.mxu1 %vm585_vm2, %v784_v32 }
 0x3fb   : > { %v752_v20 = vadd.f32 %v751_v39, %v750_v37 }
 0x3fc   : > { %v791_v42 = vpop.trf.xlu0 }
 0x3fd   : > { %5122 = vrcp.f32 %v752_v20 }
 0x403   : > { %v5123_v40 = vpop.eup %5122 }
 0x40a   : > { %4659 = vmatmul.msk.bf16.gmra.mxu1 %vm585_vm2, %v785_v35 }
 0x41a   : > { %4660 = vmatmul.msk.bf16.gmra.mxu1 %vm585_vm2, %v786_v36 }
 0x42a   : > { %4661 = vmatmul.msk.bf16.gmra.mxu1 %vm585_vm2, %v787_v33 }
 0x43a   : > { %4662 = vmatmul.msk.bf16.gmra.mxu1 %vm585_vm2, %v788_v27 }
 0x44a   : > { %4663 = vmatmul.msk.bf16.gmra.mxu1 %vm585_vm2, %v789_v31 }
 0x45a   : > { %4664 = vmatmul.msk.bf16.gmra.mxu1 %vm585_vm2, %v790_v38 }
 0x467   : > { %v771_v22 = vpop.f32.mrf.mxu1 }
 0x468   : > { %v5977_v41 = vmul.f32 %v5123_v40, %v771_v22 }
 0x46a   : > { %4665 = vmatmul.msk.bf16.gmra.mxu1 %vm585_vm2, %v791_v42 }
 0x46f   : > { %v773_v43 = vpop.f32.mrf.mxu1 }
 0x477   : > { %v5980_v25 = vpop.f32.mrf.mxu1 }
 0x47f   : > { %v5982_v44 = vpop.f32.mrf.mxu1 }
 0x487   : > { %v5984_v45 = vpop.f32.mrf.mxu1 }
 0x48f   : > { %v5986_v23 = vpop.f32.mrf.mxu1 }
 0x497   : > { %v5988_v46 = vpop.f32.mrf.mxu1 }
 0x498   : > { %v868_v60 = vmax.f32 %v5980_v25, %v5988_v46 }
 0x49f   : > { %v5990_v26 = vpop.f32.mrf.mxu1 }
 0x4a0   : > { %v869_v59 = vmax.f32 %v5982_v44, %v5990_v26 }
 0x4a7   : > { %v843_v47 = vpop.f32.mrf.mxu1 }
 0x4a8   : > { %v870_v61 = vmax.f32 %v5984_v45, %v843_v47 }
 0x4af   : > { %v5992_v48 = vpop.f32.mrf.mxu1 }
 0x4b0   : > { %v871_v1 = vmax.f32 %v5986_v23, %v5992_v48 }
 0x4b7   : > { %v848_v24 = vpop.f32.mrf.mxu1 }
 0x4b8   : > { %v872_v3 = vmax.f32 %v868_v60, %v848_v24 }
 0x4bf   : > { %v850_v52 = vpop.f32.mrf.mxu1 }
 0x4c0   : > { %v873_v2 = vmax.f32 %v869_v59, %v850_v52 }
 0x4c7   : > { %v853_v54 = vpop.f32.mrf.mxu1 }
 0x4c8   : > { %v874_v4 = vmax.f32 %v870_v61, %v853_v54 }
 0x4cf   : > { %v855_v55 = vpop.f32.mrf.mxu1 }
 0x4d0   : > { %v875_v5 = vmax.f32 %v871_v1, %v855_v55 }
 0x4d7   : > { %v858_v56 = vpop.f32.mrf.mxu1 }
 0x4d8   : > { %v876_v8 = vmax.f32 %v872_v3, %v858_v56 }
 0x4df   : > { %v860_v57 = vpop.f32.mrf.mxu1 }
 0x4e0   : > { %v877_v6 = vmax.f32 %v873_v2, %v860_v57 }
 0x4e2   : > { %v880_v11 = vmax.f32 %v876_v8, %v877_v6 }
 0x4e7   : > { %v863_v58 = vpop.f32.mrf.mxu1 }
 0x4e8   : > { %v878_v9 = vmax.f32 %v874_v4, %v863_v58 }
 0x4ef   : > { %v865_v7 = vpop.f32.mrf.mxu1 }
 0x4f0   : > { %v879_v10 = vmax.f32 %v875_v5, %v865_v7 }
 0x4f2   : > { %v881_v12 = vmax.f32 %v878_v9, %v879_v10 }
 0x4f4   : > { %v882_v13 = vmax.f32 %v880_v11, %v881_v12 }
 0x4f6   : > { %v883_v14 = vrot.slane %v882_v13, 4 }
 0x4f8   : > { %v884_v15 = vmax.f32 %v882_v13, %v883_v14 }
 0x4fa   : > { %v885_v16 = vrot.slane %v884_v15, 2 }
 0x4fc   : > { %v886_v17 = vmax.f32 %v884_v15, %v885_v16 }
 0x4fe   : > { %v887_v18 = vrot.slane %v886_v17, 1 }
 0x500   : > { %v888_v19 = vmax.f32 %v886_v17, %v887_v18 }
 0x502   : > { %v904_v21 = vsub.f32 %v865_v7, %v888_v19  ;;  %v903_v62 = vsub.f32 %v863_v58, %v888_v19  ;;  %v901_v30 = vsub.f32 %v858_v56, %v888_v19  ;;  %v902_v32 = vsub.f32 %v860_v57, %v888_v19 }
 0x503   : > { %v899_v27 = vsub.f32 %v853_v54, %v888_v19  ;;  %v900_v29 = vsub.f32 %v855_v55, %v888_v19  ;;  %v897_v34 = vsub.f32 %v848_v24, %v888_v19  ;;  %v898_v38 = vsub.f32 %v850_v52, %v888_v19 }
 0x504   : > { %v935_v35 = vmul.f32 1.442695, %v904_v21  ;;  %v933_v36 = vmul.f32 1.442695, %v903_v62  ;;  %v929_v33 = vmul.f32 1.442695, %v901_v30  ;;  %v895_v39 = vsub.f32 %v843_v47, %v888_v19 }
 0x505   : > { %v931_v31 = vmul.f32 1.442695, %v902_v32  ;;  %v925_v28 = vmul.f32 1.442695, %v899_v27  ;;  %v927_v37 = vmul.f32 1.442695, %v900_v29  ;;  %v896_v20 = vsub.f32 %v5992_v48, %v888_v19 }
 0x506   : > { %5124 = vpow2.f32 %v935_v35  ;;  %v921_v22 = vmul.f32 1.442695, %v897_v34  ;;  %v889_v42 = vsub.f32 %v5980_v25, %v888_v19  ;;  %v923_v54 = vmul.f32 1.442695, %v898_v38 }
 0x507   : > { %5126 = vpow2.f32 %v933_v36  ;;  %v890_v55 = vsub.f32 %v5982_v44, %v888_v19  ;;  %v917_v47 = vmul.f32 1.442695, %v895_v39  ;;  %v893_v48 = vsub.f32 %v5988_v46, %v888_v19 }
 0x508   : > { %5128 = vpow2.f32 %v929_v33  ;;  %v919_v57 = vmul.f32 1.442695, %v896_v20  ;;  %v891_v58 = vsub.f32 %v5984_v45, %v888_v19  ;;  %v894_v25 = vsub.f32 %v5990_v26, %v888_v19  ;;  %v549_v33 = vpop.f32.mrf.mxu2 }
 0x509   : > { %5130 = vpow2.f32 %v931_v31  ;;  %v905_v59 = vmul.f32 1.442695, %v889_v42  ;;  %v892_v44 = vsub.f32 %v5986_v23, %v888_v19  ;;  %v907_v60 = vmul.f32 1.442695, %v890_v55  ;;  %v989_v42 = vpop.trf.xlu1 }
 0x50a   : > { %5132 = vpow2.f32 %v925_v28  ;;  %v913_v46 = vmul.f32 1.442695, %v893_v48  ;;  %v909_v3 = vmul.f32 1.442695, %v891_v58  ;;  %v915_v45 = vmul.f32 1.442695, %v894_v25 }
 0x50b   : > { %5134 = vpow2.f32 %v927_v37  ;;  %v911_v4 = vmul.f32 1.442695, %v892_v44  ;;  %v559_v35 = vpack.c.bf16 %v5882_v63, %v5882_v63  ;;  %v566_v34 = vpack.c.bf16 %v549_v33, %v549_v33 }
 0x50c   : > { %v6002_v40 = vpop.eup %5124  ;;  %5136 = vpow2.f32 %v921_v22 }
 0x50d   : > { %v6005_v43 = vpop.eup %5126  ;;  %5138 = vpow2.f32 %v923_v54  ;;  %v1022_v29 = vsel %vm610_vm1, %v559_v35, 0 }
 0x50e   : > { %v6008_v56 = vpop.eup %5128  ;;  %v966_v24 = vpack.c.bf16 %v6002_v40, %v6005_v43  ;;  %5140 = vpow2.f32 %v917_v47 }
 0x50f   : > { %v6013_v52 = vpop.eup %5130  ;;  %5142 = vpow2.f32 %v919_v57 }
 0x510   : > { %967 = vmatpush.bf16.msrb.mxu0 %v966_v24  ;;  %v5133_v61 = vpop.eup %5132  ;;  %v965_v1 = vpack.c.bf16 %v6013_v52, %v6008_v56  ;;  %5144 = vpow2.f32 %v905_v59 }
 0x511   : > { %v5135_v2 = vpop.eup %5134  ;;  %5146 = vpow2.f32 %v907_v60  ;;  %v990_v54 = vpop.trf.xlu1 }
 0x512   : > { %v5137_v26 = vpop.eup %5136  ;;  %v964_v5 = vpack.c.bf16 %v5135_v2, %v5133_v61  ;;  %5148 = vpow2.f32 %v913_v46 }
 0x513   : > { %v5139_v6 = vpop.eup %5138  ;;  %5150 = vpow2.f32 %v909_v3 }
 0x514   : > { %968 = vmatpush.bf16.msrb.mxu0 %v965_v1  ;;  %v5141_v23 = vpop.eup %5140  ;;  %5152 = vpow2.f32 %v915_v45  ;;  %v963_v9 = vpack.c.bf16 %v5139_v6, %v5137_v26  ;;  %v1391_v1 = vsub.f32 %v5977_v41, %v5859_v53 }
 0x515   : > { %v5143_v7 = vpop.eup %5142  ;;  %5154 = vpow2.f32 %v911_v4 }
 0x516   : > { %v5145_v8 = vpop.eup %5144  ;;  %v962_v15 = vpack.c.bf16 %v5143_v7, %v5141_v23 }
 0x517   : > { %v5147_v10 = vpop.eup %5146 }
 0x518   : > { %969 = vmatpush.bf16.msrb.mxu0 %v964_v5  ;;  %v5149_v11 = vpop.eup %5148  ;;  %v937_v12 = vadd.f32 %v5147_v10, %v5145_v8  ;;  %v959_v27 = vpack.c.bf16 %v5147_v10, %v5145_v8 }
 0x519   : > { %v5151_v13 = vpop.eup %5150  ;;  %v991_v55 = vpop.trf.xlu1 }
 0x51a   : > { %v5153_v14 = vpop.eup %5152  ;;  %v938_v16 = vadd.f32 %v5151_v13, %v937_v12 }
 0x51b   : > { %v5155_v17 = vpop.eup %5154  ;;  %v961_v19 = vpack.c.bf16 %v5153_v14, %v5149_v11 }
 0x51c   : > { %970 = vmatpush.bf16.msrb.mxu0 %v963_v9  ;;  %v939_v18 = vadd.f32 %v5155_v17, %v938_v16  ;;  %v960_v30 = vpack.c.bf16 %v5155_v17, %v5151_v13 }
 0x51e   : > { %v940_v21 = vadd.f32 %v5149_v11, %v939_v18 }
 0x520   : > { %971 = vmatpush.bf16.msrb.mxu0 %v962_v15  ;;  %v941_v62 = vadd.f32 %v5153_v14, %v940_v21 }
 0x521   : > { %v992_v24 = vpop.trf.xlu1 }
 0x522   : > { %v942_v32 = vadd.f32 %v5141_v23, %v941_v62 }
 0x524   : > { %972 = vmatpush.bf16.msrb.mxu0 %v961_v19  ;;  %v943_v36 = vadd.f32 %v5143_v7, %v942_v32 }
 0x526   : > { %v944_v31 = vadd.f32 %v5137_v26, %v943_v36  ;;  %v4983_v26 = vld [vmem:[%s7327_s5 + $0x28] sm:$0xff] }
 0x527   : > { %4649 = vmatmul.msk.bf16.gmra.mxu2 %vm349_vm0, %v4983_v26 }
 0x528   : > { %973 = vmatpush.bf16.msrb.mxu0 %v960_v30  ;;  %v945_v28 = vadd.f32 %v5139_v6, %v944_v31 }
 0x529   : > { %v993_v47 = vpop.trf.xlu1 }
 0x52a   : > { %v946_v37 = vadd.f32 %v5133_v61, %v945_v28 }
 0x52c   : > { %974 = vmatpush.bf16.msrb.mxu0 %v959_v27  ;;  %v947_v38 = vadd.f32 %v5135_v2, %v946_v37 }
 0x52e   : > { %v948_v39 = vadd.f32 %v6008_v56, %v947_v38 }
 0x52f   : > { %975 = vmatmul.bf16.vlgmr.msrb.gmra.mxu0 %v566_v34 }
 0x530   : > { %1031 = vmatpush.bf16.msra.mxu0 %v1022_v29  ;;  %v949_v20 = vadd.f32 %v6013_v52, %v948_v39 }
 0x531   : > { %v994_v56 = vpop.trf.xlu1 }
 0x532   : > { %v950_v63 = vadd.f32 %v6005_v43, %v949_v20 }
 0x534   : > { %v951_v22 = vadd.f32 %v6002_v40, %v950_v63 }
 0x536   : > { %v952_v48 = vrot.slane %v951_v22, 4 }
 0x538   : > { %v953_v40 = vadd.f32 %v952_v48, %v951_v22 }
 0x539   : > { %v995_v57 = vpop.trf.xlu1 }
 0x53a   : > { %v954_v43 = vrot.slane %v953_v40, 2 }
 0x53c   : > { %v955_v52 = vadd.f32 %v954_v43, %v953_v40 }
 0x53e   : > { %v956_v58 = vrot.slane %v955_v52, 1 }
 0x53f   : > { %4666 = vmatmul.msk.bf16.vlgmr.msra.gmra.mxu0 %vm585_vm2, %v989_v42 }
 0x540   : > { %v957_v25 = vadd.f32 %v956_v58, %v955_v52 }
 0x541   : > { %v996_v61 = vpop.trf.xlu1 }
 0x542   : > { %5156 = vrcp.f32 %v957_v25 }
 0x548   : > { %v5157_v59 = vpop.eup %5156 }
 0x54f   : > { %4667 = vmatmul.msk.bf16.gmra.mxu0 %vm585_vm2, %v990_v54 }
 0x55f   : > { %4668 = vmatmul.msk.bf16.gmra.mxu0 %vm585_vm2, %v991_v55 }
 0x56f   : > { %4669 = vmatmul.msk.bf16.gmra.mxu0 %vm585_vm2, %v992_v24 }
 0x57f   : > { %4670 = vmatmul.msk.bf16.gmra.mxu0 %vm585_vm2, %v993_v47 }
 0x58f   : > { %4671 = vmatmul.msk.bf16.gmra.mxu0 %vm585_vm2, %v994_v56 }
 0x59f   : > { %4672 = vmatmul.msk.bf16.gmra.mxu0 %vm585_vm2, %v995_v57 }
 0x5ac   : > { %v976_v44 = vpop.f32.mrf.mxu0 }
 0x5ad   : > { %v980_v60 = vmul.f32 %v5157_v59, %v976_v44 }
 0x5af   : > { %v1392_v46 = vsub.f32 %v980_v60, %v5855_v51  ;;  %4673 = vmatmul.msk.bf16.gmra.mxu0 %vm585_vm2, %v996_v61 }
 0x5b1   : > { %v6038_v2 = vpack.c.bf16 %v1392_v46, %v1391_v1 }
 0x5b4   : > { %v978_v3 = vpop.f32.mrf.mxu0 }
 0x5bc   : > { %v6040_v45 = vpop.f32.mrf.mxu0 }
 0x5c4   : > { %v6042_v4 = vpop.f32.mrf.mxu0 }
 0x5cc   : > { %v6048_v5 = vpop.f32.mrf.mxu0 }
 0x5d4   : > { %v6050_v41 = vpop.f32.mrf.mxu0 }
 0x5dc   : > { %v6052_v6 = vpop.f32.mrf.mxu0 }
 0x5dd   : > { %v1073_v17 = vmax.f32 %v6040_v45, %v6052_v6 }
 0x5e4   : > { %v6054_v23 = vpop.f32.mrf.mxu0 }
 0x5e5   : > { %v1074_v16 = vmax.f32 %v6042_v4, %v6054_v23 }
 0x5ec   : > { %v1048_v7 = vpop.f32.mrf.mxu0 }
 0x5ed   : > { %v1075_v18 = vmax.f32 %v6048_v5, %v1048_v7 }
 0x5f4   : > { %v6056_v8 = vpop.f32.mrf.mxu0 }
 0x5f5   : > { %v1076_v19 = vmax.f32 %v6050_v41, %v6056_v8 }
 0x5fc   : > { %v1053_v9 = vpop.f32.mrf.mxu0 }
 0x5fd   : > { %v1077_v62 = vmax.f32 %v1073_v17, %v1053_v9 }
 0x604   : > { %v1055_v10 = vpop.f32.mrf.mxu0 }
 0x605   : > { %v1078_v21 = vmax.f32 %v1074_v16, %v1055_v10 }
 0x60c   : > { %v1058_v11 = vpop.f32.mrf.mxu0 }
 0x60d   : > { %v1079_v30 = vmax.f32 %v1075_v18, %v1058_v11 }
 0x614   : > { %v1060_v12 = vpop.f32.mrf.mxu0 }
 0x615   : > { %v1080_v32 = vmax.f32 %v1076_v19, %v1060_v12 }
 0x61c   : > { %v1063_v13 = vpop.f32.mrf.mxu0 }
 0x61d   : > { %v1081_v33 = vmax.f32 %v1077_v62, %v1063_v13 }
 0x624   : > { %v1065_v14 = vpop.f32.mrf.mxu0 }
 0x625   : > { %v1082_v35 = vmax.f32 %v1078_v21, %v1065_v14 }
 0x627   : > { %v1085_v29 = vmax.f32 %v1081_v33, %v1082_v35 }
 0x62c   : > { %v1068_v15 = vpop.f32.mrf.mxu0 }
 0x62d   : > { %v1083_v27 = vmax.f32 %v1079_v30, %v1068_v15 }
 0x634   : > { %v1070_v36 = vpop.f32.mrf.mxu0 }
 0x635   : > { %v1084_v31 = vmax.f32 %v1080_v32, %v1070_v36 }
 0x637   : > { %v1086_v28 = vmax.f32 %v1083_v27, %v1084_v31 }
 0x639   : > { %v1087_v34 = vmax.f32 %v1085_v29, %v1086_v28 }
 0x63b   : > { %v1088_v37 = vrot.slane %v1087_v34, 4 }
 0x63d   : > { %v1089_v38 = vmax.f32 %v1087_v34, %v1088_v37 }
 0x63f   : > { %v1090_v39 = vrot.slane %v1089_v38, 2 }
 0x641   : > { %v1091_v20 = vmax.f32 %v1089_v38, %v1090_v39 }
 0x643   : > { %v1092_v63 = vrot.slane %v1091_v20, 1 }
 0x645   : > { %v1093_v22 = vmax.f32 %v1091_v20, %v1092_v63 }
 0x647   : > { %v1109_v42 = vsub.f32 %v1070_v36, %v1093_v22  ;;  %v1108_v54 = vsub.f32 %v1068_v15, %v1093_v22  ;;  %v1106_v55 = vsub.f32 %v1063_v13, %v1093_v22  ;;  %v1107_v24 = vsub.f32 %v1065_v14, %v1093_v22 }
 0x648   : > { %v1104_v40 = vsub.f32 %v1058_v11, %v1093_v22  ;;  %v1105_v52 = vsub.f32 %v1060_v12, %v1093_v22  ;;  %v1102_v58 = vsub.f32 %v1053_v9, %v1093_v22  ;;  %v1103_v59 = vsub.f32 %v1055_v10, %v1093_v22 }
 0x649   : > { %v1140_v47 = vmul.f32 1.442695, %v1109_v42  ;;  %v1138_v56 = vmul.f32 1.442695, %v1108_v54  ;;  %v1134_v48 = vmul.f32 1.442695, %v1106_v55  ;;  %v1100_v44 = vsub.f32 %v1048_v7, %v1093_v22 }
 0x64a   : > { %v1136_v43 = vmul.f32 1.442695, %v1107_v24  ;;  %v1130_v57 = vmul.f32 1.442695, %v1104_v40  ;;  %v1132_v25 = vmul.f32 1.442695, %v1105_v52  ;;  %v1101_v60 = vsub.f32 %v6056_v8, %v1093_v22 }
 0x64b   : > { %5158 = vpow2.f32 %v1140_v47  ;;  %v1126_v1 = vmul.f32 1.442695, %v1102_v58  ;;  %v1094_v46 = vsub.f32 %v6040_v45, %v1093_v22  ;;  %v1128_v26 = vmul.f32 1.442695, %v1103_v59 }
 0x64c   : > { %5160 = vpow2.f32 %v1138_v56  ;;  %v1095_v11 = vsub.f32 %v6042_v4, %v1093_v22  ;;  %v1122_v7 = vmul.f32 1.442695, %v1100_v44  ;;  %v1098_v8 = vsub.f32 %v6052_v6, %v1093_v22  ;;  %v552_v56 = vpop.f32.mrf.mxu2 }
 0x64d   : > { %5162 = vpow2.f32 %v1134_v48  ;;  %v1124_v13 = vmul.f32 1.442695, %v1101_v60  ;;  %v1096_v14 = vsub.f32 %v6048_v5, %v1093_v22  ;;  %v1099_v45 = vsub.f32 %v6054_v23, %v1093_v22 }
 0x64e   : > { %5164 = vpow2.f32 %v1136_v43  ;;  %v1110_v15 = vmul.f32 1.442695, %v1094_v46  ;;  %v1097_v4 = vsub.f32 %v6050_v41, %v1093_v22  ;;  %v1112_v16 = vmul.f32 1.442695, %v1095_v11 }
 0x64f   : > { %5166 = vpow2.f32 %v1130_v57  ;;  %v1118_v6 = vmul.f32 1.442695, %v1098_v8  ;;  %v1114_v21 = vmul.f32 1.442695, %v1096_v14  ;;  %v1120_v5 = vmul.f32 1.442695, %v1099_v45 }
 0x650   : > { %5168 = vpow2.f32 %v1132_v25  ;;  %v1116_v62 = vmul.f32 1.442695, %v1097_v4  ;;  %v560_v24 = vpack.c.bf16 %v5884_v0, %v5884_v0  ;;  %v567_v43 = vpack.c.bf16 %v552_v56, %v552_v56 }
 0x651   : > { %v6066_v61 = vpop.eup %5158  ;;  %5170 = vpow2.f32 %v1126_v1  ;;  %v1194_v1 = vpop.trf.xlu2 }
 0x652   : > { %v6069_v3 = vpop.eup %5160  ;;  %5172 = vpow2.f32 %v1128_v26  ;;  %v1227_v52 = vsel %vm610_vm1, %v560_v24, 0 }
 0x653   : > { %v6072_v12 = vpop.eup %5162  ;;  %v1171_v9 = vpack.c.bf16 %v6066_v61, %v6069_v3  ;;  %5174 = vpow2.f32 %v1122_v7 }
 0x654   : > { %v6077_v10 = vpop.eup %5164  ;;  %5176 = vpow2.f32 %v1124_v13  ;;  %v6098_v45 = vpop.f32.mrf.mxu2 }
 0x655   : > { %1172 = vmatpush.bf16.msrb.mxu2 %v1171_v9  ;;  %v5167_v17 = vpop.eup %5166  ;;  %v1170_v18 = vpack.c.bf16 %v6077_v10, %v6072_v12  ;;  %5178 = vpow2.f32 %v1110_v15 }
 0x656   : > { %v5169_v19 = vpop.eup %5168  ;;  %5180 = vpow2.f32 %v1112_v16 }
 0x657   : > { %v5171_v23 = vpop.eup %5170  ;;  %v1169_v30 = vpack.c.bf16 %v5169_v19, %v5167_v17  ;;  %5182 = vpow2.f32 %v1118_v6 }
 0x658   : > { %v5173_v32 = vpop.eup %5172  ;;  %5184 = vpow2.f32 %v1114_v21 }
 0x659   : > { %1173 = vmatpush.bf16.msrb.mxu2 %v1170_v18  ;;  %v5175_v41 = vpop.eup %5174  ;;  %5186 = vpow2.f32 %v1120_v5  ;;  %v1168_v33 = vpack.c.bf16 %v5173_v32, %v5171_v23  ;;  %v1195_v46 = vpop.trf.xlu2 }
 0x65a   : > { %v5177_v35 = vpop.eup %5176  ;;  %5188 = vpow2.f32 %v1116_v62 }
 0x65b   : > { %v5179_v36 = vpop.eup %5178  ;;  %v1167_v37 = vpack.c.bf16 %v5177_v35, %v5175_v41 }
 0x65c   : > { %v5181_v27 = vpop.eup %5180 }
 0x65d   : > { %1174 = vmatpush.bf16.msrb.mxu2 %v1169_v30  ;;  %v5183_v31 = vpop.eup %5182  ;;  %v1142_v29 = vadd.f32 %v5181_v27, %v5179_v36  ;;  %v1164_v48 = vpack.c.bf16 %v5181_v27, %v5179_v36 }
 0x65e   : > { %v5185_v28 = vpop.eup %5184 }
 0x65f   : > { %v5187_v34 = vpop.eup %5186  ;;  %v1143_v38 = vadd.f32 %v5185_v28, %v1142_v29 }
 0x660   : > { %v5189_v39 = vpop.eup %5188  ;;  %v1166_v63 = vpack.c.bf16 %v5187_v34, %v5183_v31 }
 0x661   : > { %1175 = vmatpush.bf16.msrb.mxu2 %v1168_v33  ;;  %v1144_v20 = vadd.f32 %v5189_v39, %v1143_v38  ;;  %v1165_v54 = vpack.c.bf16 %v5189_v39, %v5185_v28  ;;  %v1196_v26 = vpop.trf.xlu2 }
 0x663   : > { %v1145_v22 = vadd.f32 %v5183_v31, %v1144_v20 }
 0x665   : > { %1176 = vmatpush.bf16.msrb.mxu2 %v1167_v37  ;;  %v1146_v42 = vadd.f32 %v5187_v34, %v1145_v22 }
 0x667   : > { %v1147_v55 = vadd.f32 %v5175_v41, %v1146_v42 }
 0x669   : > { %1177 = vmatpush.bf16.msrb.mxu2 %v1166_v63  ;;  %v1148_v47 = vadd.f32 %v5177_v35, %v1147_v55  ;;  %v1197_v11 = vpop.trf.xlu2 }
 0x66b   : > { %v1149_v40 = vadd.f32 %v5171_v23, %v1148_v47 }
 0x66d   : > { %1178 = vmatpush.bf16.msrb.mxu2 %v1165_v54  ;;  %v1150_v57 = vadd.f32 %v5173_v32, %v1149_v40 }
 0x66f   : > { %v1151_v58 = vadd.f32 %v5167_v17, %v1150_v57 }
 0x671   : > { %1179 = vmatpush.bf16.msrb.mxu2 %v1164_v48  ;;  %v1152_v25 = vadd.f32 %v5169_v19, %v1151_v58  ;;  %v1198_v9 = vpop.trf.xlu2 }
 0x673   : > { %v1153_v59 = vadd.f32 %v6072_v12, %v1152_v25 }
 0x674   : > { %1180 = vmatmul.bf16.vlgmr.msrb.gmra.mxu2 %v567_v43 }
 0x675   : > { %1236 = vmatpush.bf16.msra.mxu2 %v1227_v52  ;;  %v1154_v44 = vadd.f32 %v6077_v10, %v1153_v59 }
 0x677   : > { %v1155_v0 = vadd.f32 %v6069_v3, %v1154_v44 }
 0x679   : > { %v1156_v60 = vadd.f32 %v6066_v61, %v1155_v0  ;;  %v1199_v12 = vpop.trf.xlu2 }
 0x67b   : > { %v1157_v3 = vrot.slane %v1156_v60, 4 }
 0x67d   : > { %v1158_v61 = vadd.f32 %v1157_v3, %v1156_v60 }
 0x67f   : > { %v1159_v7 = vrot.slane %v1158_v61, 2 }
 0x681   : > { %v1200_v8 = vpop.trf.xlu2  ;;  %v1160_v10 = vadd.f32 %v1159_v7, %v1158_v61 }
 0x683   : > { %v1161_v13 = vrot.slane %v1160_v10, 1 }
 0x684   : > { %4674 = vmatmul.msk.bf16.vlgmr.msra.gmra.mxu2 %vm585_vm2, %v1194_v1 }
 0x685   : > { %v1162_v14 = vadd.f32 %v1161_v13, %v1160_v10 }
 0x687   : > { %5190 = vrcp.f32 %v1162_v14 }
 0x689   : > { %v1201_v15 = vpop.trf.xlu2 }
 0x68d   : > { %v5191_v4 = vpop.eup %5190 }
 0x694   : > { %4675 = vmatmul.msk.bf16.gmra.mxu2 %vm585_vm2, %v1195_v46 }
 0x6a4   : > { %4676 = vmatmul.msk.bf16.gmra.mxu2 %vm585_vm2, %v1196_v26 }
 0x6b4   : > { %4677 = vmatmul.msk.bf16.gmra.mxu2 %vm585_vm2, %v1197_v11 }
 0x6c4   : > { %4678 = vmatmul.msk.bf16.gmra.mxu2 %vm585_vm2, %v1198_v9 }
 0x6d4   : > { %4679 = vmatmul.msk.bf16.gmra.mxu2 %vm585_vm2, %v1199_v12 }
 0x6e4   : > { %4680 = vmatmul.msk.bf16.gmra.mxu2 %vm585_vm2, %v1200_v8 }
 0x6f4   : > { %4681 = vmatmul.msk.bf16.gmra.mxu2 %vm585_vm2, %v1201_v15 }
 0x6f7   : > { %v1181_v16 = vpop.f32.mrf.mxu2 }
 0x6f8   : > { %v6101_v17 = vmul.f32 %v5191_v4, %v1181_v16 }
 0x6ff   : > { %v1183_v18 = vpop.f32.mrf.mxu2 }
 0x707   : > { %v6103_v6 = vpop.f32.mrf.mxu2 }
 0x70f   : > { %v6105_v19 = vpop.f32.mrf.mxu2 }
 0x717   : > { %v6107_v21 = vpop.f32.mrf.mxu2 }
 0x71f   : > { %v6109_v5 = vpop.f32.mrf.mxu2 }
 0x727   : > { %v6111_v62 = vpop.f32.mrf.mxu2 }
 0x728   : > { %v1278_v34 = vmax.f32 %v6103_v6, %v6111_v62 }
 0x72f   : > { %v6113_v23 = vpop.f32.mrf.mxu2 }
 0x730   : > { %v1279_v28 = vmax.f32 %v6105_v19, %v6113_v23 }
 0x737   : > { %v1253_v30 = vpop.f32.mrf.mxu2 }
 0x738   : > { %v1280_v37 = vmax.f32 %v6107_v21, %v1253_v30 }
 0x73f   : > { %v6115_v32 = vpop.f32.mrf.mxu2 }
 0x740   : > { %v1281_v38 = vmax.f32 %v6109_v5, %v6115_v32 }
 0x747   : > { %v1258_v41 = vpop.f32.mrf.mxu2 }
 0x748   : > { %v1282_v20 = vmax.f32 %v1278_v34, %v1258_v41 }
 0x74f   : > { %v1260_v35 = vpop.f32.mrf.mxu2 }
 0x750   : > { %v1283_v39 = vmax.f32 %v1279_v28, %v1260_v35 }
 0x757   : > { %v1263_v36 = vpop.f32.mrf.mxu2 }
 0x758   : > { %v1284_v63 = vmax.f32 %v1280_v37, %v1263_v36 }
 0x75f   : > { %v1265_v33 = vpop.f32.mrf.mxu2 }
 0x760   : > { %v1285_v22 = vmax.f32 %v1281_v38, %v1265_v33 }
 0x767   : > { %v1268_v27 = vpop.f32.mrf.mxu2 }
 0x768   : > { %v1286_v55 = vmax.f32 %v1282_v20, %v1268_v27 }
 0x76f   : > { %v1270_v31 = vpop.f32.mrf.mxu2 }
 0x770   : > { %v1287_v42 = vmax.f32 %v1283_v39, %v1270_v31 }
 0x772   : > { %v1290_v56 = vmax.f32 %v1286_v55, %v1287_v42 }
 0x777   : > { %v1273_v29 = vpop.f32.mrf.mxu2 }
 0x778   : > { %v1288_v24 = vmax.f32 %v1284_v63, %v1273_v29 }
 0x77f   : > { %v1275_v54 = vpop.f32.mrf.mxu2 }
 0x780   : > { %v1289_v47 = vmax.f32 %v1285_v22, %v1275_v54 }
 0x782   : > { %v1291_v48 = vmax.f32 %v1288_v24, %v1289_v47 }
 0x784   : > { %v1292_v40 = vmax.f32 %v1290_v56, %v1291_v48 }
 0x786   : > { %v1293_v43 = vrot.slane %v1292_v40, 4 }
 0x788   : > { %v1294_v52 = vmax.f32 %v1292_v40, %v1293_v43 }
 0x78a   : > { %v1295_v57 = vrot.slane %v1294_v52, 2 }
 0x78c   : > { %v1296_v58 = vmax.f32 %v1294_v52, %v1295_v57 }
 0x78e   : > { %v1297_v25 = vrot.slane %v1296_v58, 1 }
 0x790   : > { %v1298_v59 = vmax.f32 %v1296_v58, %v1297_v25 }
 0x792   : > { %v1314_v44 = vsub.f32 %v1275_v54, %v1298_v59  ;;  %v1313_v0 = vsub.f32 %v1273_v29, %v1298_v59  ;;  %v1311_v60 = vsub.f32 %v1268_v27, %v1298_v59  ;;  %v1312_v1 = vsub.f32 %v1270_v31, %v1298_v59 }
 0x793   : > { %v1309_v9 = vsub.f32 %v1263_v36, %v1298_v59  ;;  %v1310_v3 = vsub.f32 %v1265_v33, %v1298_v59  ;;  %v1307_v7 = vsub.f32 %v1258_v41, %v1298_v59  ;;  %v1308_v10 = vsub.f32 %v1260_v35, %v1298_v59 }
 0x794   : > { %v1345_v46 = vmul.f32 1.442695, %v1314_v44  ;;  %v1343_v26 = vmul.f32 1.442695, %v1313_v0  ;;  %v1339_v11 = vmul.f32 1.442695, %v1311_v60  ;;  %v1305_v13 = vsub.f32 %v1253_v30, %v1298_v59 }
 0x795   : > { %v1341_v12 = vmul.f32 1.442695, %v1312_v1  ;;  %v1335_v61 = vmul.f32 1.442695, %v1309_v9  ;;  %v1337_v8 = vmul.f32 1.442695, %v1310_v3  ;;  %v1306_v14 = vsub.f32 %v6115_v32, %v1298_v59 }
 0x796   : > { %5192 = vpow2.f32 %v1345_v46  ;;  %v1331_v4 = vmul.f32 1.442695, %v1307_v7  ;;  %v1299_v16 = vsub.f32 %v6103_v6, %v1298_v59  ;;  %v1333_v36 = vmul.f32 1.442695, %v1308_v10 }
 0x797   : > { %5194 = vpow2.f32 %v1343_v26  ;;  %v1300_v33 = vsub.f32 %v6105_v19, %v1298_v59  ;;  %v1327_v30 = vmul.f32 1.442695, %v1305_v13  ;;  %v1303_v32 = vsub.f32 %v6111_v62, %v1298_v59 }
 0x798   : > { %5196 = vpow2.f32 %v1339_v11  ;;  %v1329_v31 = vmul.f32 1.442695, %v1306_v14  ;;  %v1301_v29 = vsub.f32 %v6107_v21, %v1298_v59  ;;  %v1304_v6 = vsub.f32 %v6113_v23, %v1298_v59 }
 0x799   : > { %5198 = vpow2.f32 %v1341_v12  ;;  %v1315_v28 = vmul.f32 1.442695, %v1299_v16  ;;  %v1302_v19 = vsub.f32 %v6109_v5, %v1298_v59  ;;  %v1317_v34 = vmul.f32 1.442695, %v1300_v33 }
 0x79a   : > { %5200 = vpow2.f32 %v1335_v61  ;;  %v1323_v39 = vmul.f32 1.442695, %v1303_v32  ;;  %v1319_v62 = vmul.f32 1.442695, %v1301_v29  ;;  %v1325_v63 = vmul.f32 1.442695, %v1304_v6  ;;  %v1400_v6 = vpop.permute.xlu2 %1399 }
 0x79b   : > { %5202 = vpow2.f32 %v1337_v8  ;;  %v1321_v21 = vmul.f32 1.442695, %v1302_v19  ;;  %v568_v12 = vpack.c.bf16 %v6098_v45, %v6098_v45  ;;  %v4985_v29 = vld [vmem:[%s7328_s6 + $0x8] sm:$0xff] }
 0x79c   : > { %v6125_v15 = vpop.eup %5192  ;;  %5204 = vpow2.f32 %v1331_v4 }
 0x79d   : > { %v6128_v18 = vpop.eup %5194  ;;  %5206 = vpow2.f32 %v1333_v36 }
 0x79e   : > { %v6131_v27 = vpop.eup %5196  ;;  %v1376_v41 = vpack.c.bf16 %v6125_v15, %v6128_v18  ;;  %5208 = vpow2.f32 %v1327_v30 }
 0x79f   : > { %v5199_v35 = vpop.eup %5198  ;;  %5210 = vpow2.f32 %v1329_v31  ;;  %v4984_v31 = vld [vmem:[%s7328_s6] sm:$0xff] }
 0x7a0   : > { %1377 = vmatpush.bf16.msrb.mxu3 %v1376_v41  ;;  %v5201_v37 = vpop.eup %5200  ;;  %v1375_v38 = vpack.c.bf16 %v5199_v35, %v6131_v27  ;;  %5212 = vpow2.f32 %v1315_v28 }
 0x7a1   : > { %v5203_v20 = vpop.eup %5202  ;;  %5214 = vpow2.f32 %v1317_v34 }
 0x7a2   : > { %v5205_v22 = vpop.eup %5204  ;;  %v1374_v23 = vpack.c.bf16 %v5203_v20, %v5201_v37  ;;  %5216 = vpow2.f32 %v1323_v39 }
 0x7a3   : > { %v5207_v42 = vpop.eup %5206  ;;  %5218 = vpow2.f32 %v1319_v62 }
 0x7a4   : > { %1378 = vmatpush.bf16.msrb.mxu3 %v1375_v38  ;;  %v5209_v5 = vpop.eup %5208  ;;  %5220 = vpow2.f32 %v1325_v63  ;;  %v1373_v24 = vpack.c.bf16 %v5207_v42, %v5205_v22  ;;  %v1410_v63 = vpop.permute.xlu0 %1409 }
 0x7a5   : > { %v5211_v54 = vpop.eup %5210  ;;  %5222 = vpow2.f32 %v1321_v21 }
 0x7a6   : > { %v5213_v55 = vpop.eup %5212  ;;  %v1372_v52 = vpack.c.bf16 %v5211_v54, %v5209_v5 }
 0x7a7   : > { %v5215_v47 = vpop.eup %5214 }
 0x7a8   : > { %1379 = vmatpush.bf16.msrb.mxu3 %v1374_v23  ;;  %v5217_v56 = vpop.eup %5216  ;;  %v1347_v48 = vadd.f32 %v5215_v47, %v5213_v55  ;;  %v1369_v26 = vpack.c.bf16 %v5215_v47, %v5213_v55 }
 0x7a9   : > { %v5219_v40 = vpop.eup %5218 }
 0x7aa   : > { %v5221_v43 = vpop.eup %5220  ;;  %v1348_v57 = vadd.f32 %v5219_v40, %v1347_v48 }
 0x7ab   : > { %v5223_v58 = vpop.eup %5222  ;;  %v1371_v59 = vpack.c.bf16 %v5221_v43, %v5217_v56 }
 0x7ac   : > { %1380 = vmatpush.bf16.msrb.mxu3 %v1373_v24  ;;  %v1349_v25 = vadd.f32 %v5223_v58, %v1348_v57  ;;  %v1370_v60 = vpack.c.bf16 %v5223_v58, %v5219_v40 }
 0x7ae   : > { %v1350_v44 = vadd.f32 %v5217_v56, %v1349_v25  ;;  %v4989_v56 = vld [vmem:[%s7327_s5 + $0x48] sm:$0xff] }
 0x7b0   : > { %1381 = vmatpush.bf16.msrb.mxu3 %v1372_v52  ;;  %v1351_v0 = vadd.f32 %v5221_v43, %v1350_v44 }
 0x7b2   : > { %v1352_v1 = vadd.f32 %v5209_v5, %v1351_v0 }
 0x7b4   : > { %1382 = vmatpush.bf16.msrb.mxu3 %v1371_v59  ;;  %v1353_v46 = vadd.f32 %v5211_v54, %v1352_v1 }
 0x7b6   : > { %v1354_v11 = vadd.f32 %v5205_v22, %v1353_v46 }
 0x7b8   : > { %1383 = vmatpush.bf16.msrb.mxu3 %v1370_v60  ;;  %v1355_v9 = vadd.f32 %v5207_v42, %v1354_v11 }
 0x7ba   : > { %v1356_v3 = vadd.f32 %v5201_v37, %v1355_v9 }
 0x7bc   : > { %1384 = vmatpush.bf16.msrb.mxu3 %v1369_v26  ;;  %v1357_v61 = vadd.f32 %v5203_v20, %v1356_v3  ;;  %v4710_v3 = vld [vmem:[%s7329_s7 + $0x30] sm:$0xff] }
 0x7be   : > { %v1358_v7 = vadd.f32 %v6131_v27, %v1357_v61  ;;  %v1393_v27 = vsub.f32 %v6101_v17, %v5851_v49  ;;  %v1415_v17 = vpop.permute.xlu1 %1414 }
 0x7bf   : > { %1385 = vmatmul.bf16.vlgmr.msrb.gmra.mxu3 %v568_v12 }
 0x7c0   : > { %v1359_v8 = vadd.f32 %v5199_v35, %v1358_v7 }
 0x7c2   : > { %v1360_v10 = vadd.f32 %v6128_v18, %v1359_v8 }
 0x7c4   : > { %v1361_v13 = vadd.f32 %v6125_v15, %v1360_v10 }
 0x7c6   : > { %v1362_v14 = vrot.slane %v1361_v13, 4 }
 0x7c8   : > { %v1363_v4 = vadd.f32 %v1362_v14, %v1361_v13 }
 0x7ca   : > { %v1364_v16 = vrot.slane %v1363_v4, 2 }
 0x7cc   : > { %v1365_v36 = vadd.f32 %v1364_v16, %v1363_v4  ;;  %v4990_v4 = vld [vmem:[%s7327_s5 + $0x50] sm:$0xff] }
 0x7ce   : > { %v1366_v33 = vrot.slane %v1365_v36, 1 }
 0x7d0   : > { %v1367_v41 = vadd.f32 %v1366_v33, %v1365_v36 }
 0x7d2   : > { %5224 = vrcp.f32 %v1367_v41 }
 0x7d8   : > { %v5225_v30 = vpop.eup %5224 }
 0x842   : > { %v1386_v45 = vpop.f32.mrf.mxu3 }
 0x843   : > { %v1390_v32 = vmul.f32 %v5225_v30, %v1386_v45  ;;  %v4991_v45 = vld [vmem:[%s7327_s5 + $0x58] sm:$0xff] }
 0x845   : > { %v1394_v35 = vsub.f32 %v1390_v32, %v5853_v50 }
 0x847   : > { %v1396_v18 = vpack.c.bf16 %v1394_v35, %v1393_v27 }
 0x849   : > { %1439 = vmatpush.bf16.msra.mxu3 %v1396_v18 }
 0x84a   : > { %v1388_v15 = vpop.f32.mrf.mxu3 }
 0x84d   : > { %1440 = vmatpush.bf16.msra.mxu3 %v6038_v2  ;;  %v1405_v2 = vpop.permute.xlu1 %1404 }
 0x850   : > { %4690 = vmatmul.msk.bf16.vlgmr.msra.gmra.mxu3 %vm349_vm0, %v4984_v31 }
 0x860   : > { %4691 = vmatmul.msk.bf16.gmra.mxu3 %vm349_vm0, %v4985_v29 }
 0x8d3   : > { %v1442_v28 = vpop.f32.mrf.mxu3 }
 0x8d4   : > { %v1443_v19 = vadd.f32 %v1442_v28, %v1400_v6 }
 0x8d6   : > { %v1452_v34 = vmax.f32 %v1443_v19, 0.0 }
 0x8d8   : > { %v1456_v37 = vadd.f32 %v1452_v34, %v5859_v53 }
 0x8da   : > { %1460 = vst [vmem:[%s6161_s26] sm:$0xff] %v1456_v37 }
 0x8db   : > { %v1444_v38 = vpop.f32.mrf.mxu3 }
 0x8dc   : > { %v1445_v39 = vadd.f32 %v1444_v38, %v1405_v2 }
 0x8de   : > { %v1453_v20 = vmax.f32 %v1445_v39, 0.0 }
 0x8e0   : > { %v1457_v62 = vadd.f32 %v1453_v20, %v5855_v51  ;;  %v4986_v51 = vld [vmem:[%s7327_s5 + $0x30] sm:$0xff] }
 0x8e2   : > { %1461 = vst [vmem:[%s6161_s26 + $0x8] sm:$0xff] %v1457_v62  ;;  %v1487_v47 = vpack.c.bf16 %v1457_v62, %v1456_v37 }
 0x8e3   : > { %v1447_v21 = vpop.f32.mrf.mxu3 }
 0x8e4   : > { %v1448_v22 = vadd.f32 %v1447_v21, %v1410_v63 }
 0x8e6   : > { %v1454_v23 = vmax.f32 %v1448_v22, 0.0 }
 0x8e8   : > { %v1458_v53 = vadd.f32 %v1454_v23, %v5851_v49  ;;  %v4987_v49 = vld [vmem:[%s7327_s5 + $0x38] sm:$0xff] }
 0x8ea   : > { %1462 = vst [vmem:[%s6161_s26 + $0x10] sm:$0xff] %v1458_v53 }
 0x8eb   : > { %v1449_v42 = vpop.f32.mrf.mxu3 }
 0x8ec   : > { %v1450_v5 = vadd.f32 %v1449_v42, %v1415_v17 }
 0x8ee   : > { %v1455_v54 = vmax.f32 %v1450_v5, 0.0 }
 0x8f0   : > { %v1459_v55 = vadd.f32 %v1455_v54, %v5853_v50  ;;  %v4988_v50 = vld [vmem:[%s7327_s5 + $0x40] sm:$0xff] }
 0x8f2   : > { %1463 = vst [vmem:[%s6161_s26 + $0x18] sm:$0xff] %v1459_v55  ;;  %v1488_v24 = vpack.c.bf16 %v1459_v55, %v1458_v53 }
 0x8f4   : > { %1543 = vmatpush.bf16.msrb.mxu1 %v1488_v24 }
 0x8f8   : > { %1544 = vmatpush.bf16.msrb.mxu1 %v1487_v47 }
 0x8fb   : > { %4736 = vmatmul.msk.bf16.vlgmr.msrb.gmra.mxu1 %vm349_vm0, %v4986_v51 }
 0x90b   : > { %4737 = vmatmul.msk.bf16.gmra.mxu1 %vm349_vm0, %v4987_v49 }
 0x91b   : > { %4738 = vmatmul.msk.bf16.gmra.mxu1 %vm349_vm0, %v4988_v50 }
 0x92b   : > { %4739 = vmatmul.msk.bf16.gmra.mxu1 %vm349_vm0, %v4989_v56 }
 0x93b   : > { %4740 = vmatmul.msk.bf16.gmra.mxu1 %vm349_vm0, %v4990_v4 }
 0x94b   : > { %4741 = vmatmul.msk.bf16.gmra.mxu1 %vm349_vm0, %v4991_v45 }
 0x978   : > { %v1546_v48 = vpop.f32.mrf.mxu1 }
 0x979   : > { %v1576_v40 = vpack.c.bf16 %v1546_v48, %v1546_v48 }
 0x97b   : > { %v1629_v43 = vsel %vm610_vm1, %v1576_v40, 0 }
 0x97c   : > { %1638 = vmatpush.bf16.msrb.mxu3 %v1629_v43 }
 0x980   : > { %v6187_v52 = vpop.f32.mrf.mxu1 }
 0x988   : > { %v1551_v57 = vpop.f32.mrf.mxu1 }
 0x989   : > { %v1578_v58 = vpack.c.bf16 %v1551_v57, %v1551_v57 }
 0x98b   : > { %v2039_v25 = vsel %vm610_vm1, %v1578_v58, 0 }
 0x98c   : > { %2048 = vmatpush.bf16.msra.mxu1 %v2039_v25 }
 0x990   : > { %v6190_v59 = vpop.f32.mrf.mxu1 }
 0x998   : > { %v1556_v44 = vpop.f32.mrf.mxu1 }
 0x999   : > { %v1580_v0 = vpack.c.bf16 %v1556_v44, %v1556_v44 }
 0x99b   : > { %1588 = vxpose.xlu0.c.b16.start.end [1/1] (short) %v1580_v0, 128 }
 0x9a0   : > { %v1558_v60 = vpop.f32.mrf.mxu1 }
 0x9a1   : > { %v1581_v46 = vpack.c.bf16 %v1558_v60, %v1558_v60 }
 0x9a8   : > { %v1561_v1 = vpop.f32.mrf.mxu1 }
 0x9a9   : > { %v1582_v26 = vpack.c.bf16 %v1561_v1, %v1561_v1 }
 0x9ab   : > { %5056 = vxpose.binary.xlu1.c.b16.start.end [1/2] (short) %v1582_v26, %v1581_v46, 128 }
 0x9b0   : > { %v1563_v33 = vpop.f32.mrf.mxu1 }
 0x9b1   : > { %v1583_v41 = vpack.c.bf16 %v1563_v33, %v1563_v33 }
 0x9b8   : > { %v6261_v0 = vpop.f32.mrf.mxu1 }
 0xa1b   : > { %2203 = vxpose.xlu0.c.b16.start.end [1/1] (short) %v1583_v41, 128 }
 0xa47   : > { %v1596_v11 = vpop.trf.xlu0 }
 0xa48   : > { %4742 = vmatmul.msk.bf16.vlgmr.msrb.gmra.mxu3 %vm585_vm2, %v1596_v11 }
 0xa57   : > { %v1597_v9 = vpop.trf.xlu0  ;;  %v6203_v14 = vpop.trf.xlu1 }
 0xa58   : > { %4743 = vmatmul.msk.bf16.gmra.mxu3 %vm585_vm2, %v1597_v9  ;;  %v6266_v9 = vpop.f32.mrf.mxu1 }
 0xa5f   : > { %v5058_v36 = vpop.trf.xlu1 }
 0xa60   : > { %4758 = vmatmul.msk.bf16.vlgmr.msra.gmra.mxu1 %vm585_vm2, %v5058_v36  ;;  %v6268_v4 = vpop.f32.mrf.mxu1 }
 0xa67   : > { %v1598_v12 = vpop.trf.xlu0  ;;  %v6216_v32 = vpop.trf.xlu1 }
 0xa68   : > { %4744 = vmatmul.msk.bf16.gmra.mxu3 %vm585_vm2, %v1598_v12 }
 0xa6f   : > { %v5060_v35 = vpop.trf.xlu1 }
 0xa70   : > { %4759 = vmatmul.msk.bf16.gmra.mxu1 %vm585_vm2, %v5060_v35 }
 0xa75   : > { %2426 = vperm.xlu1 %5054, %v4710_v3  }
 0xa77   : > { %v1599_v61 = vpop.trf.xlu0  ;;  %v6224_v15 = vpop.trf.xlu1 }
 0xa78   : > { %4745 = vmatmul.msk.bf16.gmra.mxu3 %vm585_vm2, %v1599_v61 }
 0xa7f   : > { %v5062_v17 = vpop.trf.xlu1 }
 0xa80   : > { %4760 = vmatmul.msk.bf16.gmra.mxu1 %vm585_vm2, %v5062_v17 }
 0xa87   : > { %v1600_v7 = vpop.trf.xlu0  ;;  %v6233_v28 = vpop.trf.xlu1 }
 0xa88   : > { %4746 = vmatmul.msk.bf16.gmra.mxu3 %vm585_vm2, %v1600_v7 }
 0xa8f   : > { %v5064_v34 = vpop.trf.xlu1 }
 0xa90   : > { %4761 = vmatmul.msk.bf16.gmra.mxu1 %vm585_vm2, %v5064_v34 }
 0xa97   : > { %v1601_v8 = vpop.trf.xlu0  ;;  %v6240_v2 = vpop.trf.xlu1 }
 0xa98   : > { %4747 = vmatmul.msk.bf16.gmra.mxu3 %vm585_vm2, %v1601_v8 }
 0xa9f   : > { %v5066_v20 = vpop.trf.xlu1 }
 0xaa0   : > { %4762 = vmatmul.msk.bf16.gmra.mxu1 %vm585_vm2, %v5066_v20 }
 0xaa7   : > { %v1602_v10 = vpop.trf.xlu0  ;;  %v6245_v63 = vpop.trf.xlu1 }
 0xaa8   : > { %4748 = vmatmul.msk.bf16.gmra.mxu3 %vm585_vm2, %v1602_v10 }
 0xaaf   : > { %v5068_v22 = vpop.trf.xlu1 }
 0xab0   : > { %4763 = vmatmul.msk.bf16.gmra.mxu1 %vm585_vm2, %v5068_v22 }
 0xab7   : > { %v1603_v13 = vpop.trf.xlu0  ;;  %v6249_v53 = vpop.trf.xlu1 }
 0xab8   : > { %4749 = vmatmul.msk.bf16.gmra.mxu3 %vm585_vm2, %v1603_v13 }
 0xabf   : > { %v5070_v40 = vpop.trf.xlu1 }
 0xac0   : > { %4764 = vmatmul.msk.bf16.gmra.mxu1 %vm585_vm2, %v5070_v40 }
 0xac7   : > { %v6264_v26 = vpop.trf.xlu1 }
 0xacb   : > { %v6209_v16 = vpop.f32.mrf.mxu3 }
 0xacf   : > { %v5072_v36 = vpop.trf.xlu1 }
 0xad0   : > { %4765 = vmatmul.msk.bf16.gmra.mxu1 %vm585_vm2, %v5072_v36 }
 0xad3   : > { %v6211_v30 = vpop.f32.mrf.mxu3 }
 0xadb   : > { %v6219_v27 = vpop.f32.mrf.mxu3 }
 0xae3   : > { %v6221_v18 = vpop.f32.mrf.mxu3 }
 0xaeb   : > { %v6226_v31 = vpop.f32.mrf.mxu3 }
 0xaec   : > { %v1680_v54 = vmax.f32 %v6209_v16, %v6226_v31 }
 0xaf3   : > { %v6228_v29 = vpop.f32.mrf.mxu3 }
 0xaf4   : > { %v1681_v5 = vmax.f32 %v6211_v30, %v6228_v29 }
 0xafb   : > { %v6231_v6 = vpop.f32.mrf.mxu3 }
 0xafc   : > { %v1682_v55 = vmax.f32 %v6219_v27, %v6231_v6 }
 0xb03   : > { %v6235_v19 = vpop.f32.mrf.mxu3 }
 0xb04   : > { %v1683_v24 = vmax.f32 %v6221_v18, %v6235_v19 }
 0xb0b   : > { %v6238_v37 = vpop.f32.mrf.mxu3 }
 0xb0c   : > { %v1684_v51 = vmax.f32 %v1680_v54, %v6238_v37 }
 0xb13   : > { %v6242_v38 = vpop.f32.mrf.mxu3 }
 0xb14   : > { %v1685_v47 = vmax.f32 %v1681_v5, %v6242_v38  ;;  %v6274_v5 = vpop.f32.mrf.mxu1 }
 0xb1b   : > { %v1665_v39 = vpop.f32.mrf.mxu3 }
 0xb1c   : > { %v1686_v49 = vmax.f32 %v1682_v55, %v1665_v39 }
 0xb23   : > { %v1667_v62 = vpop.f32.mrf.mxu3 }
 0xb24   : > { %v1687_v50 = vmax.f32 %v1683_v24, %v1667_v62 }
 0xb2b   : > { %v1670_v21 = vpop.f32.mrf.mxu3 }
 0xb2c   : > { %v1688_v43 = vmax.f32 %v1684_v51, %v1670_v21 }
 0xb33   : > { %v1672_v23 = vpop.f32.mrf.mxu3 }
 0xb34   : > { %v1689_v56 = vmax.f32 %v1685_v47, %v1672_v23 }
 0xb36   : > { %v1692_v25 = vmax.f32 %v1688_v43, %v1689_v56 }
 0xb3b   : > { %v1675_v42 = vpop.f32.mrf.mxu3 }
 0xb3c   : > { %v1690_v57 = vmax.f32 %v1686_v49, %v1675_v42 }
 0xb43   : > { %v1677_v48 = vpop.f32.mrf.mxu3 }
 0xb44   : > { %v1691_v58 = vmax.f32 %v1687_v50, %v1677_v48 }
 0xb46   : > { %v1693_v44 = vmax.f32 %v1690_v57, %v1691_v58  ;;  %v6295_v58 = vpop.f32.mrf.mxu1 }
 0xb48   : > { %v1694_v60 = vmax.f32 %v1692_v25, %v1693_v44 }
 0xb4a   : > { %v1695_v1 = vrot.slane %v1694_v60, 4 }
 0xb4c   : > { %v1696_v46 = vmax.f32 %v1694_v60, %v1695_v1 }
 0xb4e   : > { %v1697_v11 = vrot.slane %v1696_v46, 2 }
 0xb50   : > { %v1698_v12 = vmax.f32 %v1696_v46, %v1697_v11 }
 0xb52   : > { %v1699_v3 = vrot.slane %v1698_v12, 1 }
 0xb54   : > { %v1700_v61 = vmax.f32 %v1698_v12, %v1699_v3 }
 0xb56   : > { %v1716_v7 = vsub.f32 %v1677_v48, %v1700_v61  ;;  %v1715_v8 = vsub.f32 %v1675_v42, %v1700_v61  ;;  %v1713_v10 = vsub.f32 %v1670_v21, %v1700_v61  ;;  %v1714_v13 = vsub.f32 %v1672_v23, %v1700_v61 }
 0xb57   : > { %v1711_v35 = vsub.f32 %v1665_v39, %v1700_v61  ;;  %v1712_v34 = vsub.f32 %v1667_v62, %v1700_v61  ;;  %v1709_v22 = vsub.f32 %v6238_v37, %v1700_v61  ;;  %v1710_v23 = vsub.f32 %v6242_v38, %v1700_v61 }
 0xb58   : > { %v1747_v33 = vmul.f32 1.442695, %v1716_v7  ;;  %v1745_v41 = vmul.f32 1.442695, %v1715_v8  ;;  %v1741_v45 = vmul.f32 1.442695, %v1713_v10  ;;  %v1707_v42 = vsub.f32 %v6231_v6, %v1700_v61 }
 0xb59   : > { %v1743_v17 = vmul.f32 1.442695, %v1714_v13  ;;  %v1737_v20 = vmul.f32 1.442695, %v1711_v35  ;;  %v1739_v21 = vmul.f32 1.442695, %v1712_v34  ;;  %v1708_v39 = vsub.f32 %v6235_v19, %v1700_v61 }
 0xb5a   : > { %5226 = vpow2.f32 %v1747_v33  ;;  %v1733_v62 = vmul.f32 1.442695, %v1709_v22  ;;  %v1701_v55 = vsub.f32 %v6209_v16, %v1700_v61  ;;  %v1735_v37 = vmul.f32 1.442695, %v1710_v23 }
 0xb5b   : > { %5228 = vpow2.f32 %v1745_v41  ;;  %v1702_v47 = vsub.f32 %v6211_v30, %v1700_v61  ;;  %v1729_v38 = vmul.f32 1.442695, %v1707_v42  ;;  %v1705_v19 = vsub.f32 %v6226_v31, %v1700_v61 }
 0xb5c   : > { %5230 = vpow2.f32 %v1741_v45  ;;  %v1731_v50 = vmul.f32 1.442695, %v1708_v39  ;;  %v1703_v56 = vsub.f32 %v6219_v27, %v1700_v61  ;;  %v1706_v16 = vsub.f32 %v6228_v29, %v1700_v61 }
 0xb5d   : > { %5232 = vpow2.f32 %v1743_v17  ;;  %v1717_v48 = vmul.f32 1.442695, %v1701_v55  ;;  %v1704_v30 = vsub.f32 %v6221_v18, %v1700_v61  ;;  %v1719_v40 = vmul.f32 1.442695, %v1702_v47  ;;  %v6297_v61 = vpop.f32.mrf.mxu1 }
 0xb5e   : > { %5234 = vpow2.f32 %v1737_v20  ;;  %v1725_v31 = vmul.f32 1.442695, %v1705_v19  ;;  %v1721_v27 = vmul.f32 1.442695, %v1703_v56  ;;  %v1727_v44 = vmul.f32 1.442695, %v1706_v16 }
 0xb5f   : > { %5236 = vpow2.f32 %v1739_v21  ;;  %v1723_v29 = vmul.f32 1.442695, %v1704_v30  ;;  %v1577_v42 = vpack.c.bf16 %v6187_v52, %v6187_v52  ;;  %v1584_v47 = vpack.c.bf16 %v6261_v0, %v6261_v0 }
 0xb60   : > { %v6277_v54 = vpop.eup %5226  ;;  %5238 = vpow2.f32 %v1733_v62 }
 0xb61   : > { %v6280_v24 = vpop.eup %5228  ;;  %5240 = vpow2.f32 %v1735_v37 }
 0xb62   : > { %v6283_v51 = vpop.eup %5230  ;;  %v1778_v6 = vpack.c.bf16 %v6277_v54, %v6280_v24  ;;  %5242 = vpow2.f32 %v1729_v38 }
 0xb63   : > { %v6288_v49 = vpop.eup %5232  ;;  %5244 = vpow2.f32 %v1731_v50 }
 0xb64   : > { %1779 = vmatpush.bf16.msrb.mxu0 %v1778_v6  ;;  %v5235_v43 = vpop.eup %5234  ;;  %v1777_v57 = vpack.c.bf16 %v6288_v49, %v6283_v51  ;;  %5246 = vpow2.f32 %v1717_v48  ;;  %v1834_v6 = vsel %vm610_vm1, %v1577_v42, 0 }
 0xb65   : > { %v5237_v25 = vpop.eup %5236  ;;  %5248 = vpow2.f32 %v1719_v40  ;;  %v6299_v20 = vpop.f32.mrf.mxu1 }
 0xb66   : > { %v5239_v60 = vpop.eup %5238  ;;  %v1776_v1 = vpack.c.bf16 %v5237_v25, %v5235_v43  ;;  %5250 = vpow2.f32 %v1725_v31 }
 0xb67   : > { %v5241_v18 = vpop.eup %5240  ;;  %5252 = vpow2.f32 %v1721_v27 }
 0xb68   : > { %1780 = vmatpush.bf16.msrb.mxu0 %v1777_v57  ;;  %v5243_v46 = vpop.eup %5242  ;;  %5254 = vpow2.f32 %v1727_v44  ;;  %v1775_v3 = vpack.c.bf16 %v5241_v18, %v5239_v60 }
 0xb69   : > { %v5245_v11 = vpop.eup %5244  ;;  %5256 = vpow2.f32 %v1723_v29 }
 0xb6a   : > { %v5247_v12 = vpop.eup %5246  ;;  %v1774_v33 = vpack.c.bf16 %v5245_v11, %v5243_v46 }
 0xb6b   : > { %v5249_v7 = vpop.eup %5248 }
 0xb6c   : > { %1781 = vmatpush.bf16.msrb.mxu0 %v1776_v1  ;;  %v5251_v8 = vpop.eup %5250  ;;  %v1749_v10 = vadd.f32 %v5249_v7, %v5247_v12  ;;  %v1771_v62 = vpack.c.bf16 %v5249_v7, %v5247_v12 }
 0xb6d   : > { %v5253_v13 = vpop.eup %5252  ;;  %v6303_v55 = vpop.f32.mrf.mxu1 }
 0xb6e   : > { %v5255_v36 = vpop.eup %5254  ;;  %v1750_v41 = vadd.f32 %v5253_v13, %v1749_v10 }
 0xb6f   : > { %v5257_v45 = vpop.eup %5256  ;;  %v1773_v17 = vpack.c.bf16 %v5255_v36, %v5251_v8 }
 0xb70   : > { %1782 = vmatpush.bf16.msrb.mxu0 %v1775_v3  ;;  %v1751_v35 = vadd.f32 %v5257_v45, %v1750_v41  ;;  %v1772_v21 = vpack.c.bf16 %v5257_v45, %v5253_v13 }
 0xb72   : > { %v1752_v34 = vadd.f32 %v5251_v8, %v1751_v35 }
 0xb74   : > { %1783 = vmatpush.bf16.msrb.mxu0 %v1774_v33  ;;  %v1753_v22 = vadd.f32 %v5255_v36, %v1752_v34 }
 0xb75   : > { %v6308_v56 = vpop.f32.mrf.mxu1 }
 0xb76   : > { %v1754_v23 = vadd.f32 %v5243_v46, %v1753_v22 }
 0xb78   : > { %1784 = vmatpush.bf16.msrb.mxu0 %v1773_v17  ;;  %v1755_v39 = vadd.f32 %v5245_v11, %v1754_v23 }
 0xb7a   : > { %v1756_v37 = vadd.f32 %v5239_v60, %v1755_v39 }
 0xb7c   : > { %1785 = vmatpush.bf16.msrb.mxu0 %v1772_v21  ;;  %v1757_v38 = vadd.f32 %v5241_v18, %v1756_v37 }
 0xb7d   : > { %v6314_v40 = vpop.f32.mrf.mxu1 }
 0xb7e   : > { %v1758_v19 = vadd.f32 %v5235_v43, %v1757_v38  ;;  %v2091_v31 = vmax.f32 %v6297_v61, %v6314_v40 }
 0xb80   : > { %1786 = vmatpush.bf16.msrb.mxu0 %v1771_v62  ;;  %v1759_v50 = vadd.f32 %v5237_v25, %v1758_v19 }
 0xb82   : > { %v1760_v52 = vadd.f32 %v6283_v51, %v1759_v50 }
 0xb83   : > { %1787 = vmatmul.bf16.vlgmr.msrb.gmra.mxu0 %v1584_v47 }
 0xb84   : > { %1843 = vmatpush.bf16.msra.mxu0 %v1834_v6  ;;  %v1761_v16 = vadd.f32 %v6288_v49, %v1760_v52 }
 0xb85   : > { %v6318_v0 = vpop.f32.mrf.mxu1 }
 0xb86   : > { %v1762_v48 = vadd.f32 %v6280_v24, %v1761_v16 }
 0xb88   : > { %v1763_v30 = vadd.f32 %v6277_v54, %v1762_v48 }
 0xb8a   : > { %v1764_v7 = vrot.slane %v1763_v30, 4 }
 0xb8c   : > { %v1765_v13 = vadd.f32 %v1764_v7, %v1763_v30 }
 0xb8d   : > { %v6320_v43 = vpop.f32.mrf.mxu1 }
 0xb8e   : > { %v1766_v41 = vrot.slane %v1765_v13, 2 }
 0xb90   : > { %v1767_v35 = vadd.f32 %v1766_v41, %v1765_v13 }
 0xb92   : > { %v1768_v34 = vrot.slane %v1767_v35, 1 }
 0xb93   : > { %4750 = vmatmul.msk.bf16.vlgmr.msra.gmra.mxu0 %vm585_vm2, %v6203_v14 }
 0xb94   : > { %v1769_v21 = vadd.f32 %v1768_v34, %v1767_v35 }
 0xb95   : > { %v6324_v57 = vpop.f32.mrf.mxu1 }
 0xb96   : > { %5258 = vrcp.f32 %v1769_v21 }
 0xb9d   : > { %v6326_v51 = vpop.f32.mrf.mxu1 }
 0xb9e   : > { %v2095_v44 = vmax.f32 %v2091_v31, %v6326_v51 }
 0xba3   : > { %4751 = vmatmul.msk.bf16.gmra.mxu0 %vm585_vm2, %v6216_v32  ;;  %v2090_v32 = vmax.f32 %v6295_v58, %v6308_v56 }
 0xba5   : > { %v6330_v54 = vpop.f32.mrf.mxu1  ;;  %v2094_v27 = vmax.f32 %v2090_v32, %v6324_v57 }
 0xbad   : > { %v6332_v24 = vpop.f32.mrf.mxu1 }
 0xbb3   : > { %4752 = vmatmul.msk.bf16.gmra.mxu0 %vm585_vm2, %v6224_v15  ;;  %v2092_v15 = vmax.f32 %v6299_v20, %v6318_v0 }
 0xbb5   : > { %v6336_v14 = vpop.f32.mrf.mxu1  ;;  %v2096_v29 = vmax.f32 %v2092_v15, %v6330_v54 }
 0xbb6   : > { %v2098_v1 = vmax.f32 %v2094_v27, %v6336_v14 }
 0xbbd   : > { %v6338_v49 = vpop.f32.mrf.mxu1 }
 0xbc3   : > { %4753 = vmatmul.msk.bf16.gmra.mxu0 %vm585_vm2, %v6233_v28  ;;  %v2093_v28 = vmax.f32 %v6303_v55, %v6320_v43 }
 0xbc5   : > { %v6348_v25 = vpop.f32.mrf.mxu1  ;;  %v2097_v60 = vmax.f32 %v2093_v28, %v6332_v24 }
 0xbc6   : > { %v2100_v18 = vmax.f32 %v2096_v29, %v6348_v25 }
 0xbcd   : > { %v6359_v46 = vpop.f32.mrf.mxu1 }
 0xbce   : > { %v2101_v12 = vmax.f32 %v2097_v60, %v6359_v46 }
 0xbd0   : > { %v2103_v3 = vmax.f32 %v2100_v18, %v2101_v12 }
 0xbd3   : > { %4754 = vmatmul.msk.bf16.gmra.mxu0 %vm585_vm2, %v6240_v2  ;;  %v2099_v2 = vmax.f32 %v2095_v44, %v6338_v49 }
 0xbd5   : > { %v2102_v11 = vmax.f32 %v2098_v1, %v2099_v2 }
 0xbd7   : > { %v2104_v8 = vmax.f32 %v2102_v11, %v2103_v3 }
 0xbd9   : > { %v2105_v10 = vrot.slane %v2104_v8, 4 }
 0xbdb   : > { %v2106_v36 = vmax.f32 %v2104_v8, %v2105_v10 }
 0xbdd   : > { %v2107_v33 = vrot.slane %v2106_v36, 2 }
 0xbdf   : > { %v2108_v45 = vmax.f32 %v2106_v36, %v2107_v33 }
 0xbe1   : > { %v2109_v17 = vrot.slane %v2108_v45, 1 }
 0xbe3   : > { %4755 = vmatmul.msk.bf16.gmra.mxu0 %vm585_vm2, %v6245_v63  ;;  %v6364_v22 = vmax.f32 %v2108_v45, %v2109_v17 }
 0xbe5   : > { %v2111_v23 = vsub.f32 %v6295_v58, %v6364_v22  ;;  %v2112_v63 = vsub.f32 %v6297_v61, %v6364_v22  ;;  %v2113_v42 = vsub.f32 %v6299_v20, %v6364_v22  ;;  %v2114_v37 = vsub.f32 %v6303_v55, %v6364_v22  ;;  %v5259_v20 = vpop.eup %5258 }
 0xbe6   : > { %v2116_v61 = vsub.f32 %v6314_v40, %v6364_v22  ;;  %v2117_v55 = vsub.f32 %v6318_v0, %v6364_v22  ;;  %v2118_v48 = vsub.f32 %v6320_v43, %v6364_v22  ;;  %v2119_v32 = vsub.f32 %v6324_v57, %v6364_v22 }
 0xbe7   : > { %v2127_v39 = vmul.f32 1.442695, %v2111_v23  ;;  %v2129_v62 = vmul.f32 1.442695, %v2112_v63  ;;  %v2131_v47 = vmul.f32 1.442695, %v2113_v42  ;;  %v2120_v43 = vsub.f32 %v6326_v51, %v6364_v22 }
 0xbe8   : > { %v2133_v58 = vmul.f32 1.442695, %v2114_v37  ;;  %v2137_v50 = vmul.f32 1.442695, %v2116_v61  ;;  %v2139_v30 = vmul.f32 1.442695, %v2117_v55  ;;  %v2121_v60 = vsub.f32 %v6330_v54, %v6364_v22 }
 0xbe9   : > { %5260 = vpow2.f32 %v2127_v39  ;;  %v2141_v31 = vmul.f32 1.442695, %v2118_v48  ;;  %v2143_v27 = vmul.f32 1.442695, %v2119_v32  ;;  %v2145_v57 = vmul.f32 1.442695, %v2120_v43 }
 0xbea   : > { %5262 = vpow2.f32 %v2129_v62  ;;  %v2122_v18 = vsub.f32 %v6332_v24, %v6364_v22  ;;  %v2147_v51 = vmul.f32 1.442695, %v2121_v60  ;;  %v2123_v3 = vsub.f32 %v6336_v14, %v6364_v22 }
 0xbeb   : > { %5264 = vpow2.f32 %v2131_v47  ;;  %v2126_v8 = vsub.f32 %v6359_v46, %v6364_v22  ;;  %v2124_v24 = vsub.f32 %v6338_v49, %v6364_v22  ;;  %v2125_v14 = vsub.f32 %v6348_v25, %v6364_v22 }
 0xbec   : > { %5266 = vpow2.f32 %v2133_v58  ;;  %v2149_v54 = vmul.f32 1.442695, %v2122_v18  ;;  %v2151_v13 = vmul.f32 1.442695, %v2123_v3 }
 0xbed   : > { %v2153_v45 = vmul.f32 1.442695, %v2124_v24  ;;  %v2157_v35 = vmul.f32 1.442695, %v2126_v8  ;;  %v2155_v34 = vmul.f32 1.442695, %v2125_v14 }
 0xbef   : > { %v6380_v38 = vpop.eup %5260 }
 0xbf0   : > { %v6384_v52 = vpop.eup %5262 }
 0xbf1   : > { %v2159_v40 = vadd.f32 %v6384_v52, %v6380_v38 }
 0xbf3   : > { %4756 = vmatmul.msk.bf16.gmra.mxu0 %vm585_vm2, %v6249_v53  ;;  %v2115_v53 = vsub.f32 %v6308_v56, %v6364_v22  ;;  %v6388_v56 = vpop.eup %5264 }
 0xbf4   : > { %v6396_v0 = vpop.eup %5266  ;;  %v2160_v15 = vadd.f32 %v6388_v56, %v2159_v40 }
 0xbf5   : > { %v2135_v6 = vmul.f32 1.442695, %v2115_v53 }
 0xbf6   : > { %v2161_v44 = vadd.f32 %v6396_v0, %v2160_v15 }
 0xbf7   : > { %5268 = vpow2.f32 %v2135_v6 }
 0xbf8   : > { %5270 = vpow2.f32 %v2137_v50 }
 0xbf9   : > { %5272 = vpow2.f32 %v2139_v30 }
 0xbfa   : > { %5274 = vpow2.f32 %v2141_v31 }
 0xbfb   : > { %5276 = vpow2.f32 %v2143_v27 }
 0xbfc   : > { %5278 = vpow2.f32 %v2145_v57 }
 0xbfd   : > { %v6401_v28 = vpop.eup %5268  ;;  %5280 = vpow2.f32 %v2147_v51 }
 0xbfe   : > { %v6406_v29 = vpop.eup %5270  ;;  %v2162_v1 = vadd.f32 %v6401_v28, %v2161_v44  ;;  %5282 = vpow2.f32 %v2149_v54 }
 0xbff   : > { %v6411_v2 = vpop.eup %5272  ;;  %5284 = vpow2.f32 %v2151_v13 }
 0xc00   : > { %v1788_v19 = vpop.f32.mrf.mxu0  ;;  %v2163_v11 = vadd.f32 %v6406_v29, %v2162_v1  ;;  %v6416_v12 = vpop.eup %5274  ;;  %5286 = vpow2.f32 %v2153_v45 }
 0xc01   : > { %v6386_v16 = vmul.f32 %v5259_v20, %v1788_v19  ;;  %v6423_v10 = vpop.eup %5276  ;;  %5288 = vpow2.f32 %v2155_v34 }
 0xc02   : > { %v2164_v7 = vadd.f32 %v6411_v2, %v2163_v11  ;;  %v6428_v33 = vpop.eup %5278  ;;  %5290 = vpow2.f32 %v2157_v35 }
 0xc03   : > { %4757 = vmatmul.msk.bf16.gmra.mxu0 %vm585_vm2, %v6264_v26  ;;  %v6435_v17 = vpop.eup %5280 }
 0xc04   : > { %v2165_v36 = vadd.f32 %v6416_v12, %v2164_v7  ;;  %v6438_v21 = vpop.eup %5282 }
 0xc05   : > { %v6441_v63 = vpop.eup %5284 }
 0xc06   : > { %v2166_v46 = vadd.f32 %v6423_v10, %v2165_v36  ;;  %v6444_v22 = vpop.eup %5286 }
 0xc07   : > { %v6449_v62 = vpop.eup %5288 }
 0xc08   : > { %v1790_v26 = vpop.f32.mrf.mxu0  ;;  %v2167_v49 = vadd.f32 %v6428_v33, %v2166_v46  ;;  %v6452_v47 = vpop.eup %5290 }
 0xc0a   : > { %v2168_v23 = vadd.f32 %v6435_v17, %v2167_v49 }
 0xc0c   : > { %v2169_v25 = vadd.f32 %v6438_v21, %v2168_v23 }
 0xc0e   : > { %v2170_v39 = vadd.f32 %v6441_v63, %v2169_v25 }
 0xc10   : > { %v6430_v41 = vpop.f32.mrf.mxu0  ;;  %v2171_v37 = vadd.f32 %v6444_v22, %v2170_v39 }
 0xc12   : > { %v2172_v53 = vadd.f32 %v6449_v62, %v2171_v37 }
 0xc14   : > { %v6456_v58 = vadd.f32 %v6452_v47, %v2172_v53 }
 0xc18   : > { %v6446_v42 = vpop.f32.mrf.mxu0 }
 0xc20   : > { %v6458_v61 = vpop.f32.mrf.mxu0 }
 0xc28   : > { %v6460_v6 = vpop.f32.mrf.mxu0 }
 0xc30   : > { %v6462_v20 = vpop.f32.mrf.mxu0 }
 0xc31   : > { %v1885_v44 = vmax.f32 %v6430_v41, %v6462_v20 }
 0xc38   : > { %v6464_v19 = vpop.f32.mrf.mxu0 }
 0xc39   : > { %v1886_v27 = vmax.f32 %v6446_v42, %v6464_v19 }
 0xc40   : > { %v1860_v55 = vpop.f32.mrf.mxu0 }
 0xc41   : > { %v1887_v26 = vmax.f32 %v6458_v61, %v1860_v55 }
 0xc48   : > { %v6466_v50 = vpop.f32.mrf.mxu0 }
 0xc49   : > { %v1888_v60 = vmax.f32 %v6460_v6, %v6466_v50 }
 0xc50   : > { %v1865_v48 = vpop.f32.mrf.mxu0 }
 0xc51   : > { %v1889_v1 = vmax.f32 %v1885_v44, %v1865_v48 }
 0xc58   : > { %v1867_v30 = vpop.f32.mrf.mxu0 }
 0xc59   : > { %v1890_v57 = vmax.f32 %v1886_v27, %v1867_v30 }
 0xc60   : > { %v1870_v40 = vpop.f32.mrf.mxu0 }
 0xc61   : > { %v1891_v18 = vmax.f32 %v1887_v26, %v1870_v40 }
 0xc68   : > { %v1872_v32 = vpop.f32.mrf.mxu0 }
 0xc69   : > { %v1892_v51 = vmax.f32 %v1888_v60, %v1872_v32 }
 0xc70   : > { %v1875_v31 = vpop.f32.mrf.mxu0 }
 0xc71   : > { %v1893_v54 = vmax.f32 %v1889_v1, %v1875_v31 }
 0xc78   : > { %v1877_v15 = vpop.f32.mrf.mxu0 }
 0xc79   : > { %v1894_v11 = vmax.f32 %v1890_v57, %v1877_v15 }
 0xc7b   : > { %v1897_v24 = vmax.f32 %v1893_v54, %v1894_v11 }
 0xc80   : > { %v1880_v43 = vpop.f32.mrf.mxu0 }
 0xc81   : > { %v1895_v7 = vmax.f32 %v1891_v18, %v1880_v43 }
 0xc88   : > { %v1882_v3 = vpop.f32.mrf.mxu0 }
 0xc89   : > { %v1896_v8 = vmax.f32 %v1892_v51, %v1882_v3 }
 0xc8b   : > { %v1898_v13 = vmax.f32 %v1895_v7, %v1896_v8 }
 0xc8d   : > { %v1899_v36 = vmax.f32 %v1897_v24, %v1898_v13 }
 0xc8f   : > { %v1900_v14 = vrot.slane %v1899_v36, 4 }
 0xc91   : > { %v1901_v45 = vmax.f32 %v1899_v36, %v1900_v14 }
 0xc93   : > { %v1902_v46 = vrot.slane %v1901_v45, 2 }
 0xc95   : > { %v1903_v35 = vmax.f32 %v1901_v45, %v1902_v46 }
 0xc97   : > { %v1904_v34 = vrot.slane %v1903_v35, 1 }
 0xc99   : > { %v1905_v49 = vmax.f32 %v1903_v35, %v1904_v34 }
 0xc9b   : > { %v1921_v23 = vsub.f32 %v1882_v3, %v1905_v49  ;;  %v1920_v25 = vsub.f32 %v1880_v43, %v1905_v49  ;;  %v1918_v39 = vsub.f32 %v1875_v31, %v1905_v49  ;;  %v1919_v37 = vsub.f32 %v1877_v15, %v1905_v49 }
 0xc9c   : > { %v1916_v26 = vsub.f32 %v1870_v40, %v1905_v49  ;;  %v1917_v57 = vsub.f32 %v1872_v32, %v1905_v49  ;;  %v1914_v18 = vsub.f32 %v1865_v48, %v1905_v49  ;;  %v1915_v11 = vsub.f32 %v1867_v30, %v1905_v49 }
 0xc9d   : > { %v1952_v53 = vmul.f32 1.442695, %v1921_v23  ;;  %v1950_v27 = vmul.f32 1.442695, %v1920_v25  ;;  %v1946_v44 = vmul.f32 1.442695, %v1918_v39  ;;  %v1912_v54 = vsub.f32 %v1860_v55, %v1905_v49 }
 0xc9e   : > { %v1948_v60 = vmul.f32 1.442695, %v1919_v37  ;;  %v1942_v1 = vmul.f32 1.442695, %v1916_v26  ;;  %v1944_v51 = vmul.f32 1.442695, %v1917_v57  ;;  %v1913_v3 = vsub.f32 %v6466_v50, %v1905_v49 }
 0xc9f   : > { %5292 = vpow2.f32 %v1952_v53  ;;  %v1938_v31 = vmul.f32 1.442695, %v1914_v18  ;;  %v1906_v15 = vsub.f32 %v6430_v41, %v1905_v49  ;;  %v1940_v32 = vmul.f32 1.442695, %v1915_v11 }
 0xca0   : > { %5294 = vpow2.f32 %v1950_v27  ;;  %v1907_v7 = vsub.f32 %v6446_v42, %v1905_v49  ;;  %v1934_v55 = vmul.f32 1.442695, %v1912_v54  ;;  %v1910_v50 = vsub.f32 %v6462_v20, %v1905_v49 }
 0xca1   : > { %5296 = vpow2.f32 %v1946_v44  ;;  %v1936_v24 = vmul.f32 1.442695, %v1913_v3  ;;  %v1908_v13 = vsub.f32 %v6458_v61, %v1905_v49  ;;  %v1911_v41 = vsub.f32 %v6464_v19, %v1905_v49 }
 0xca2   : > { %5298 = vpow2.f32 %v1948_v60  ;;  %v1922_v36 = vmul.f32 1.442695, %v1906_v15  ;;  %v1909_v42 = vsub.f32 %v6460_v6, %v1905_v49  ;;  %v1924_v14 = vmul.f32 1.442695, %v1907_v7 }
 0xca3   : > { %5300 = vpow2.f32 %v1942_v1  ;;  %v1930_v20 = vmul.f32 1.442695, %v1910_v50  ;;  %v1926_v34 = vmul.f32 1.442695, %v1908_v13  ;;  %v1932_v61 = vmul.f32 1.442695, %v1911_v41 }
 0xca4   : > { %5302 = vpow2.f32 %v1944_v51  ;;  %v1928_v23 = vmul.f32 1.442695, %v1909_v42  ;;  %v2188_v50 = vpack.c.bf16 %v6452_v47, %v6449_v62  ;;  %v1585_v13 = vpack.c.bf16 %v6266_v9, %v6266_v9 }
 0xca5   : > { %v6476_v43 = vpop.eup %5292  ;;  %5304 = vpow2.f32 %v1938_v31  ;;  %v2185_v9 = vpack.c.bf16 %v6428_v33, %v6423_v10  ;;  %v2181_v10 = vpack.c.bf16 %v6384_v52, %v6380_v38 }
 0xca6   : > { %v6479_v40 = vpop.eup %5294  ;;  %5306 = vpow2.f32 %v1940_v32 }
 0xca7   : > { %v6482_v8 = vpop.eup %5296  ;;  %v1983_v48 = vpack.c.bf16 %v6476_v43, %v6479_v40  ;;  %5308 = vpow2.f32 %v1934_v55 }
 0xca8   : > { %v6487_v30 = vpop.eup %5298  ;;  %5310 = vpow2.f32 %v1936_v24 }
 0xca9   : > { %1984 = vmatpush.bf16.msrb.mxu2 %v1983_v48  ;;  %v5301_v45 = vpop.eup %5300  ;;  %v1982_v46 = vpack.c.bf16 %v6487_v30, %v6482_v8  ;;  %5312 = vpow2.f32 %v1922_v36  ;;  %v2187_v36 = vpack.c.bf16 %v6444_v22, %v6441_v63  ;;  %v2184_v63 = vpack.c.bf16 %v6416_v12, %v6411_v2 }
 0xcaa   : > { %v5303_v35 = vpop.eup %5302  ;;  %5314 = vpow2.f32 %v1924_v14  ;;  %v2183_v22 = vpack.c.bf16 %v6406_v29, %v6401_v28  ;;  %v1586_v2 = vpack.c.bf16 %v6268_v4, %v6268_v4  ;;  %v2211_v28 = vpop.trf.xlu0 }
 0xcab   : > { %v5305_v19 = vpop.eup %5304  ;;  %v1981_v25 = vpack.c.bf16 %v5303_v35, %v5301_v45  ;;  %5316 = vpow2.f32 %v1930_v20 }
 0xcac   : > { %v5307_v39 = vpop.eup %5306  ;;  %5318 = vpow2.f32 %v1926_v34 }
 0xcad   : > { %1985 = vmatpush.bf16.msrb.mxu2 %v1982_v46  ;;  %v5309_v6 = vpop.eup %5308  ;;  %5320 = vpow2.f32 %v1932_v61  ;;  %v1980_v53 = vpack.c.bf16 %v5307_v39, %v5305_v19  ;;  %v2186_v46 = vpack.c.bf16 %v6438_v21, %v6435_v17  ;;  %v2182_v17 = vpack.c.bf16 %v6396_v0, %v6388_v56  ;;  %v6529_v61 = vld [vmem:[%s6161_s26] sm:$0xff] }
 0xcae   : > { %v5311_v49 = vpop.eup %5310  ;;  %5322 = vpow2.f32 %v1928_v23  ;;  %v1579_v21 = vpack.c.bf16 %v6190_v59, %v6190_v59  ;;  %v2408_v23 = vsub.f32 %v6386_v16, %v6529_v61 }
 0xcaf   : > { %v5313_v37 = vpop.eup %5312  ;;  %v1979_v1 = vpack.c.bf16 %v5311_v49, %v5309_v6 }
 0xcb0   : > { %v5315_v27 = vpop.eup %5314  ;;  %v2244_v33 = vsel %vm610_vm1, %v1579_v21, 0 }
 0xcb1   : > { %1986 = vmatpush.bf16.msrb.mxu2 %v1981_v25  ;;  %v5317_v44 = vpop.eup %5316  ;;  %v1954_v26 = vadd.f32 %v5315_v27, %v5313_v37  ;;  %v1976_v48 = vpack.c.bf16 %v5315_v27, %v5313_v37 }
 0xcb2   : > { %v5319_v60 = vpop.eup %5318  ;;  %v2212_v29 = vpop.trf.xlu0 }
 0xcb3   : > { %v5321_v57 = vpop.eup %5320  ;;  %v1955_v18 = vadd.f32 %v5319_v60, %v1954_v26 }
 0xcb4   : > { %v5323_v51 = vpop.eup %5322  ;;  %v1978_v54 = vpack.c.bf16 %v5321_v57, %v5317_v44 }
 0xcb5   : > { %1987 = vmatpush.bf16.msrb.mxu2 %v1980_v53  ;;  %v1956_v11 = vadd.f32 %v5323_v51, %v1955_v18  ;;  %v1977_v15 = vpack.c.bf16 %v5323_v51, %v5319_v60 }
 0xcb7   : > { %v1957_v3 = vadd.f32 %v5317_v44, %v1956_v11 }
 0xcb9   : > { %1988 = vmatpush.bf16.msrb.mxu2 %v1979_v1  ;;  %v1958_v31 = vadd.f32 %v5321_v57, %v1957_v3 }
 0xcba   : > { %v2213_v56 = vpop.trf.xlu0 }
 0xcbb   : > { %v1959_v32 = vadd.f32 %v5309_v6, %v1958_v31 }
 0xcbd   : > { %1989 = vmatpush.bf16.msrb.mxu2 %v1978_v54  ;;  %v1960_v7 = vadd.f32 %v5311_v49, %v1959_v32 }
 0xcbf   : > { %v1961_v55 = vadd.f32 %v5305_v19, %v1960_v7  ;;  %v6534_v19 = vld [vmem:[%s6161_s26 + $0x8] sm:$0xff] }
 0xcc1   : > { %1990 = vmatpush.bf16.msrb.mxu2 %v1977_v15  ;;  %v1962_v24 = vadd.f32 %v5307_v39, %v1961_v55 }
 0xcc2   : > { %v2214_v59 = vpop.trf.xlu0 }
 0xcc3   : > { %v1963_v41 = vadd.f32 %v5301_v45, %v1962_v24 }
 0xcc5   : > { %1991 = vmatpush.bf16.msrb.mxu2 %v1976_v48  ;;  %v1964_v42 = vadd.f32 %v5303_v35, %v1963_v41 }
 0xcc7   : > { %v1965_v14 = vadd.f32 %v6482_v8, %v1964_v42 }
 0xcc8   : > { %1992 = vmatmul.bf16.vlgmr.msrb.gmra.mxu2 %v1585_v13 }
 0xcc9   : > { %2189 = vmatpush.bf16.msra.mxu2 %v2188_v50  ;;  %v1966_v62 = vadd.f32 %v6487_v30, %v1965_v14  ;;  %v2174_v30 = vrot.slane %v6456_v58, 4 }
 0xcca   : > { %v2215_v0 = vpop.trf.xlu0 }
 0xccb   : > { %v1967_v47 = vadd.f32 %v6479_v40, %v1966_v62  ;;  %v2175_v39 = vadd.f32 %v2174_v30, %v6456_v58 }
 0xccd   : > { %2190 = vmatpush.bf16.msra.mxu2 %v2187_v36  ;;  %v1968_v45 = vadd.f32 %v6476_v43, %v1967_v47  ;;  %v2176_v37 = vrot.slane %v2175_v39, 2 }
 0xccf   : > { %v1969_v38 = vrot.slane %v1968_v45, 4  ;;  %v2177_v27 = vadd.f32 %v2176_v37, %v2175_v39 }
 0xcd1   : > { %2191 = vmatpush.bf16.msra.mxu2 %v2186_v46  ;;  %v1970_v52 = vadd.f32 %v1969_v38, %v1968_v45  ;;  %v2178_v44 = vrot.slane %v2177_v27, 1 }
 0xcd2   : > { %v2216_v8 = vpop.trf.xlu0 }
 0xcd3   : > { %v1971_v4 = vrot.slane %v1970_v52, 2  ;;  %v2179_v26 = vadd.f32 %v2178_v44, %v2177_v27 }
 0xcd5   : > { %2192 = vmatpush.bf16.msra.mxu2 %v2185_v9  ;;  %v1972_v12 = vadd.f32 %v1971_v4, %v1970_v52 }
 0xcd7   : > { %v1973_v43 = vrot.slane %v1972_v12, 1 }
 0xcd9   : > { %2193 = vmatpush.bf16.msra.mxu2 %v2184_v63  ;;  %v1974_v40 = vadd.f32 %v1973_v43, %v1972_v12 }
 0xcda   : > { %v2217_v49 = vpop.trf.xlu0 }
 0xcdb   : > { %5324 = vrcp.f32 %v1974_v40 }
 0xcdc   : > { %5326 = vrcp.f32 %v2179_v26 }
 0xcdd   : > { %2194 = vmatpush.bf16.msra.mxu2 %v2183_v22 }
 0xce1   : > { %2195 = vmatpush.bf16.msra.mxu2 %v2182_v17  ;;  %v5325_v20 = vpop.eup %5324 }
 0xce2   : > { %v2218_v60 = vpop.trf.xlu0  ;;  %v5327_v16 = vpop.eup %5326 }
 0xce5   : > { %2196 = vmatpush.bf16.msra.mxu2 %v2181_v10 }
 0xce8   : > { %2197 = vmatmul.bf16.vlgmr.msra.gmra.mxu2 %v1586_v2 }
 0xce9   : > { %2253 = vmatpush.bf16.msrb.mxu2 %v2244_v33 }
 0xcf8   : > { %4766 = vmatmul.msk.bf16.vlgmr.msrb.gmra.mxu2 %vm585_vm2, %v2211_v28 }
 0xd08   : > { %4767 = vmatmul.msk.bf16.gmra.mxu2 %vm585_vm2, %v2212_v29 }
 0xd18   : > { %4768 = vmatmul.msk.bf16.gmra.mxu2 %vm585_vm2, %v2213_v56 }
 0xd28   : > { %4769 = vmatmul.msk.bf16.gmra.mxu2 %vm585_vm2, %v2214_v59 }
 0xd38   : > { %4770 = vmatmul.msk.bf16.gmra.mxu2 %vm585_vm2, %v2215_v0 }
 0xd48   : > { %4771 = vmatmul.msk.bf16.gmra.mxu2 %vm585_vm2, %v2216_v8 }
 0xd4b   : > { %v1993_v35 = vpop.f32.mrf.mxu2 }
 0xd4c   : > { %v1997_v34 = vmul.f32 %v5325_v20, %v1993_v35 }
 0xd4e   : > { %v2409_v25 = vsub.f32 %v1997_v34, %v6534_v19 }
 0xd50   : > { %v6538_v6 = vpack.c.bf16 %v2409_v25, %v2408_v23 }
 0xd53   : > { %v1995_v53 = vpop.f32.mrf.mxu2 }
 0xd58   : > { %4772 = vmatmul.msk.bf16.gmra.mxu2 %vm585_vm2, %v2217_v49 }
 0xd68   : > { %4773 = vmatmul.msk.bf16.gmra.mxu2 %vm585_vm2, %v2218_v60 }
 0xd6b   : > { %v2198_v57 = vpop.f32.mrf.mxu2 }
 0xd6c   : > { %v6542_v1 = vmul.f32 %v5327_v16, %v2198_v57 }
 0xd73   : > { %v2200_v18 = vpop.f32.mrf.mxu2 }
 0xd7b   : > { %v6544_v58 = vpop.f32.mrf.mxu2 }
 0xd83   : > { %v6546_v51 = vpop.f32.mrf.mxu2 }
 0xd8b   : > { %v6548_v11 = vpop.f32.mrf.mxu2 }
 0xd93   : > { %v6550_v54 = vpop.f32.mrf.mxu2 }
 0xd9b   : > { %v6552_v3 = vpop.f32.mrf.mxu2 }
 0xd9c   : > { %v2295_v42 = vmax.f32 %v6544_v58, %v6552_v3 }
 0xda3   : > { %v6554_v31 = vpop.f32.mrf.mxu2 }
 0xda4   : > { %v2296_v36 = vmax.f32 %v6546_v51, %v6554_v31 }
 0xdab   : > { %v2270_v15 = vpop.f32.mrf.mxu2 }
 0xdac   : > { %v2297_v14 = vmax.f32 %v6548_v11, %v2270_v15 }
 0xdb3   : > { %v6556_v32 = vpop.f32.mrf.mxu2 }
 0xdb4   : > { %v2298_v46 = vmax.f32 %v6550_v54, %v6556_v32 }
 0xdbb   : > { %v2275_v7 = vpop.f32.mrf.mxu2 }
 0xdbc   : > { %v2299_v47 = vmax.f32 %v2295_v42, %v2275_v7 }
 0xdc3   : > { %v2277_v48 = vpop.f32.mrf.mxu2 }
 0xdc4   : > { %v2300_v62 = vmax.f32 %v2296_v36, %v2277_v48 }
 0xdcb   : > { %v2280_v55 = vpop.f32.mrf.mxu2 }
 0xdcc   : > { %v2301_v9 = vmax.f32 %v2297_v14, %v2280_v55 }
 0xdd3   : > { %v2282_v50 = vpop.f32.mrf.mxu2 }
 0xdd4   : > { %v2302_v45 = vmax.f32 %v2298_v46, %v2282_v50 }
 0xddb   : > { %v2285_v24 = vpop.f32.mrf.mxu2 }
 0xddc   : > { %v2303_v17 = vmax.f32 %v2299_v47, %v2285_v24 }
 0xde3   : > { %v2287_v13 = vpop.f32.mrf.mxu2 }
 0xde4   : > { %v2304_v63 = vmax.f32 %v2300_v62, %v2287_v13 }
 0xde6   : > { %v2307_v33 = vmax.f32 %v2303_v17, %v2304_v63 }
 0xdeb   : > { %v2290_v41 = vpop.f32.mrf.mxu2 }
 0xdec   : > { %v2305_v21 = vmax.f32 %v2301_v9, %v2290_v41 }
 0xdf3   : > { %v2292_v22 = vpop.f32.mrf.mxu2 }
 0xdf4   : > { %v2306_v10 = vmax.f32 %v2302_v45, %v2292_v22 }
 0xdf6   : > { %v2308_v2 = vmax.f32 %v2305_v21, %v2306_v10 }
 0xdf8   : > { %v2309_v28 = vmax.f32 %v2307_v33, %v2308_v2 }
 0xdfa   : > { %v2310_v29 = vrot.slane %v2309_v28, 4 }
 0xdfc   : > { %v2311_v56 = vmax.f32 %v2309_v28, %v2310_v29 }
 0xdfe   : > { %v2312_v59 = vrot.slane %v2311_v56, 2 }
 0xe00   : > { %v2313_v38 = vmax.f32 %v2311_v56, %v2312_v59 }
 0xe02   : > { %v2314_v52 = vrot.slane %v2313_v38, 1 }
 0xe04   : > { %v2315_v0 = vmax.f32 %v2313_v38, %v2314_v52 }
 0xe06   : > { %v2331_v4 = vsub.f32 %v2292_v22, %v2315_v0  ;;  %v2330_v12 = vsub.f32 %v2290_v41, %v2315_v0  ;;  %v2328_v43 = vsub.f32 %v2285_v24, %v2315_v0  ;;  %v2329_v40 = vsub.f32 %v2287_v13, %v2315_v0 }
 0xe07   : > { %v2326_v35 = vsub.f32 %v2280_v55, %v2315_v0  ;;  %v2327_v23 = vsub.f32 %v2282_v50, %v2315_v0  ;;  %v2324_v39 = vsub.f32 %v2275_v7, %v2315_v0  ;;  %v2325_v37 = vsub.f32 %v2277_v48, %v2315_v0 }
 0xe08   : > { %v2362_v8 = vmul.f32 1.442695, %v2331_v4  ;;  %v2360_v30 = vmul.f32 1.442695, %v2330_v12  ;;  %v2356_v20 = vmul.f32 1.442695, %v2328_v43  ;;  %v2322_v53 = vsub.f32 %v2270_v15, %v2315_v0 }
 0xe09   : > { %v2358_v34 = vmul.f32 1.442695, %v2329_v40  ;;  %v2352_v25 = vmul.f32 1.442695, %v2326_v35  ;;  %v2354_v49 = vmul.f32 1.442695, %v2327_v23  ;;  %v2323_v27 = vsub.f32 %v6556_v32, %v2315_v0 }
 0xe0a   : > { %5328 = vpow2.f32 %v2362_v8  ;;  %v2348_v26 = vmul.f32 1.442695, %v2324_v39  ;;  %v2316_v60 = vsub.f32 %v6544_v58, %v2315_v0  ;;  %v2350_v57 = vmul.f32 1.442695, %v2325_v37 }
 0xe0b   : > { %5330 = vpow2.f32 %v2360_v30  ;;  %v2317_v18 = vsub.f32 %v6546_v51, %v2315_v0  ;;  %v2344_v15 = vmul.f32 1.442695, %v2322_v53  ;;  %v2320_v32 = vsub.f32 %v6552_v3, %v2315_v0 }
 0xe0c   : > { %5332 = vpow2.f32 %v2356_v20  ;;  %v2346_v50 = vmul.f32 1.442695, %v2323_v27  ;;  %v2318_v24 = vsub.f32 %v6548_v11, %v2315_v0  ;;  %v2321_v58 = vsub.f32 %v6554_v31, %v2315_v0 }
 0xe0d   : > { %5334 = vpow2.f32 %v2358_v34  ;;  %v2332_v13 = vmul.f32 1.442695, %v2316_v60  ;;  %v2319_v51 = vsub.f32 %v6550_v54, %v2315_v0  ;;  %v2334_v41 = vmul.f32 1.442695, %v2317_v18 }
 0xe0e   : > { %5336 = vpow2.f32 %v2352_v25  ;;  %v2340_v14 = vmul.f32 1.442695, %v2320_v32  ;;  %v2336_v3 = vmul.f32 1.442695, %v2318_v24  ;;  %v2342_v62 = vmul.f32 1.442695, %v2321_v58 }
 0xe0f   : > { %5338 = vpow2.f32 %v2354_v49  ;;  %v2338_v11 = vmul.f32 1.442695, %v2319_v51  ;;  %v1587_v20 = vpack.c.bf16 %v6274_v5, %v6274_v5  ;;  %v4993_v24 = vld [vmem:[%s7328_s6 + $0x18] sm:$0xff] }
 0xe10   : > { %v6566_v44 = vpop.eup %5328  ;;  %5340 = vpow2.f32 %v2348_v26 }
 0xe11   : > { %v6569_v16 = vpop.eup %5330  ;;  %5342 = vpow2.f32 %v2350_v57 }
 0xe12   : > { %v6572_v55 = vpop.eup %5332  ;;  %v2393_v7 = vpack.c.bf16 %v6566_v44, %v6569_v16  ;;  %5344 = vpow2.f32 %v2344_v15  ;;  %v5636_v15 = vld [vmem:[%s6161_s26 + $0x10] sm:$0xff] }
 0xe13   : > { %v5335_v48 = vpop.eup %5334  ;;  %5346 = vpow2.f32 %v2346_v50  ;;  %v2410_v32 = vsub.f32 %v6542_v1, %v5636_v15  ;;  %v2432_v1 = vpop.permute.xlu2 %2431 }
 0xe14   : > { %2394 = vmatpush.bf16.msra.mxu3 %v2393_v7  ;;  %v5337_v36 = vpop.eup %5336  ;;  %v2392_v42 = vpack.c.bf16 %v5335_v48, %v6572_v55  ;;  %5348 = vpow2.f32 %v2332_v13 }
 0xe15   : > { %v5339_v46 = vpop.eup %5338  ;;  %5350 = vpow2.f32 %v2334_v41 }
 0xe16   : > { %v5341_v47 = vpop.eup %5340  ;;  %v2391_v31 = vpack.c.bf16 %v5339_v46, %v5337_v36  ;;  %5352 = vpow2.f32 %v2340_v14 }
 0xe17   : > { %v5343_v9 = vpop.eup %5342  ;;  %5354 = vpow2.f32 %v2336_v3 }
 0xe18   : > { %2395 = vmatpush.bf16.msra.mxu3 %v2392_v42  ;;  %v5345_v54 = vpop.eup %5344  ;;  %5356 = vpow2.f32 %v2342_v62  ;;  %v2390_v22 = vpack.c.bf16 %v5343_v9, %v5341_v47  ;;  %v2427_v62 = vpop.permute.xlu1 %2426 }
 0xe19   : > { %v5347_v45 = vpop.eup %5346  ;;  %5358 = vpow2.f32 %v2338_v11 }
 0xe1a   : > { %v5349_v63 = vpop.eup %5348  ;;  %v2389_v28 = vpack.c.bf16 %v5347_v45, %v5345_v54 }
 0xe1b   : > { %v5351_v17 = vpop.eup %5350  ;;  %v2417_v58 = vpop.permute.xlu2 %2416 }
 0xe1c   : > { %2396 = vmatpush.bf16.msra.mxu3 %v2391_v31  ;;  %v5353_v21 = vpop.eup %5352  ;;  %v2364_v10 = vadd.f32 %v5351_v17, %v5349_v63  ;;  %v2386_v40 = vpack.c.bf16 %v5351_v17, %v5349_v63 }
 0xe1d   : > { %v5355_v33 = vpop.eup %5354 }
 0xe1e   : > { %v5357_v2 = vpop.eup %5356  ;;  %v2365_v29 = vadd.f32 %v5355_v33, %v2364_v10  ;;  %v4996_v10 = vld [vmem:[%s7327_s5 + $0x70] sm:$0xff] }
 0xe1f   : > { %v5359_v56 = vpop.eup %5358  ;;  %v2388_v38 = vpack.c.bf16 %v5357_v2, %v5353_v21 }
 0xe20   : > { %2397 = vmatpush.bf16.msra.mxu3 %v2390_v22  ;;  %v2366_v59 = vadd.f32 %v5359_v56, %v2365_v29  ;;  %v2387_v4 = vpack.c.bf16 %v5359_v56, %v5355_v33  ;;  %v4997_v33 = vld [vmem:[%s7327_s5 + $0x78] sm:$0xff] }
 0xe22   : > { %v2367_v52 = vadd.f32 %v5353_v21, %v2366_v59  ;;  %v4995_v21 = vld [vmem:[%s7327_s5 + $0x68] sm:$0xff] }
 0xe24   : > { %2398 = vmatpush.bf16.msra.mxu3 %v2389_v28  ;;  %v2368_v0 = vadd.f32 %v5357_v2, %v2367_v52 }
 0xe26   : > { %v2369_v12 = vadd.f32 %v5345_v54, %v2368_v0 }
 0xe28   : > { %2399 = vmatpush.bf16.msra.mxu3 %v2388_v38  ;;  %v2370_v43 = vadd.f32 %v5347_v45, %v2369_v12 }
 0xe2a   : > { %v2371_v8 = vadd.f32 %v5341_v47, %v2370_v43 }
 0xe2c   : > { %2400 = vmatpush.bf16.msra.mxu3 %v2387_v4  ;;  %v2372_v30 = vadd.f32 %v5343_v9, %v2371_v8 }
 0xe2e   : > { %v2373_v35 = vadd.f32 %v5337_v36, %v2372_v30 }
 0xe30   : > { %2401 = vmatpush.bf16.msra.mxu3 %v2386_v40  ;;  %v2374_v34 = vadd.f32 %v5339_v46, %v2373_v35 }
 0xe32   : > { %v2375_v23 = vadd.f32 %v6572_v55, %v2374_v34  ;;  %v5637_v55 = vld [vmem:[%s6161_s26 + $0x18] sm:$0xff] }
 0xe33   : > { %2402 = vmatmul.bf16.vlgmr.msra.gmra.mxu3 %v1587_v20 }
 0xe34   : > { %v2376_v25 = vadd.f32 %v5335_v48, %v2375_v23 }
 0xe36   : > { %v2377_v39 = vadd.f32 %v6569_v16, %v2376_v25  ;;  %v4800_v25 = vld [vmem:[%s7329_s7 + $0x40] sm:$0xff] }
 0xe38   : > { %v2378_v49 = vadd.f32 %v6566_v44, %v2377_v39  ;;  %v4992_v44 = vld [vmem:[%s7328_s6 + $0x10] sm:$0xff] }
 0xe3a   : > { %v2379_v37 = vrot.slane %v2378_v49, 4 }
 0xe3c   : > { %v2380_v53 = vadd.f32 %v2379_v37, %v2378_v49  ;;  %v4802_v49 = vld [vmem:[%s7329_s7 + $0x50] sm:$0xff]  ;;  %v4801_v37 = vld [vmem:[%s7329_s7 + $0x48] sm:$0xff] }
 0xe3e   : > { %v2381_v27 = vrot.slane %v2380_v53, 2 }
 0xe40   : > { %v2382_v26 = vadd.f32 %v2381_v27, %v2380_v53 }
 0xe42   : > { %v2383_v60 = vrot.slane %v2382_v26, 1 }
 0xe44   : > { %v2384_v57 = vadd.f32 %v2383_v60, %v2382_v26 }
 0xe46   : > { %5360 = vrcp.f32 %v2384_v57 }
 0xe4c   : > { %v5361_v5 = vpop.eup %5360 }
 0xeb6   : > { %v2403_v18 = vpop.f32.mrf.mxu3 }
 0xeb7   : > { %v2407_v7 = vmul.f32 %v5361_v5, %v2403_v18  ;;  %v4998_v18 = vld [vmem:[%s7327_s5 + $0x80] sm:$0xff] }
 0xeb9   : > { %v2411_v48 = vsub.f32 %v2407_v7, %v5637_v55 }
 0xebb   : > { %v2413_v50 = vpack.c.bf16 %v2411_v48, %v2410_v32  ;;  %v4803_v48 = vld [vmem:[%s7329_s7 + $0x58] sm:$0xff] }
 0xebd   : > { %2456 = vmatpush.bf16.msrb.mxu3 %v2413_v50 }
 0xebe   : > { %v2405_v16 = vpop.f32.mrf.mxu3 }
 0xec1   : > { %2457 = vmatpush.bf16.msrb.mxu3 %v6538_v6  ;;  %v2422_v6 = vpop.permute.xlu2 %2421 }
 0xec4   : > { %4782 = vmatmul.msk.bf16.vlgmr.msrb.gmra.mxu3 %vm349_vm0, %v4992_v44 }
 0xed4   : > { %4783 = vmatmul.msk.bf16.gmra.mxu3 %vm349_vm0, %v4993_v24 }
 0xf47   : > { %v2459_v13 = vpop.f32.mrf.mxu3 }
 0xf48   : > { %v2460_v51 = vadd.f32 %v2459_v13, %v2417_v58 }
 0xf4a   : > { %v2469_v41 = vmax.f32 %v2460_v51, 0.0 }
 0xf4c   : > { %v6599_v36 = vadd.f32 %v6529_v61, %v2469_v41 }
 0xf4e   : > { %2477 = vst [vmem:[%s6161_s26 + $0x20] sm:$0xff] %v6599_v36 }
 0xf4f   : > { %v2461_v42 = vpop.f32.mrf.mxu3 }
 0xf50   : > { %v2462_v14 = vadd.f32 %v2461_v42, %v2422_v6 }
 0xf52   : > { %v2470_v46 = vmax.f32 %v2462_v14, 0.0 }
 0xf54   : > { %v6604_v3 = vadd.f32 %v6534_v19, %v2470_v46  ;;  %v4994_v19 = vld [vmem:[%s7327_s5 + $0x60] sm:$0xff] }
 0xf56   : > { %2478 = vst [vmem:[%s6161_s26 + $0x28] sm:$0xff] %v6604_v3  ;;  %v2504_v17 = vpack.c.bf16 %v6604_v3, %v6599_v36 }
 0xf57   : > { %v2464_v11 = vpop.f32.mrf.mxu3 }
 0xf58   : > { %v2465_v47 = vadd.f32 %v2464_v11, %v2427_v62 }
 0xf5a   : > { %v2471_v31 = vmax.f32 %v2465_v47, 0.0 }
 0xf5c   : > { %v2475_v9 = vadd.f32 %v5636_v15, %v2471_v31 }
 0xf5e   : > { %2479 = vst [vmem:[%s6161_s26 + $0x30] sm:$0xff] %v2475_v9 }
 0xf5f   : > { %v2466_v61 = vpop.f32.mrf.mxu3 }
 0xf60   : > { %v2467_v54 = vadd.f32 %v2466_v61, %v2432_v1 }
 0xf62   : > { %v2472_v45 = vmax.f32 %v2467_v54, 0.0 }
 0xf64   : > { %v2476_v63 = vadd.f32 %v5637_v55, %v2472_v45 }
 0xf66   : > { %2480 = vst [vmem:[%s6161_s26 + $0x38] sm:$0xff] %v2476_v63  ;;  %v2505_v22 = vpack.c.bf16 %v2476_v63, %v2475_v9 }
 0xf68   : > { %2560 = vmatpush.bf16.msra.mxu3 %v2505_v22 }
 0xf6c   : > { %2561 = vmatpush.bf16.msra.mxu3 %v2504_v17 }
 0xf6f   : > { %4828 = vmatmul.msk.bf16.vlgmr.msra.gmra.mxu3 %vm349_vm0, %v4994_v19 }
 0xf7f   : > { %4829 = vmatmul.msk.bf16.gmra.mxu3 %vm349_vm0, %v4995_v21 }
 0xf8f   : > { %4830 = vmatmul.msk.bf16.gmra.mxu3 %vm349_vm0, %v4996_v10 }
 0xf9f   : > { %4831 = vmatmul.msk.bf16.gmra.mxu3 %vm349_vm0, %v4997_v33 }
 0xfaf   : > { %4832 = vmatmul.msk.bf16.gmra.mxu3 %vm349_vm0, %v4998_v18 }
 0xff2   : > { %v2563_v2 = vpop.f32.mrf.mxu3 }
 0xff3   : > { %v2593_v28 = vpack.c.bf16 %v2563_v2, %v2563_v2 }
 0xff5   : > { %v2646_v29 = vsel %vm610_vm1, %v2593_v28, 0 }
 0xff6   : > { %2655 = vmatpush.bf16.msrb.mxu0 %v2646_v29 }
 0xffa   : > { %v6629_v56 = vpop.f32.mrf.mxu3 }
0x1002   : > { %v6631_v59 = vpop.f32.mrf.mxu3 }
0x100a   : > { %v6633_v38 = vpop.f32.mrf.mxu3 }
0x1012   : > { %v2573_v52 = vpop.f32.mrf.mxu3 }
0x1013   : > { %v2597_v0 = vpack.c.bf16 %v2573_v52, %v2573_v52 }
0x1015   : > { %2605 = vxpose.xlu2.c.b16.start.end [1/1] (short) %v2597_v0, 128 }
0x101a   : > { %v2575_v4 = vpop.f32.mrf.mxu3 }
0x101b   : > { %v2598_v12 = vpack.c.bf16 %v2575_v4, %v2575_v4 }
0x101d   : > { %2810 = vxpose.xlu0.c.b16.start.end [1/1] (short) %v2598_v12, 128 }
0x1022   : > { %v2578_v43 = vpop.f32.mrf.mxu3 }
0x1023   : > { %v2599_v30 = vpack.c.bf16 %v2578_v43, %v2578_v43 }
0x102a   : > { %v2580_v40 = vpop.f32.mrf.mxu3 }
0x102b   : > { %v2600_v8 = vpack.c.bf16 %v2580_v40, %v2580_v40 }
0x102d   : > { %3220 = vxpose.xlu1.c.b16.start.end [1/1] (short) %v2600_v8, 128 }
0x1095   : > { %3015 = vxpose.xlu2.c.b16.start.end [1/1] (short) %v2599_v30, 128 }
0x10b6   : > { %v2613_v20 = vpop.trf.xlu2 }
0x10b7   : > { %4834 = vmatmul.msk.bf16.vlgmr.msrb.gmra.mxu0 %vm585_vm2, %v2613_v20 }
0x10c6   : > { %v2614_v35 = vpop.trf.xlu2 }
0x10c7   : > { %4835 = vmatmul.msk.bf16.gmra.mxu0 %vm585_vm2, %v2614_v35 }
0x10d6   : > { %v2615_v34 = vpop.trf.xlu2 }
0x10d7   : > { %4836 = vmatmul.msk.bf16.gmra.mxu0 %vm585_vm2, %v2615_v34 }
0x10e6   : > { %v2616_v23 = vpop.trf.xlu2 }
0x10e7   : > { %4837 = vmatmul.msk.bf16.gmra.mxu0 %vm585_vm2, %v2616_v23 }
0x10f6   : > { %v2617_v39 = vpop.trf.xlu2 }
0x10f7   : > { %4838 = vmatmul.msk.bf16.gmra.mxu0 %vm585_vm2, %v2617_v39  ;;  %3433 = vperm.xlu1 %5054, %v4800_v25  }
0x10fb   : > { %3443 = vperm.xlu0 %5053, %v4802_v49  }
0x1103   : > { %3438 = vperm.xlu0 %5053, %v4801_v37  }
0x1106   : > { %v2618_v53 = vpop.trf.xlu2 }
0x1107   : > { %4839 = vmatmul.msk.bf16.gmra.mxu0 %vm585_vm2, %v2618_v53 }
0x1116   : > { %v2619_v27 = vpop.trf.xlu2 }
0x1117   : > { %4840 = vmatmul.msk.bf16.gmra.mxu0 %vm585_vm2, %v2619_v27 }
0x1126   : > { %v2620_v26 = vpop.trf.xlu2 }
0x1127   : > { %4841 = vmatmul.msk.bf16.gmra.mxu0 %vm585_vm2, %v2620_v26 }
0x1134   : > { %v6652_v60 = vpop.f32.mrf.mxu0 }
0x113c   : > { %v6654_v57 = vpop.f32.mrf.mxu0 }
0x1144   : > { %v6656_v5 = vpop.f32.mrf.mxu0 }
0x114c   : > { %v6662_v7 = vpop.f32.mrf.mxu0 }
0x1154   : > { %v6664_v15 = vpop.f32.mrf.mxu0 }
0x1155   : > { %v2697_v6 = vmax.f32 %v6652_v60, %v6664_v15 }
0x115c   : > { %v6666_v32 = vpop.f32.mrf.mxu0 }
0x115d   : > { %v2698_v41 = vmax.f32 %v6654_v57, %v6666_v32 }
0x1164   : > { %v6668_v55 = vpop.f32.mrf.mxu0 }
0x1165   : > { %v2699_v42 = vmax.f32 %v6656_v5, %v6668_v55 }
0x116c   : > { %v6673_v50 = vpop.f32.mrf.mxu0 }
0x116d   : > { %v2700_v14 = vmax.f32 %v6662_v7, %v6673_v50 }
0x116e   : > { %3448 = vperm.xlu2 %5055, %v4803_v48  }
0x1174   : > { %v2677_v16 = vpop.f32.mrf.mxu0 }
0x1175   : > { %v2701_v62 = vmax.f32 %v2697_v6, %v2677_v16 }
0x117c   : > { %v2679_v44 = vpop.f32.mrf.mxu0 }
0x117d   : > { %v2702_v46 = vmax.f32 %v2698_v41, %v2679_v44 }
0x1184   : > { %v2682_v24 = vpop.f32.mrf.mxu0 }
0x1185   : > { %v2703_v11 = vmax.f32 %v2699_v42, %v2682_v24 }
0x118c   : > { %v2684_v1 = vpop.f32.mrf.mxu0 }
0x118d   : > { %v2704_v47 = vmax.f32 %v2700_v14, %v2684_v1 }
0x1194   : > { %v2687_v58 = vpop.f32.mrf.mxu0 }
0x1195   : > { %v2705_v61 = vmax.f32 %v2701_v62, %v2687_v58 }
0x119c   : > { %v2689_v13 = vpop.f32.mrf.mxu0 }
0x119d   : > { %v2706_v31 = vmax.f32 %v2702_v46, %v2689_v13 }
0x119f   : > { %v2709_v63 = vmax.f32 %v2705_v61, %v2706_v31 }
0x11a4   : > { %v2692_v51 = vpop.f32.mrf.mxu0 }
0x11a5   : > { %v2707_v54 = vmax.f32 %v2703_v11, %v2692_v51 }
0x11ac   : > { %v2694_v9 = vpop.f32.mrf.mxu0 }
0x11ad   : > { %v2708_v45 = vmax.f32 %v2704_v47, %v2694_v9 }
0x11af   : > { %v2710_v22 = vmax.f32 %v2707_v54, %v2708_v45 }
0x11b1   : > { %v2711_v17 = vmax.f32 %v2709_v63, %v2710_v22 }
0x11b3   : > { %v2712_v19 = vrot.slane %v2711_v17, 4 }
0x11b5   : > { %v2713_v21 = vmax.f32 %v2711_v17, %v2712_v19 }
0x11b7   : > { %v2714_v10 = vrot.slane %v2713_v21, 2 }
0x11b9   : > { %v2715_v33 = vmax.f32 %v2713_v21, %v2714_v10 }
0x11bb   : > { %v2716_v2 = vrot.slane %v2715_v33, 1 }
0x11bd   : > { %v2717_v28 = vmax.f32 %v2715_v33, %v2716_v2 }
0x11bf   : > { %v2733_v29 = vsub.f32 %v2694_v9, %v2717_v28  ;;  %v2732_v52 = vsub.f32 %v2692_v51, %v2717_v28  ;;  %v2730_v0 = vsub.f32 %v2687_v58, %v2717_v28  ;;  %v2731_v4 = vsub.f32 %v2689_v13, %v2717_v28 }
0x11c0   : > { %v2728_v8 = vsub.f32 %v2682_v24, %v2717_v28  ;;  %v2729_v20 = vsub.f32 %v2684_v1, %v2717_v28  ;;  %v2726_v34 = vsub.f32 %v2677_v16, %v2717_v28  ;;  %v2727_v25 = vsub.f32 %v2679_v44, %v2717_v28 }
0x11c1   : > { %v2764_v12 = vmul.f32 1.442695, %v2733_v29  ;;  %v2762_v43 = vmul.f32 1.442695, %v2732_v52  ;;  %v2758_v40 = vmul.f32 1.442695, %v2730_v0  ;;  %v2724_v39 = vsub.f32 %v6668_v55, %v2717_v28 }
0x11c2   : > { %v2760_v30 = vmul.f32 1.442695, %v2731_v4  ;;  %v2754_v35 = vmul.f32 1.442695, %v2728_v8  ;;  %v2756_v23 = vmul.f32 1.442695, %v2729_v20  ;;  %v2725_v49 = vsub.f32 %v6673_v50, %v2717_v28 }
0x11c3   : > { %5362 = vpow2.f32 %v2764_v12  ;;  %v2750_v53 = vmul.f32 1.442695, %v2726_v34  ;;  %v2718_v27 = vsub.f32 %v6652_v60, %v2717_v28  ;;  %v2752_v18 = vmul.f32 1.442695, %v2727_v25  ;;  %v2583_v12 = vpop.f32.mrf.mxu3 }
0x11c4   : > { %5364 = vpow2.f32 %v2762_v43  ;;  %v2719_v48 = vsub.f32 %v6654_v57, %v2717_v28  ;;  %v2746_v55 = vmul.f32 1.442695, %v2724_v39  ;;  %v2722_v50 = vsub.f32 %v6664_v15, %v2717_v28 }
0x11c5   : > { %5366 = vpow2.f32 %v2758_v40  ;;  %v2748_v1 = vmul.f32 1.442695, %v2725_v49  ;;  %v2720_v58 = vsub.f32 %v6656_v5, %v2717_v28  ;;  %v2723_v60 = vsub.f32 %v6666_v32, %v2717_v28  ;;  %v2818_v49 = vpop.trf.xlu0 }
0x11c6   : > { %5368 = vpow2.f32 %v2760_v30  ;;  %v2734_v13 = vmul.f32 1.442695, %v2718_v27  ;;  %v2721_v57 = vsub.f32 %v6662_v7, %v2717_v28  ;;  %v2736_v51 = vmul.f32 1.442695, %v2719_v48 }
0x11c7   : > { %5370 = vpow2.f32 %v2754_v35  ;;  %v2742_v15 = vmul.f32 1.442695, %v2722_v50  ;;  %v2738_v14 = vmul.f32 1.442695, %v2720_v58  ;;  %v2744_v5 = vmul.f32 1.442695, %v2723_v60 }
0x11c8   : > { %5372 = vpow2.f32 %v2756_v23  ;;  %v2740_v46 = vmul.f32 1.442695, %v2721_v57  ;;  %v2594_v0 = vpack.c.bf16 %v6629_v56, %v6629_v56  ;;  %v2601_v8 = vpack.c.bf16 %v2583_v12, %v2583_v12 }
0x11c9   : > { %v6685_v37 = vpop.eup %5362  ;;  %5374 = vpow2.f32 %v2750_v53 }
0x11ca   : > { %v6688_v26 = vpop.eup %5364  ;;  %5376 = vpow2.f32 %v2752_v18  ;;  %v2851_v30 = vsel %vm610_vm1, %v2594_v0, 0 }
0x11cb   : > { %v6691_v16 = vpop.eup %5366  ;;  %v2795_v44 = vpack.c.bf16 %v6685_v37, %v6688_v26  ;;  %5378 = vpow2.f32 %v2746_v55 }
0x11cc   : > { %v6696_v24 = vpop.eup %5368  ;;  %5380 = vpow2.f32 %v2748_v1 }
0x11cd   : > { %2796 = vmatpush.bf16.msrb.mxu1 %v2795_v44  ;;  %v5371_v41 = vpop.eup %5370  ;;  %v2794_v6 = vpack.c.bf16 %v6696_v24, %v6691_v16  ;;  %5382 = vpow2.f32 %v2734_v13  ;;  %v2819_v53 = vpop.trf.xlu0 }
0x11ce   : > { %v5373_v42 = vpop.eup %5372  ;;  %5384 = vpow2.f32 %v2736_v51 }
0x11cf   : > { %v5375_v32 = vpop.eup %5374  ;;  %v2793_v62 = vpack.c.bf16 %v5373_v42, %v5371_v41  ;;  %5386 = vpow2.f32 %v2742_v15 }
0x11d0   : > { %v5377_v11 = vpop.eup %5376  ;;  %5388 = vpow2.f32 %v2738_v14 }
0x11d1   : > { %2797 = vmatpush.bf16.msrb.mxu1 %v2794_v6  ;;  %v5379_v7 = vpop.eup %5378  ;;  %5390 = vpow2.f32 %v2744_v5  ;;  %v2792_v9 = vpack.c.bf16 %v5377_v11, %v5375_v32 }
0x11d2   : > { %v5381_v47 = vpop.eup %5380  ;;  %5392 = vpow2.f32 %v2740_v46 }
0x11d3   : > { %v5383_v31 = vpop.eup %5382  ;;  %v2791_v17 = vpack.c.bf16 %v5381_v47, %v5379_v7 }
0x11d4   : > { %v5385_v61 = vpop.eup %5384 }
0x11d5   : > { %2798 = vmatpush.bf16.msrb.mxu1 %v2793_v62  ;;  %v5387_v54 = vpop.eup %5386  ;;  %v2766_v45 = vadd.f32 %v5385_v61, %v5383_v31  ;;  %v2788_v43 = vpack.c.bf16 %v5385_v61, %v5383_v31  ;;  %v2820_v27 = vpop.trf.xlu0 }
0x11d6   : > { %v5389_v63 = vpop.eup %5388 }
0x11d7   : > { %v5391_v22 = vpop.eup %5390  ;;  %v2767_v19 = vadd.f32 %v5389_v63, %v2766_v45 }
0x11d8   : > { %v5393_v21 = vpop.eup %5392  ;;  %v2790_v33 = vpack.c.bf16 %v5391_v22, %v5387_v54 }
0x11d9   : > { %2799 = vmatpush.bf16.msrb.mxu1 %v2792_v9  ;;  %v2768_v10 = vadd.f32 %v5393_v21, %v2767_v19  ;;  %v2789_v29 = vpack.c.bf16 %v5393_v21, %v5389_v63 }
0x11db   : > { %v2769_v2 = vadd.f32 %v5387_v54, %v2768_v10 }
0x11dd   : > { %2800 = vmatpush.bf16.msrb.mxu1 %v2791_v17  ;;  %v2770_v28 = vadd.f32 %v5391_v22, %v2769_v2  ;;  %v2821_v18 = vpop.trf.xlu0 }
0x11df   : > { %v2771_v52 = vadd.f32 %v5379_v7, %v2770_v28 }
0x11e1   : > { %2801 = vmatpush.bf16.msrb.mxu1 %v2790_v33  ;;  %v2772_v4 = vadd.f32 %v5381_v47, %v2771_v52 }
0x11e3   : > { %v2773_v40 = vadd.f32 %v5375_v32, %v2772_v4 }
0x11e5   : > { %2802 = vmatpush.bf16.msrb.mxu1 %v2789_v29  ;;  %v2774_v20 = vadd.f32 %v5377_v11, %v2773_v40  ;;  %v2822_v48 = vpop.trf.xlu0 }
0x11e7   : > { %v2775_v35 = vadd.f32 %v5371_v41, %v2774_v20 }
0x11e9   : > { %2803 = vmatpush.bf16.msrb.mxu1 %v2788_v43  ;;  %v2776_v34 = vadd.f32 %v5373_v42, %v2775_v35 }
0x11eb   : > { %v2777_v23 = vadd.f32 %v6691_v16, %v2776_v34 }
0x11ec   : > { %2804 = vmatmul.bf16.vlgmr.msrb.gmra.mxu1 %v2601_v8 }
0x11ed   : > { %2860 = vmatpush.bf16.msra.mxu1 %v2851_v30  ;;  %v2778_v25 = vadd.f32 %v6696_v24, %v2777_v23  ;;  %v2823_v16 = vpop.trf.xlu0 }
0x11ef   : > { %v2779_v56 = vadd.f32 %v6688_v26, %v2778_v25 }
0x11f1   : > { %v2780_v39 = vadd.f32 %v6685_v37, %v2779_v56 }
0x11f3   : > { %v2781_v44 = vrot.slane %v2780_v39, 4 }
0x11f5   : > { %v2782_v37 = vadd.f32 %v2781_v44, %v2780_v39  ;;  %v2824_v50 = vpop.trf.xlu0 }
0x11f7   : > { %v2783_v26 = vrot.slane %v2782_v37, 2 }
0x11f9   : > { %v2784_v55 = vadd.f32 %v2783_v26, %v2782_v37 }
0x11fb   : > { %v2785_v24 = vrot.slane %v2784_v55, 1 }
0x11fc   : > { %4842 = vmatmul.msk.bf16.vlgmr.msra.gmra.mxu1 %vm585_vm2, %v2818_v49 }
0x11fd   : > { %v2786_v1 = vadd.f32 %v2785_v24, %v2784_v55  ;;  %v2825_v57 = vpop.trf.xlu0 }
0x11ff   : > { %5394 = vrcp.f32 %v2786_v1 }
0x1205   : > { %v5395_v58 = vpop.eup %5394 }
0x120c   : > { %4843 = vmatmul.msk.bf16.gmra.mxu1 %vm585_vm2, %v2819_v53 }
0x121c   : > { %4844 = vmatmul.msk.bf16.gmra.mxu1 %vm585_vm2, %v2820_v27 }
0x122c   : > { %4845 = vmatmul.msk.bf16.gmra.mxu1 %vm585_vm2, %v2821_v18 }
0x123c   : > { %4846 = vmatmul.msk.bf16.gmra.mxu1 %vm585_vm2, %v2822_v48 }
0x124c   : > { %4847 = vmatmul.msk.bf16.gmra.mxu1 %vm585_vm2, %v2823_v16 }
0x125c   : > { %4848 = vmatmul.msk.bf16.gmra.mxu1 %vm585_vm2, %v2824_v50 }
0x1269   : > { %v2805_v60 = vpop.f32.mrf.mxu1 }
0x126a   : > { %v6717_v13 = vmul.f32 %v5395_v58, %v2805_v60 }
0x126c   : > { %4849 = vmatmul.msk.bf16.gmra.mxu1 %vm585_vm2, %v2825_v57 }
0x1271   : > { %v2807_v51 = vpop.f32.mrf.mxu1 }
0x1279   : > { %v2862_v41 = vpop.f32.mrf.mxu1 }
0x1281   : > { %v2864_v6 = vpop.f32.mrf.mxu1 }
0x1289   : > { %v2867_v15 = vpop.f32.mrf.mxu1 }
0x1291   : > { %v2869_v42 = vpop.f32.mrf.mxu1 }
0x1299   : > { %v2872_v14 = vpop.f32.mrf.mxu1 }
0x129a   : > { %v2902_v45 = vmax.f32 %v2862_v41, %v2872_v14 }
0x12a1   : > { %v2874_v5 = vpop.f32.mrf.mxu1 }
0x12a2   : > { %v2903_v54 = vmax.f32 %v2864_v6, %v2874_v5 }
0x12a9   : > { %v2877_v46 = vpop.f32.mrf.mxu1 }
0x12aa   : > { %v2904_v63 = vmax.f32 %v2867_v15, %v2877_v46 }
0x12b1   : > { %v2879_v32 = vpop.f32.mrf.mxu1 }
0x12b2   : > { %v2905_v22 = vmax.f32 %v2869_v42, %v2879_v32 }
0x12b9   : > { %v2882_v62 = vpop.f32.mrf.mxu1 }
0x12ba   : > { %v2906_v19 = vmax.f32 %v2902_v45, %v2882_v62 }
0x12c1   : > { %v2884_v11 = vpop.f32.mrf.mxu1 }
0x12c2   : > { %v2907_v17 = vmax.f32 %v2903_v54, %v2884_v11 }
0x12c9   : > { %v6720_v7 = vpop.f32.mrf.mxu1 }
0x12ca   : > { %v2908_v21 = vmax.f32 %v2904_v63, %v6720_v7 }
0x12d1   : > { %v6722_v47 = vpop.f32.mrf.mxu1 }
0x12d2   : > { %v2909_v10 = vmax.f32 %v2905_v22, %v6722_v47 }
0x12d9   : > { %v6724_v31 = vpop.f32.mrf.mxu1 }
0x12da   : > { %v2910_v28 = vmax.f32 %v2906_v19, %v6724_v31 }
0x12e1   : > { %v6726_v9 = vpop.f32.mrf.mxu1 }
0x12e2   : > { %v2911_v33 = vmax.f32 %v2907_v17, %v6726_v9 }
0x12e4   : > { %v2914_v0 = vmax.f32 %v2910_v28, %v2911_v33 }
0x12e9   : > { %v2897_v61 = vpop.f32.mrf.mxu1 }
0x12ea   : > { %v2912_v29 = vmax.f32 %v2908_v21, %v2897_v61 }
0x12f1   : > { %v2899_v2 = vpop.f32.mrf.mxu1 }
0x12f2   : > { %v2913_v52 = vmax.f32 %v2909_v10, %v2899_v2 }
0x12f4   : > { %v2915_v4 = vmax.f32 %v2912_v29, %v2913_v52 }
0x12f6   : > { %v2916_v12 = vmax.f32 %v2914_v0, %v2915_v4 }
0x12f8   : > { %v2917_v43 = vrot.slane %v2916_v12, 4 }
0x12fa   : > { %v2918_v40 = vmax.f32 %v2916_v12, %v2917_v43 }
0x12fc   : > { %v2919_v8 = vrot.slane %v2918_v40, 2 }
0x12fe   : > { %v2920_v30 = vmax.f32 %v2918_v40, %v2919_v8 }
0x1300   : > { %v2921_v20 = vrot.slane %v2920_v30, 1 }
0x1302   : > { %v2922_v35 = vmax.f32 %v2920_v30, %v2921_v20 }
0x1304   : > { %v2923_v34 = vsub.f32 %v2862_v41, %v2922_v35  ;;  %v2924_v23 = vsub.f32 %v2864_v6, %v2922_v35  ;;  %v2925_v25 = vsub.f32 %v2867_v15, %v2922_v35  ;;  %v2926_v56 = vsub.f32 %v2869_v42, %v2922_v35 }
0x1305   : > { %v2927_v53 = vsub.f32 %v2872_v14, %v2922_v35  ;;  %v2928_v18 = vsub.f32 %v2874_v5, %v2922_v35  ;;  %v2929_v16 = vsub.f32 %v2877_v46, %v2922_v35  ;;  %v2930_v44 = vsub.f32 %v2879_v32, %v2922_v35 }
0x1306   : > { %v2939_v39 = vmul.f32 1.442695, %v2923_v34  ;;  %v2941_v49 = vmul.f32 1.442695, %v2924_v23  ;;  %v2943_v27 = vmul.f32 1.442695, %v2925_v25  ;;  %v2931_v26 = vsub.f32 %v2882_v62, %v2922_v35 }
0x1307   : > { %v2945_v48 = vmul.f32 1.442695, %v2926_v56  ;;  %v2947_v37 = vmul.f32 1.442695, %v2927_v53  ;;  %v2932_v55 = vsub.f32 %v2884_v11, %v2922_v35  ;;  %v2949_v50 = vmul.f32 1.442695, %v2928_v18 }
0x1308   : > { %5396 = vpow2.f32 %v2939_v39  ;;  %v2937_v1 = vsub.f32 %v2897_v61, %v2922_v35  ;;  %v2951_v58 = vmul.f32 1.442695, %v2929_v16  ;;  %v2938_v57 = vsub.f32 %v2899_v2, %v2922_v35 }
0x1309   : > { %5398 = vpow2.f32 %v2941_v49  ;;  %v2953_v51 = vmul.f32 1.442695, %v2930_v44  ;;  %v2935_v41 = vsub.f32 %v6724_v31, %v2922_v35  ;;  %v2955_v6 = vmul.f32 1.442695, %v2931_v26 }
0x130a   : > { %5400 = vpow2.f32 %v2943_v27  ;;  %v2936_v14 = vsub.f32 %v6726_v9, %v2922_v35  ;;  %v2957_v5 = vmul.f32 1.442695, %v2932_v55  ;;  %v2967_v46 = vmul.f32 1.442695, %v2937_v1  ;;  %v3023_v1 = vpop.trf.xlu2 }
0x130b   : > { %5402 = vpow2.f32 %v2945_v48  ;;  %v2933_v11 = vsub.f32 %v6720_v7, %v2922_v35  ;;  %v2969_v61 = vmul.f32 1.442695, %v2938_v57  ;;  %v2963_v31 = vmul.f32 1.442695, %v2935_v41 }
0x130c   : > { %5404 = vpow2.f32 %v2947_v37  ;;  %v2934_v63 = vsub.f32 %v6722_v47, %v2922_v35  ;;  %v2965_v22 = vmul.f32 1.442695, %v2936_v14  ;;  %v2595_v44 = vpack.c.bf16 %v6631_v59, %v6631_v59  ;;  %v2585_v37 = vpop.f32.mrf.mxu3 }
0x130d   : > { %5406 = vpow2.f32 %v2949_v50  ;;  %v2959_v19 = vmul.f32 1.442695, %v2933_v11  ;;  %v2602_v50 = vpack.c.bf16 %v2585_v37, %v2585_v37 }
0x130e   : > { %v6732_v24 = vpop.eup %5396  ;;  %5408 = vpow2.f32 %v2951_v58  ;;  %v2961_v7 = vmul.f32 1.442695, %v2934_v63  ;;  %v3056_v55 = vsel %vm610_vm1, %v2595_v44, 0 }
0x130f   : > { %v6734_v60 = vpop.eup %5398  ;;  %5410 = vpow2.f32 %v2953_v51 }
0x1310   : > { %v2971_v15 = vadd.f32 %v6734_v60, %v6732_v24  ;;  %v6739_v42 = vpop.eup %5400  ;;  %5412 = vpow2.f32 %v2955_v6  ;;  %v2993_v26 = vpack.c.bf16 %v6734_v60, %v6732_v24 }
0x1311   : > { %v5403_v62 = vpop.eup %5402  ;;  %5414 = vpow2.f32 %v2957_v5 }
0x1312   : > { %v2972_v32 = vadd.f32 %v6739_v42, %v2971_v15  ;;  %v5405_v45 = vpop.eup %5404  ;;  %5416 = vpow2.f32 %v2967_v46  ;;  %v2994_v16 = vpack.c.bf16 %v5403_v62, %v6739_v42  ;;  %v3024_v58 = vpop.trf.xlu2 }
0x1313   : > { %v5407_v17 = vpop.eup %5406  ;;  %5418 = vpow2.f32 %v2969_v61 }
0x1314   : > { %v2973_v54 = vadd.f32 %v5403_v62, %v2972_v32  ;;  %v5409_v21 = vpop.eup %5408  ;;  %5420 = vpow2.f32 %v2963_v31  ;;  %v2995_v48 = vpack.c.bf16 %v5407_v17, %v5405_v45  ;;  %v3425_v31 = vsub.f32 %v6717_v13, %v6599_v36 }
0x1315   : > { %v5411_v33 = vpop.eup %5410  ;;  %5422 = vpow2.f32 %v2965_v22  ;;  %v4999_v22 = vld [vmem:[%s7327_s5 + $0x88] sm:$0xff] }
0x1316   : > { %v2974_v9 = vadd.f32 %v5405_v45, %v2973_v54  ;;  %v5413_v2 = vpop.eup %5412  ;;  %5424 = vpow2.f32 %v2959_v19  ;;  %v2996_v18 = vpack.c.bf16 %v5411_v33, %v5409_v21  ;;  %4833 = vmatmul.msk.bf16.gmra.mxu3 %vm349_vm0, %v4999_v22 }
0x1317   : > { %v5415_v29 = vpop.eup %5414  ;;  %5426 = vpow2.f32 %v2961_v7 }
0x1318   : > { %v2975_v10 = vadd.f32 %v5407_v17, %v2974_v9  ;;  %v5417_v52 = vpop.eup %5416  ;;  %v2997_v53 = vpack.c.bf16 %v5415_v29, %v5413_v2 }
0x1319   : > { %v5419_v47 = vpop.eup %5418 }
0x131a   : > { %v2976_v28 = vadd.f32 %v5409_v21, %v2975_v10  ;;  %v5421_v4 = vpop.eup %5420  ;;  %v3000_v43 = vpack.c.bf16 %v5419_v47, %v5417_v52  ;;  %v3025_v57 = vpop.trf.xlu2 }
0x131b   : > { %v5423_v40 = vpop.eup %5422 }
0x131c   : > { %v2977_v0 = vadd.f32 %v5411_v33, %v2976_v28  ;;  %3001 = vmatpush.bf16.msra.mxu2 %v3000_v43  ;;  %v5425_v30 = vpop.eup %5424  ;;  %v2999_v35 = vpack.c.bf16 %v5423_v40, %v5421_v4 }
0x131d   : > { %v5427_v34 = vpop.eup %5426 }
0x131e   : > { %v2978_v12 = vadd.f32 %v5413_v2, %v2977_v0  ;;  %v2998_v56 = vpack.c.bf16 %v5427_v34, %v5425_v30 }
0x1320   : > { %v2979_v8 = vadd.f32 %v5415_v29, %v2978_v12  ;;  %3002 = vmatpush.bf16.msra.mxu2 %v2999_v35 }
0x1322   : > { %v2980_v20 = vadd.f32 %v5425_v30, %v2979_v8  ;;  %v3026_v59 = vpop.trf.xlu2 }
0x1324   : > { %v2981_v23 = vadd.f32 %v5427_v34, %v2980_v20  ;;  %3003 = vmatpush.bf16.msra.mxu2 %v2998_v56 }
0x1326   : > { %v2982_v25 = vadd.f32 %v5421_v4, %v2981_v23 }
0x1328   : > { %v2983_v39 = vadd.f32 %v5423_v40, %v2982_v25  ;;  %3004 = vmatpush.bf16.msra.mxu2 %v2997_v53 }
0x132a   : > { %v2984_v49 = vadd.f32 %v5417_v52, %v2983_v39  ;;  %v3027_v51 = vpop.trf.xlu2 }
0x132c   : > { %v2985_v27 = vadd.f32 %v5419_v47, %v2984_v49  ;;  %3005 = vmatpush.bf16.msra.mxu2 %v2996_v18 }
0x132e   : > { %v2986_v60 = vrot.slane %v2985_v27, 4 }
0x1330   : > { %3006 = vmatpush.bf16.msra.mxu2 %v2995_v48  ;;  %v2987_v41 = vadd.f32 %v2986_v60, %v2985_v27 }
0x1332   : > { %v3028_v24 = vpop.trf.xlu2  ;;  %v2988_v6 = vrot.slane %v2987_v41, 2 }
0x1334   : > { %3007 = vmatpush.bf16.msra.mxu2 %v2994_v16  ;;  %v2989_v42 = vadd.f32 %v2988_v6, %v2987_v41 }
0x1336   : > { %v2990_v14 = vrot.slane %v2989_v42, 1 }
0x1338   : > { %3008 = vmatpush.bf16.msra.mxu2 %v2993_v26  ;;  %v2991_v5 = vadd.f32 %v2990_v14, %v2989_v42 }
0x133a   : > { %v3029_v15 = vpop.trf.xlu2  ;;  %5428 = vrcp.f32 %v2991_v5 }
0x133b   : > { %3009 = vmatmul.bf16.vlgmr.msra.gmra.mxu2 %v2602_v50 }
0x133c   : > { %3065 = vmatpush.bf16.msrb.mxu2 %v3056_v55 }
0x1340   : > { %v5429_v32 = vpop.eup %5428 }
0x1342   : > { %v3030_v46 = vpop.trf.xlu2 }
0x134b   : > { %4850 = vmatmul.msk.bf16.vlgmr.msrb.gmra.mxu2 %vm585_vm2, %v3023_v1 }
0x135b   : > { %4851 = vmatmul.msk.bf16.gmra.mxu2 %vm585_vm2, %v3024_v58 }
0x136b   : > { %4852 = vmatmul.msk.bf16.gmra.mxu2 %vm585_vm2, %v3025_v57 }
0x137b   : > { %4853 = vmatmul.msk.bf16.gmra.mxu2 %vm585_vm2, %v3026_v59 }
0x138b   : > { %4854 = vmatmul.msk.bf16.gmra.mxu2 %vm585_vm2, %v3027_v51 }
0x139b   : > { %4855 = vmatmul.msk.bf16.gmra.mxu2 %vm585_vm2, %v3028_v24 }
0x13ab   : > { %4856 = vmatmul.msk.bf16.gmra.mxu2 %vm585_vm2, %v3029_v15 }
0x13bb   : > { %4857 = vmatmul.msk.bf16.gmra.mxu2 %vm585_vm2, %v3030_v46 }
0x13be   : > { %v3010_v62 = vpop.f32.mrf.mxu2 }
0x13bf   : > { %v3014_v11 = vmul.f32 %v5429_v32, %v3010_v62 }
0x13c1   : > { %v3426_v61 = vsub.f32 %v3014_v11, %v6604_v3 }
0x13c3   : > { %v6762_v54 = vpack.c.bf16 %v3426_v61, %v3425_v31 }
0x13c6   : > { %v3012_v45 = vpop.f32.mrf.mxu2 }
0x13ce   : > { %v3067_v63 = vpop.f32.mrf.mxu2 }
0x13d6   : > { %v3069_v9 = vpop.f32.mrf.mxu2 }
0x13de   : > { %v3072_v17 = vpop.f32.mrf.mxu2 }
0x13e6   : > { %v3074_v19 = vpop.f32.mrf.mxu2 }
0x13ee   : > { %v3077_v21 = vpop.f32.mrf.mxu2 }
0x13ef   : > { %v3107_v47 = vmax.f32 %v3067_v63, %v3077_v21 }
0x13f6   : > { %v3079_v10 = vpop.f32.mrf.mxu2 }
0x13f7   : > { %v3108_v0 = vmax.f32 %v3069_v9, %v3079_v10 }
0x13fe   : > { %v3082_v33 = vpop.f32.mrf.mxu2 }
0x13ff   : > { %v3109_v4 = vmax.f32 %v3072_v17, %v3082_v33 }
0x1406   : > { %v3084_v3 = vpop.f32.mrf.mxu2 }
0x1407   : > { %v3110_v12 = vmax.f32 %v3074_v19, %v3084_v3 }
0x140e   : > { %v3087_v7 = vpop.f32.mrf.mxu2 }
0x140f   : > { %v3111_v40 = vmax.f32 %v3107_v47, %v3087_v7 }
0x1416   : > { %v3089_v2 = vpop.f32.mrf.mxu2 }
0x1417   : > { %v3112_v43 = vmax.f32 %v3108_v0, %v3089_v2 }
0x141e   : > { %v6768_v36 = vpop.f32.mrf.mxu2 }
0x141f   : > { %v3113_v8 = vmax.f32 %v3109_v4, %v6768_v36 }
0x1426   : > { %v6770_v13 = vpop.f32.mrf.mxu2 }
0x1427   : > { %v3114_v30 = vmax.f32 %v3110_v12, %v6770_v13 }
0x142e   : > { %v6772_v28 = vpop.f32.mrf.mxu2 }
0x142f   : > { %v3115_v34 = vmax.f32 %v3111_v40, %v6772_v28 }
0x1436   : > { %v6774_v29 = vpop.f32.mrf.mxu2 }
0x1437   : > { %v3116_v20 = vmax.f32 %v3112_v43, %v6774_v29 }
0x1439   : > { %v3119_v56 = vmax.f32 %v3115_v34, %v3116_v20 }
0x143e   : > { %v3102_v52 = vpop.f32.mrf.mxu2 }
0x143f   : > { %v3117_v23 = vmax.f32 %v3113_v8, %v3102_v52 }
0x1446   : > { %v3104_v35 = vpop.f32.mrf.mxu2 }
0x1447   : > { %v3118_v25 = vmax.f32 %v3114_v30, %v3104_v35 }
0x1449   : > { %v3120_v39 = vmax.f32 %v3117_v23, %v3118_v25 }
0x144b   : > { %v3121_v49 = vmax.f32 %v3119_v56, %v3120_v39 }
0x144d   : > { %v3122_v53 = vrot.slane %v3121_v49, 4 }
0x144f   : > { %v3123_v27 = vmax.f32 %v3121_v49, %v3122_v53 }
0x1451   : > { %v3124_v18 = vrot.slane %v3123_v27, 2 }
0x1453   : > { %v3125_v48 = vmax.f32 %v3123_v27, %v3124_v18 }
0x1455   : > { %v3126_v16 = vrot.slane %v3125_v48, 1 }
0x1457   : > { %v3127_v44 = vmax.f32 %v3125_v48, %v3126_v16 }
0x1459   : > { %v3128_v37 = vsub.f32 %v3067_v63, %v3127_v44  ;;  %v3129_v26 = vsub.f32 %v3069_v9, %v3127_v44  ;;  %v3130_v55 = vsub.f32 %v3072_v17, %v3127_v44  ;;  %v3131_v50 = vsub.f32 %v3074_v19, %v3127_v44 }
0x145a   : > { %v3132_v57 = vsub.f32 %v3077_v21, %v3127_v44  ;;  %v3133_v51 = vsub.f32 %v3079_v10, %v3127_v44  ;;  %v3134_v60 = vsub.f32 %v3082_v33, %v3127_v44  ;;  %v3135_v41 = vsub.f32 %v3084_v3, %v3127_v44 }
0x145b   : > { %v3144_v1 = vmul.f32 1.442695, %v3128_v37  ;;  %v3146_v58 = vmul.f32 1.442695, %v3129_v26  ;;  %v3148_v59 = vmul.f32 1.442695, %v3130_v55  ;;  %v3136_v15 = vsub.f32 %v3087_v7, %v3127_v44 }
0x145c   : > { %v3150_v24 = vmul.f32 1.442695, %v3131_v50  ;;  %v3152_v6 = vmul.f32 1.442695, %v3132_v57  ;;  %v3137_v42 = vsub.f32 %v3089_v2, %v3127_v44  ;;  %v3154_v14 = vmul.f32 1.442695, %v3133_v51 }
0x145d   : > { %5430 = vpow2.f32 %v3144_v1  ;;  %v3142_v46 = vsub.f32 %v3102_v52, %v3127_v44  ;;  %v3156_v32 = vmul.f32 1.442695, %v3134_v60  ;;  %v3143_v11 = vsub.f32 %v3104_v35, %v3127_v44 }
0x145e   : > { %5432 = vpow2.f32 %v3146_v58  ;;  %v3158_v61 = vmul.f32 1.442695, %v3135_v41  ;;  %v3140_v31 = vsub.f32 %v6772_v28, %v3127_v44  ;;  %v3160_v45 = vmul.f32 1.442695, %v3136_v15  ;;  %v3228_v15 = vpop.trf.xlu1 }
0x145f   : > { %5434 = vpow2.f32 %v3148_v59  ;;  %v3141_v9 = vsub.f32 %v6774_v29, %v3127_v44  ;;  %v3162_v17 = vmul.f32 1.442695, %v3137_v42  ;;  %v3172_v19 = vmul.f32 1.442695, %v3142_v46 }
0x1460   : > { %5436 = vpow2.f32 %v3150_v24  ;;  %v3138_v33 = vsub.f32 %v6768_v36, %v3127_v44  ;;  %v3174_v3 = vmul.f32 1.442695, %v3143_v11  ;;  %v3168_v7 = vmul.f32 1.442695, %v3140_v31  ;;  %v2588_v24 = vpop.f32.mrf.mxu3 }
0x1461   : > { %5438 = vpow2.f32 %v3152_v6  ;;  %v3139_v52 = vsub.f32 %v6770_v13, %v3127_v44  ;;  %v3170_v0 = vmul.f32 1.442695, %v3141_v9  ;;  %v2596_v51 = vpack.c.bf16 %v6633_v38, %v6633_v38 }
0x1462   : > { %5440 = vpow2.f32 %v3154_v14  ;;  %v3164_v4 = vmul.f32 1.442695, %v3138_v33  ;;  %v2603_v41 = vpack.c.bf16 %v2588_v24, %v2588_v24 }
0x1463   : > { %v6780_v5 = vpop.eup %5430  ;;  %5442 = vpow2.f32 %v3156_v32  ;;  %v3166_v36 = vmul.f32 1.442695, %v3139_v52  ;;  %v3261_v6 = vsel %vm610_vm1, %v2596_v51, 0 }
0x1464   : > { %v6782_v62 = vpop.eup %5432  ;;  %5444 = vpow2.f32 %v3158_v61 }
0x1465   : > { %v3176_v63 = vadd.f32 %v6782_v62, %v6780_v5  ;;  %v6787_v22 = vpop.eup %5434  ;;  %5446 = vpow2.f32 %v3160_v45  ;;  %v3198_v60 = vpack.c.bf16 %v6782_v62, %v6780_v5 }
0x1466   : > { %v5437_v10 = vpop.eup %5436  ;;  %5448 = vpow2.f32 %v3162_v17  ;;  %v3229_v42 = vpop.trf.xlu1 }
0x1467   : > { %v3177_v21 = vadd.f32 %v6787_v22, %v3176_v63  ;;  %v5439_v28 = vpop.eup %5438  ;;  %5450 = vpow2.f32 %v3172_v19  ;;  %v3199_v59 = vpack.c.bf16 %v5437_v10, %v6787_v22 }
0x1468   : > { %v5441_v47 = vpop.eup %5440  ;;  %5452 = vpow2.f32 %v3174_v3  ;;  %v6806_v22 = vpop.f32.mrf.mxu3 }
0x1469   : > { %v3178_v2 = vadd.f32 %v5437_v10, %v3177_v21  ;;  %v5443_v12 = vpop.eup %5442  ;;  %5454 = vpow2.f32 %v3168_v7  ;;  %v3200_v57 = vpack.c.bf16 %v5441_v47, %v5439_v28 }
0x146a   : > { %v5445_v40 = vpop.eup %5444  ;;  %5456 = vpow2.f32 %v3170_v0 }
0x146b   : > { %v3179_v29 = vadd.f32 %v5439_v28, %v3178_v2  ;;  %v5447_v8 = vpop.eup %5446  ;;  %5458 = vpow2.f32 %v3164_v4  ;;  %v3201_v58 = vpack.c.bf16 %v5445_v40, %v5443_v12 }
0x146c   : > { %v5449_v20 = vpop.eup %5448  ;;  %5460 = vpow2.f32 %v3166_v36 }
0x146d   : > { %v3180_v43 = vadd.f32 %v5441_v47, %v3179_v29  ;;  %v5451_v35 = vpop.eup %5450  ;;  %v3202_v50 = vpack.c.bf16 %v5449_v20, %v5447_v8 }
0x146e   : > { %v5453_v13 = vpop.eup %5452  ;;  %v3230_v14 = vpop.trf.xlu1 }
0x146f   : > { %v3181_v30 = vadd.f32 %v5443_v12, %v3180_v43  ;;  %v5455_v23 = vpop.eup %5454  ;;  %v3205_v56 = vpack.c.bf16 %v5453_v13, %v5451_v35 }
0x1470   : > { %v5457_v39 = vpop.eup %5456 }
0x1471   : > { %v3182_v34 = vadd.f32 %v5445_v40, %v3181_v30  ;;  %3206 = vmatpush.bf16.msrb.mxu3 %v3205_v56  ;;  %v5459_v53 = vpop.eup %5458  ;;  %v3204_v18 = vpack.c.bf16 %v5457_v39, %v5455_v23 }
0x1472   : > { %v5461_v48 = vpop.eup %5460 }
0x1473   : > { %v3183_v25 = vadd.f32 %v5447_v8, %v3182_v34  ;;  %v3203_v37 = vpack.c.bf16 %v5461_v48, %v5459_v53 }
0x1475   : > { %v3184_v49 = vadd.f32 %v5449_v20, %v3183_v25  ;;  %3207 = vmatpush.bf16.msrb.mxu3 %v3204_v18 }
0x1476   : > { %v3231_v38 = vpop.trf.xlu1 }
0x1477   : > { %v3185_v27 = vadd.f32 %v5459_v53, %v3184_v49 }
0x1479   : > { %v3186_v16 = vadd.f32 %v5461_v48, %v3185_v27  ;;  %3208 = vmatpush.bf16.msrb.mxu3 %v3203_v37 }
0x147b   : > { %v3187_v44 = vadd.f32 %v5455_v23, %v3186_v16 }
0x147d   : > { %v3188_v26 = vadd.f32 %v5457_v39, %v3187_v44  ;;  %3209 = vmatpush.bf16.msrb.mxu3 %v3202_v50 }
0x147e   : > { %v3232_v46 = vpop.trf.xlu1 }
0x147f   : > { %v3189_v55 = vadd.f32 %v5451_v35, %v3188_v26 }
0x1481   : > { %v3190_v1 = vadd.f32 %v5453_v13, %v3189_v55  ;;  %3210 = vmatpush.bf16.msrb.mxu3 %v3201_v58 }
0x1483   : > { %v3191_v32 = vrot.slane %v3190_v1, 4 }
0x1485   : > { %3211 = vmatpush.bf16.msrb.mxu3 %v3200_v57  ;;  %v3192_v62 = vadd.f32 %v3191_v32, %v3190_v1 }
0x1486   : > { %v3233_v5 = vpop.trf.xlu1 }
0x1487   : > { %v3193_v11 = vrot.slane %v3192_v62, 2 }
0x1489   : > { %3212 = vmatpush.bf16.msrb.mxu3 %v3199_v59  ;;  %v3194_v31 = vadd.f32 %v3193_v11, %v3192_v62 }
0x148b   : > { %v3195_v45 = vrot.slane %v3194_v31, 1 }
0x148d   : > { %3213 = vmatpush.bf16.msrb.mxu3 %v3198_v60  ;;  %v3196_v63 = vadd.f32 %v3195_v45, %v3194_v31 }
0x148e   : > { %v3234_v61 = vpop.trf.xlu1 }
0x148f   : > { %5462 = vrcp.f32 %v3196_v63 }
0x1490   : > { %3214 = vmatmul.bf16.vlgmr.msrb.gmra.mxu3 %v2603_v41 }
0x1491   : > { %3270 = vmatpush.bf16.msra.mxu3 %v3261_v6 }
0x1495   : > { %v5463_v17 = vpop.eup %5462 }
0x1496   : > { %v3235_v9 = vpop.trf.xlu1 }
0x14a0   : > { %4858 = vmatmul.msk.bf16.vlgmr.msra.gmra.mxu3 %vm585_vm2, %v3228_v15 }
0x14b0   : > { %4859 = vmatmul.msk.bf16.gmra.mxu3 %vm585_vm2, %v3229_v42 }
0x14c0   : > { %4860 = vmatmul.msk.bf16.gmra.mxu3 %vm585_vm2, %v3230_v14 }
0x14d0   : > { %4861 = vmatmul.msk.bf16.gmra.mxu3 %vm585_vm2, %v3231_v38 }
0x14e0   : > { %4862 = vmatmul.msk.bf16.gmra.mxu3 %vm585_vm2, %v3232_v46 }
0x14f0   : > { %4863 = vmatmul.msk.bf16.gmra.mxu3 %vm585_vm2, %v3233_v5 }
0x1500   : > { %4864 = vmatmul.msk.bf16.gmra.mxu3 %vm585_vm2, %v3234_v61 }
0x1510   : > { %4865 = vmatmul.msk.bf16.gmra.mxu3 %vm585_vm2, %v3235_v9 }
0x1513   : > { %v3215_v19 = vpop.f32.mrf.mxu3 }
0x1514   : > { %v6809_v21 = vmul.f32 %v5463_v17, %v3215_v19 }
0x151b   : > { %v3217_v10 = vpop.f32.mrf.mxu3 }
0x1523   : > { %v3272_v33 = vpop.f32.mrf.mxu3 }
0x152b   : > { %v3274_v3 = vpop.f32.mrf.mxu3 }
0x1533   : > { %v3277_v7 = vpop.f32.mrf.mxu3 }
0x153b   : > { %v3279_v2 = vpop.f32.mrf.mxu3 }
0x1543   : > { %v3282_v28 = vpop.f32.mrf.mxu3 }
0x1544   : > { %v3312_v20 = vmax.f32 %v3272_v33, %v3282_v28 }
0x154b   : > { %v3284_v52 = vpop.f32.mrf.mxu3 }
0x154c   : > { %v3313_v30 = vmax.f32 %v3274_v3, %v3284_v52 }
0x1553   : > { %v3287_v0 = vpop.f32.mrf.mxu3 }
0x1554   : > { %v3314_v35 = vmax.f32 %v3277_v7, %v3287_v0 }
0x155b   : > { %v3289_v29 = vpop.f32.mrf.mxu3 }
0x155c   : > { %v3315_v34 = vmax.f32 %v3279_v2, %v3289_v29 }
0x1563   : > { %v3292_v47 = vpop.f32.mrf.mxu3 }
0x1564   : > { %v3316_v23 = vmax.f32 %v3312_v20, %v3292_v47 }
0x156b   : > { %v3294_v4 = vpop.f32.mrf.mxu3 }
0x156c   : > { %v3317_v13 = vmax.f32 %v3313_v30, %v3294_v4 }
0x1573   : > { %v6811_v12 = vpop.f32.mrf.mxu3 }
0x1574   : > { %v3318_v25 = vmax.f32 %v3314_v35, %v6811_v12 }
0x157b   : > { %v6813_v43 = vpop.f32.mrf.mxu3 }
0x157c   : > { %v3319_v56 = vmax.f32 %v3315_v34, %v6813_v43 }
0x1583   : > { %v6815_v40 = vpop.f32.mrf.mxu3 }
0x1584   : > { %v3320_v53 = vmax.f32 %v3316_v23, %v6815_v40 }
0x158b   : > { %v6817_v36 = vpop.f32.mrf.mxu3 }
0x158c   : > { %v3321_v39 = vmax.f32 %v3317_v13, %v6817_v36 }
0x158e   : > { %v3324_v48 = vmax.f32 %v3320_v53, %v3321_v39 }
0x1593   : > { %v3307_v8 = vpop.f32.mrf.mxu3 }
0x1594   : > { %v3322_v27 = vmax.f32 %v3318_v25, %v3307_v8 }
0x159b   : > { %v3309_v49 = vpop.f32.mrf.mxu3 }
0x159c   : > { %v3323_v18 = vmax.f32 %v3319_v56, %v3309_v49 }
0x159e   : > { %v3325_v16 = vmax.f32 %v3322_v27, %v3323_v18 }
0x15a0   : > { %v3326_v44 = vmax.f32 %v3324_v48, %v3325_v16 }
0x15a2   : > { %v3327_v37 = vrot.slane %v3326_v44, 4 }
0x15a4   : > { %v3328_v26 = vmax.f32 %v3326_v44, %v3327_v37 }
0x15a6   : > { %v3329_v55 = vrot.slane %v3328_v26, 2 }
0x15a8   : > { %v3330_v50 = vmax.f32 %v3328_v26, %v3329_v55 }
0x15aa   : > { %v3331_v1 = vrot.slane %v3330_v50, 1 }
0x15ac   : > { %v3332_v58 = vmax.f32 %v3330_v50, %v3331_v1 }
0x15ae   : > { %v3333_v57 = vsub.f32 %v3272_v33, %v3332_v58  ;;  %v3334_v59 = vsub.f32 %v3274_v3, %v3332_v58  ;;  %v3335_v51 = vsub.f32 %v3277_v7, %v3332_v58  ;;  %v3336_v24 = vsub.f32 %v3279_v2, %v3332_v58 }
0x15af   : > { %v3337_v6 = vsub.f32 %v3282_v28, %v3332_v58  ;;  %v3338_v42 = vsub.f32 %v3284_v52, %v3332_v58  ;;  %v3339_v38 = vsub.f32 %v3287_v0, %v3332_v58  ;;  %v3340_v46 = vsub.f32 %v3289_v29, %v3332_v58 }
0x15b0   : > { %v3349_v60 = vmul.f32 1.442695, %v3333_v57  ;;  %v3351_v41 = vmul.f32 1.442695, %v3334_v59  ;;  %v3353_v15 = vmul.f32 1.442695, %v3335_v51  ;;  %v3341_v32 = vsub.f32 %v3292_v47, %v3332_v58 }
0x15b1   : > { %v3355_v14 = vmul.f32 1.442695, %v3336_v24  ;;  %v3357_v5 = vmul.f32 1.442695, %v3337_v6  ;;  %v3342_v62 = vsub.f32 %v3294_v4, %v3332_v58  ;;  %v3359_v11 = vmul.f32 1.442695, %v3338_v42 }
0x15b2   : > { %5464 = vpow2.f32 %v3349_v60  ;;  %v3347_v31 = vsub.f32 %v3307_v8, %v3332_v58  ;;  %v3361_v45 = vmul.f32 1.442695, %v3339_v38  ;;  %v3348_v9 = vsub.f32 %v3309_v49, %v3332_v58 }
0x15b3   : > { %5466 = vpow2.f32 %v3351_v41  ;;  %v3363_v17 = vmul.f32 1.442695, %v3340_v46  ;;  %v3345_v19 = vsub.f32 %v6815_v40, %v3332_v58  ;;  %v3365_v10 = vmul.f32 1.442695, %v3341_v32 }
0x15b4   : > { %5468 = vpow2.f32 %v3353_v15  ;;  %v3346_v7 = vsub.f32 %v6817_v36, %v3332_v58  ;;  %v3367_v2 = vmul.f32 1.442695, %v3342_v62  ;;  %v3377_v28 = vmul.f32 1.442695, %v3347_v31 }
0x15b5   : > { %5470 = vpow2.f32 %v3355_v14  ;;  %v3343_v29 = vsub.f32 %v6811_v12, %v3332_v58  ;;  %v3379_v47 = vmul.f32 1.442695, %v3348_v9  ;;  %v3373_v4 = vmul.f32 1.442695, %v3345_v19  ;;  %v5638_v19 = vld [vmem:[%s6161_s26 + $0x30] sm:$0xff] }
0x15b6   : > { %5472 = vpow2.f32 %v3357_v5  ;;  %v3344_v30 = vsub.f32 %v6813_v43, %v3332_v58  ;;  %v3375_v20 = vmul.f32 1.442695, %v3346_v7  ;;  %v2604_v38 = vpack.c.bf16 %v6806_v22, %v6806_v22  ;;  %v3444_v7 = vpop.permute.xlu0 %3443 }
0x15b7   : > { %5474 = vpow2.f32 %v3359_v11  ;;  %v3369_v34 = vmul.f32 1.442695, %v3343_v29  ;;  %v5640_v29 = vld [vmem:[%s6161_s26 + $0x20] sm:$0xff] }
0x15b8   : > { %v6823_v61 = vpop.eup %5464  ;;  %5476 = vpow2.f32 %v3361_v45  ;;  %v3371_v12 = vmul.f32 1.442695, %v3344_v30  ;;  %v5641_v30 = vld [vmem:[%s6161_s26 + $0x28] sm:$0xff] }
0x15b9   : > { %v6825_v63 = vpop.eup %5466  ;;  %5478 = vpow2.f32 %v3363_v17 }
0x15ba   : > { %v3381_v33 = vadd.f32 %v6825_v63, %v6823_v61  ;;  %v5469_v3 = vpop.eup %5468  ;;  %5480 = vpow2.f32 %v3365_v10  ;;  %v3403_v14 = vpack.c.bf16 %v6825_v63, %v6823_v61  ;;  %v3427_v10 = vsub.f32 %v6809_v21, %v5638_v19  ;;  %v5639_v61 = vld [vmem:[%s6161_s26 + $0x38] sm:$0xff]  ;;  %v5001_v21 = vld [vmem:[%s7328_s6 + $0x28] sm:$0xff] }
0x15bb   : > { %v5471_v0 = vpop.eup %5470  ;;  %5482 = vpow2.f32 %v3367_v2  ;;  %v3434_v2 = vpop.permute.xlu1 %3433 }
0x15bc   : > { %v3382_v52 = vadd.f32 %v5469_v3, %v3381_v33  ;;  %v5473_v8 = vpop.eup %5472  ;;  %5484 = vpow2.f32 %v3377_v28  ;;  %v3404_v42 = vpack.c.bf16 %v5471_v0, %v5469_v3  ;;  %v5000_v3 = vld [vmem:[%s7328_s6 + $0x20] sm:$0xff] }
0x15bd   : > { %v5475_v35 = vpop.eup %5474  ;;  %5486 = vpow2.f32 %v3379_v47 }
0x15be   : > { %v3383_v40 = vadd.f32 %v5471_v0, %v3382_v52  ;;  %v5477_v13 = vpop.eup %5476  ;;  %5488 = vpow2.f32 %v3373_v4  ;;  %v3405_v15 = vpack.c.bf16 %v5475_v35, %v5473_v8 }
0x15bf   : > { %v5479_v25 = vpop.eup %5478  ;;  %5490 = vpow2.f32 %v3375_v20 }
0x15c0   : > { %v3384_v36 = vadd.f32 %v5473_v8, %v3383_v40  ;;  %v5481_v56 = vpop.eup %5480  ;;  %5492 = vpow2.f32 %v3369_v34  ;;  %v3406_v6 = vpack.c.bf16 %v5479_v25, %v5477_v13 }
0x15c1   : > { %v5483_v49 = vpop.eup %5482  ;;  %5494 = vpow2.f32 %v3371_v12 }
0x15c2   : > { %v3385_v23 = vadd.f32 %v5475_v35, %v3384_v36  ;;  %v5485_v53 = vpop.eup %5484  ;;  %v3407_v60 = vpack.c.bf16 %v5483_v49, %v5481_v56 }
0x15c3   : > { %v5487_v43 = vpop.eup %5486 }
0x15c4   : > { %v3386_v39 = vadd.f32 %v5477_v13, %v3385_v23  ;;  %v5489_v18 = vpop.eup %5488  ;;  %v3410_v16 = vpack.c.bf16 %v5487_v43, %v5485_v53  ;;  %v3449_v23 = vpop.permute.xlu2 %3448 }
0x15c5   : > { %v5491_v44 = vpop.eup %5490 }
0x15c6   : > { %v3387_v27 = vadd.f32 %v5479_v25, %v3386_v39  ;;  %3411 = vmatpush.bf16.msra.mxu0 %v3410_v16  ;;  %v5493_v26 = vpop.eup %5492  ;;  %v3409_v50 = vpack.c.bf16 %v5491_v44, %v5489_v18 }
0x15c7   : > { %v5495_v1 = vpop.eup %5494 }
0x15c8   : > { %v3388_v48 = vadd.f32 %v5481_v56, %v3387_v27  ;;  %v3408_v59 = vpack.c.bf16 %v5495_v1, %v5493_v26  ;;  %v5002_v27 = vld [vmem:[%s7327_s5 + $0x90] sm:$0xff] }
0x15ca   : > { %v3389_v37 = vadd.f32 %v5483_v49, %v3388_v48  ;;  %3412 = vmatpush.bf16.msra.mxu0 %v3409_v50  ;;  %v5005_v48 = vld [vmem:[%s7327_s5 + $0xa8] sm:$0xff] }
0x15cc   : > { %v3390_v55 = vadd.f32 %v5493_v26, %v3389_v37 }
0x15ce   : > { %v3391_v58 = vadd.f32 %v5495_v1, %v3390_v55  ;;  %3413 = vmatpush.bf16.msra.mxu0 %v3408_v59 }
0x15d0   : > { %v3392_v57 = vadd.f32 %v5489_v18, %v3391_v58  ;;  %v5004_v18 = vld [vmem:[%s7327_s5 + $0xa0] sm:$0xff] }
0x15d2   : > { %v3393_v51 = vadd.f32 %v5491_v44, %v3392_v57  ;;  %3414 = vmatpush.bf16.msra.mxu0 %v3407_v60  ;;  %v5006_v57 = vld [vmem:[%s7327_s5 + $0xb0] sm:$0xff] }
0x15d4   : > { %v3394_v24 = vadd.f32 %v5485_v53, %v3393_v51 }
0x15d6   : > { %v3395_v41 = vadd.f32 %v5487_v43, %v3394_v24  ;;  %3415 = vmatpush.bf16.msra.mxu0 %v3406_v6  ;;  %v5003_v43 = vld [vmem:[%s7327_s5 + $0x98] sm:$0xff] }
0x15d8   : > { %v3396_v46 = vrot.slane %v3395_v41, 4 }
0x15da   : > { %3416 = vmatpush.bf16.msra.mxu0 %v3405_v15  ;;  %v3397_v5 = vadd.f32 %v3396_v46, %v3395_v41 }
0x15dc   : > { %v3398_v32 = vrot.slane %v3397_v5, 2 }
0x15de   : > { %3417 = vmatpush.bf16.msra.mxu0 %v3404_v42  ;;  %v3399_v62 = vadd.f32 %v3398_v32, %v3397_v5 }
0x15e0   : > { %v3400_v11 = vrot.slane %v3399_v62, 1 }
0x15e2   : > { %3418 = vmatpush.bf16.msra.mxu0 %v3403_v14  ;;  %v3401_v31 = vadd.f32 %v3400_v11, %v3399_v62  ;;  %v5007_v14 = vld [vmem:[%s7327_s5 + $0xb8] sm:$0xff]  ;;  %v4894_v62 = vld [vmem:[%s7329_s7 + $0x70] sm:$0xff] }
0x15e4   : > { %5496 = vrcp.f32 %v3401_v31 }
0x15e5   : > { %3419 = vmatmul.bf16.vlgmr.msra.gmra.mxu0 %v2604_v38 }
0x15ea   : > { %v5497_v45 = vpop.eup %5496 }
0x1662   : > { %v3420_v9 = vpop.f32.mrf.mxu0 }
0x1663   : > { %v3424_v17 = vmul.f32 %v5497_v45, %v3420_v9  ;;  %v4895_v45 = vld [vmem:[%s7329_s7 + $0x78] sm:$0xff] }
0x1665   : > { %v3428_v63 = vsub.f32 %v3424_v17, %v5639_v61 }
0x1667   : > { %v3430_v33 = vpack.c.bf16 %v3428_v63, %v3427_v10 }
0x1669   : > { %3473 = vmatpush.bf16.msrb.mxu0 %v3430_v33 }
0x166a   : > { %v3422_v22 = vpop.f32.mrf.mxu0 }
0x166b   : > { %v4893_v22 = vld [vmem:[%s7329_s7 + $0x68] sm:$0xff] }
0x166d   : > { %3474 = vmatpush.bf16.msrb.mxu0 %v6762_v54  ;;  %v3439_v54 = vpop.permute.xlu0 %3438 }
0x1670   : > { %4874 = vmatmul.msk.bf16.vlgmr.msrb.gmra.mxu0 %vm349_vm0, %v5000_v3 }
0x1680   : > { %4875 = vmatmul.msk.bf16.gmra.mxu0 %vm349_vm0, %v5001_v21 }
0x16ed   : > { %v3476_v28 = vpop.f32.mrf.mxu0 }
0x16ee   : > { %v3477_v52 = vadd.f32 %v3476_v28, %v3434_v2 }
0x16f0   : > { %v3486_v0 = vmax.f32 %v3477_v52, 0.0 }
0x16f2   : > { %v3490_v47 = vadd.f32 %v5640_v29, %v3486_v0 }
0x16f4   : > { %3494 = vst [vmem:[%s6161_s26 + $0x40] sm:$0xff] %v3490_v47 }
0x16f5   : > { %v3478_v4 = vpop.f32.mrf.mxu0 }
0x16f6   : > { %v3479_v40 = vadd.f32 %v3478_v4, %v3439_v54 }
0x16f8   : > { %v3487_v8 = vmax.f32 %v3479_v40, 0.0 }
0x16fa   : > { %v3491_v20 = vadd.f32 %v5641_v30, %v3487_v8 }
0x16fc   : > { %3495 = vst [vmem:[%s6161_s26 + $0x48] sm:$0xff] %v3491_v20  ;;  %v3521_v53 = vpack.c.bf16 %v3491_v20, %v3490_v47 }
0x16fd   : > { %v3481_v36 = vpop.f32.mrf.mxu0 }
0x16fe   : > { %v3482_v35 = vadd.f32 %v3481_v36, %v3444_v7 }
0x1700   : > { %v3488_v34 = vmax.f32 %v3482_v35, 0.0 }
0x1702   : > { %v3492_v13 = vadd.f32 %v5638_v19, %v3488_v34 }
0x1704   : > { %3496 = vst [vmem:[%s6161_s26 + $0x50] sm:$0xff] %v3492_v13 }
0x1705   : > { %v3483_v25 = vpop.f32.mrf.mxu0 }
0x1706   : > { %v3484_v12 = vadd.f32 %v3483_v25, %v3449_v23 }
0x1708   : > { %v3489_v56 = vmax.f32 %v3484_v12, 0.0 }
0x170a   : > { %v3493_v39 = vadd.f32 %v5639_v61, %v3489_v56  ;;  %v4892_v61 = vld [vmem:[%s7329_s7 + $0x60] sm:$0xff] }
0x170c   : > { %3497 = vst [vmem:[%s6161_s26 + $0x58] sm:$0xff] %v3493_v39  ;;  %v3522_v49 = vpack.c.bf16 %v3493_v39, %v3492_v13 }
0x170e   : > { %3577 = vmatpush.bf16.msra.mxu0 %v3522_v49 }
0x1712   : > { %3578 = vmatpush.bf16.msra.mxu0 %v3521_v53 }
0x1715   : > { %4920 = vmatmul.msk.bf16.vlgmr.msra.gmra.mxu0 %vm349_vm0, %v5002_v27 }
0x1725   : > { %4921 = vmatmul.msk.bf16.gmra.mxu0 %vm349_vm0, %v5003_v43 }
0x1735   : > { %4922 = vmatmul.msk.bf16.gmra.mxu0 %vm349_vm0, %v5004_v18 }
0x1745   : > { %4923 = vmatmul.msk.bf16.gmra.mxu0 %vm349_vm0, %v5005_v48 }
0x1755   : > { %4924 = vmatmul.msk.bf16.gmra.mxu0 %vm349_vm0, %v5006_v57 }
0x1765   : > { %4925 = vmatmul.msk.bf16.gmra.mxu0 %vm349_vm0, %v5007_v14 }
0x1792   : > { %v3580_v16 = vpop.f32.mrf.mxu0 }
0x1793   : > { %v3610_v44 = vpack.c.bf16 %v3580_v16, %v3580_v16 }
0x1795   : > { %v3663_v37 = vsel %vm610_vm1, %v3610_v44, 0 }
0x1796   : > { %3672 = vmatpush.bf16.msrb.mxu1 %v3663_v37 }
0x179a   : > { %v6872_v26 = vpop.f32.mrf.mxu0 }
0x17a2   : > { %v6874_v55 = vpop.f32.mrf.mxu0 }
0x17aa   : > { %v3587_v50 = vpop.f32.mrf.mxu0 }
0x17ab   : > { %v3613_v1 = vpack.c.bf16 %v3587_v50, %v3587_v50 }
0x17ad   : > { %v4278_v58 = vsel %vm610_vm1, %v3613_v1, 0 }
0x17ae   : > { %4287 = vmatpush.bf16.msrb.mxu0 %v4278_v58 }
0x17b2   : > { %v3590_v59 = vpop.f32.mrf.mxu0 }
0x17b3   : > { %v3614_v51 = vpack.c.bf16 %v3590_v59, %v3590_v59 }
0x17b5   : > { %3622 = vxpose.xlu1.c.b16.start.end [1/1] (short) %v3614_v51, 128 }
0x17ba   : > { %v3592_v24 = vpop.f32.mrf.mxu0 }
0x17bb   : > { %v3615_v60 = vpack.c.bf16 %v3592_v24, %v3592_v24 }
0x17bd   : > { %3827 = vxpose.xlu0.c.b16.start.end [1/1] (short) %v3615_v60, 128 }
0x17c2   : > { %v3595_v41 = vpop.f32.mrf.mxu0 }
0x17c3   : > { %v3616_v6 = vpack.c.bf16 %v3595_v41, %v3595_v41 }
0x17ca   : > { %v3597_v15 = vpop.f32.mrf.mxu0 }
0x17cb   : > { %v3617_v42 = vpack.c.bf16 %v3597_v15, %v3597_v15 }
0x17cd   : > { %5073 = vxpose.binary.xlu2.c.b16.start.end [1/2] (short) %v3617_v42, %v3616_v6, 128 }
0x17d2   : > { %v6922_v29 = vpop.f32.mrf.mxu0 }
0x17da   : > { %v6927_v40 = vpop.f32.mrf.mxu0 }
0x17e2   : > { %v6934_v20 = vpop.f32.mrf.mxu0 }
0x17ea   : > { %v6939_v34 = vpop.f32.mrf.mxu0 }
0x1861   : > { %v3630_v38 = vpop.trf.xlu1 }
0x1862   : > { %4926 = vmatmul.msk.bf16.vlgmr.msrb.gmra.mxu1 %vm585_vm2, %v3630_v38 }
0x186e   : > { %v6886_v46 = vpop.trf.xlu2 }
0x1871   : > { %v3631_v5 = vpop.trf.xlu1 }
0x1872   : > { %4927 = vmatmul.msk.bf16.gmra.mxu1 %vm585_vm2, %v3631_v5 }
0x1876   : > { %v5075_v32 = vpop.trf.xlu2 }
0x1877   : > { %4950 = vmatmul.msk.bf16.vlgmr.msrb.gmra.mxu0 %vm585_vm2, %v5075_v32 }
0x187e   : > { %v6893_v11 = vpop.trf.xlu2 }
0x187f   : > { %4460 = vperm.xlu1 %5054, %v4894_v62  }
0x1881   : > { %v3632_v31 = vpop.trf.xlu1 }
0x1882   : > { %4928 = vmatmul.msk.bf16.gmra.mxu1 %vm585_vm2, %v3632_v31 }
0x1886   : > { %v5077_v9 = vpop.trf.xlu2 }
0x1887   : > { %4465 = vperm.xlu1 %5054, %v4895_v45   ;;  %4951 = vmatmul.msk.bf16.gmra.mxu0 %vm585_vm2, %v5077_v9 }
0x188e   : > { %v6900_v17 = vpop.trf.xlu2 }
0x1891   : > { %v3633_v19 = vpop.trf.xlu1 }
0x1892   : > { %4929 = vmatmul.msk.bf16.gmra.mxu1 %vm585_vm2, %v3633_v19 }
0x1896   : > { %v5079_v10 = vpop.trf.xlu2 }
0x1897   : > { %4952 = vmatmul.msk.bf16.gmra.mxu0 %vm585_vm2, %v5079_v10 }
0x189b   : > { %4450 = vperm.xlu0 %5053, %v4892_v61  }
0x189e   : > { %v6907_v63 = vpop.trf.xlu2 }
0x18a1   : > { %v3634_v33 = vpop.trf.xlu1 }
0x18a2   : > { %4930 = vmatmul.msk.bf16.gmra.mxu1 %vm585_vm2, %v3634_v33 }
0x18a6   : > { %4455 = vperm.xlu2 %5055, %v4893_v22   ;;  %v5081_v3 = vpop.trf.xlu2 }
0x18a7   : > { %4953 = vmatmul.msk.bf16.gmra.mxu0 %vm585_vm2, %v5081_v3 }
0x18ae   : > { %v6914_v21 = vpop.trf.xlu2 }
0x18b1   : > { %v3635_v7 = vpop.trf.xlu1 }
0x18b2   : > { %4931 = vmatmul.msk.bf16.gmra.mxu1 %vm585_vm2, %v3635_v7 }
0x18b6   : > { %v5083_v2 = vpop.trf.xlu2 }
0x18b7   : > { %4954 = vmatmul.msk.bf16.gmra.mxu0 %vm585_vm2, %v5083_v2 }
0x18be   : > { %v6918_v28 = vpop.trf.xlu2 }
0x18c1   : > { %v3636_v52 = vpop.trf.xlu1 }
0x18c2   : > { %4932 = vmatmul.msk.bf16.gmra.mxu1 %vm585_vm2, %v3636_v52 }
0x18c6   : > { %v5085_v0 = vpop.trf.xlu2 }
0x18c7   : > { %4955 = vmatmul.msk.bf16.gmra.mxu0 %vm585_vm2, %v5085_v0 }
0x18ce   : > { %v6924_v47 = vpop.trf.xlu2 }
0x18d1   : > { %v3637_v54 = vpop.trf.xlu1 }
0x18d2   : > { %4933 = vmatmul.msk.bf16.gmra.mxu1 %vm585_vm2, %v3637_v54 }
0x18d6   : > { %v5087_v4 = vpop.trf.xlu2 }
0x18d7   : > { %4956 = vmatmul.msk.bf16.gmra.mxu0 %vm585_vm2, %v5087_v4 }
0x18de   : > { %v6930_v8 = vpop.trf.xlu2 }
0x18df   : > { %v6932_v30 = vpop.f32.mrf.mxu1 }
0x18e6   : > { %v5089_v36 = vpop.trf.xlu2 }
0x18e7   : > { %v6936_v35 = vpop.f32.mrf.mxu1  ;;  %4957 = vmatmul.msk.bf16.gmra.mxu0 %vm585_vm2, %v5089_v36 }
0x18ef   : > { %v6941_v13 = vpop.f32.mrf.mxu1 }
0x18f4   : > { %v6943_v23 = vpop.f32.mrf.mxu0 }
0x18f7   : > { %v6945_v25 = vpop.f32.mrf.mxu1 }
0x18fc   : > { %v6947_v12 = vpop.f32.mrf.mxu0 }
0x18ff   : > { %v6949_v56 = vpop.f32.mrf.mxu1 }
0x1900   : > { %v3714_v42 = vmax.f32 %v6932_v30, %v6949_v56 }
0x1904   : > { %v6951_v39 = vpop.f32.mrf.mxu0 }
0x1907   : > { %v6953_v49 = vpop.f32.mrf.mxu1 }
0x1908   : > { %v3715_v15 = vmax.f32 %v6936_v35, %v6953_v49 }
0x190c   : > { %v6955_v53 = vpop.f32.mrf.mxu0 }
0x190f   : > { %v6957_v27 = vpop.f32.mrf.mxu1 }
0x1910   : > { %v3716_v14 = vmax.f32 %v6941_v13, %v6957_v27 }
0x1914   : > { %v6959_v43 = vpop.f32.mrf.mxu0 }
0x1917   : > { %v6961_v18 = vpop.f32.mrf.mxu1 }
0x1918   : > { %v3717_v38 = vmax.f32 %v6945_v25, %v6961_v18 }
0x191c   : > { %v6963_v48 = vpop.f32.mrf.mxu0 }
0x191f   : > { %v6965_v16 = vpop.f32.mrf.mxu1 }
0x1920   : > { %v3718_v62 = vmax.f32 %v3714_v42, %v6965_v16  ;;  %v4330_v42 = vmax.f32 %v6947_v12, %v6963_v48 }
0x1924   : > { %v6967_v44 = vpop.f32.mrf.mxu0 }
0x1927   : > { %v6969_v37 = vpop.f32.mrf.mxu1 }
0x1928   : > { %v3719_v5 = vmax.f32 %v3715_v15, %v6969_v37  ;;  %v4329_v15 = vmax.f32 %v6943_v23, %v6959_v43 }
0x192c   : > { %v6971_v50 = vpop.f32.mrf.mxu0 }
0x192f   : > { %v6973_v1 = vpop.f32.mrf.mxu1 }
0x1930   : > { %v3720_v31 = vmax.f32 %v3716_v14, %v6973_v1 }
0x1934   : > { %v6975_v58 = vpop.f32.mrf.mxu0 }
0x1937   : > { %v6977_v57 = vpop.f32.mrf.mxu1 }
0x1938   : > { %v3721_v45 = vmax.f32 %v3717_v38, %v6977_v57  ;;  %v4331_v38 = vmax.f32 %v6951_v39, %v6967_v44 }
0x193c   : > { %v6979_v59 = vpop.f32.mrf.mxu0 }
0x193f   : > { %v6981_v51 = vpop.f32.mrf.mxu1 }
0x1940   : > { %v3722_v10 = vmax.f32 %v3718_v62, %v6981_v51 }
0x1944   : > { %v6983_v24 = vpop.f32.mrf.mxu0 }
0x1947   : > { %v6985_v60 = vpop.f32.mrf.mxu1 }
0x1948   : > { %v3723_v9 = vmax.f32 %v3719_v5, %v6985_v60  ;;  %v4332_v5 = vmax.f32 %v6955_v53, %v6971_v50 }
0x194a   : > { %v3726_v22 = vmax.f32 %v3722_v10, %v3723_v9 }
0x194c   : > { %v6987_v41 = vpop.f32.mrf.mxu0 }
0x194f   : > { %v6989_v6 = vpop.f32.mrf.mxu1 }
0x1950   : > { %v3724_v61 = vmax.f32 %v3720_v31, %v6989_v6  ;;  %v4333_v31 = vmax.f32 %v4329_v15, %v6975_v58 }
0x1954   : > { %v7000_v32 = vpop.f32.mrf.mxu0 }
0x1957   : > { %v7006_v19 = vpop.f32.mrf.mxu1 }
0x1958   : > { %v3725_v33 = vmax.f32 %v3721_v45, %v7006_v19  ;;  %v4334_v45 = vmax.f32 %v4330_v42, %v6979_v59 }
0x195a   : > { %v3727_v3 = vmax.f32 %v3724_v61, %v3725_v33  ;;  %v4335_v61 = vmax.f32 %v4331_v38, %v6983_v24  ;;  %v4336_v33 = vmax.f32 %v4332_v5, %v6987_v41 }
0x195c   : > { %v3728_v7 = vmax.f32 %v3726_v22, %v3727_v3  ;;  %v7011_v2 = vpop.f32.mrf.mxu0 }
0x195e   : > { %v3729_v52 = vrot.slane %v3728_v7, 4 }
0x1960   : > { %v3730_v0 = vmax.f32 %v3728_v7, %v3729_v52  ;;  %v4337_v7 = vmax.f32 %v4333_v31, %v7000_v32 }
0x1962   : > { %v3731_v54 = vrot.slane %v3730_v0, 2 }
0x1964   : > { %v3732_v4 = vmax.f32 %v3730_v0, %v3731_v54  ;;  %v7013_v36 = vpop.f32.mrf.mxu0  ;;  %v4338_v0 = vmax.f32 %v4334_v45, %v7011_v2 }
0x1965   : > { %v4339_v15 = vmax.f32 %v4335_v61, %v7013_v36 }
0x1966   : > { %v3733_v14 = vrot.slane %v3732_v4, 1  ;;  %v4341_v38 = vmax.f32 %v4337_v7, %v4338_v0 }
0x1968   : > { %v7023_v62 = vmax.f32 %v3732_v4, %v3733_v14 }
0x196a   : > { %v3735_v9 = vsub.f32 %v6932_v30, %v7023_v62  ;;  %v3736_v10 = vsub.f32 %v6936_v35, %v7023_v62  ;;  %v3737_v22 = vsub.f32 %v6941_v13, %v7023_v62  ;;  %v3738_v52 = vsub.f32 %v6945_v25, %v7023_v62 }
0x196b   : > { %v3739_v35 = vsub.f32 %v6949_v56, %v7023_v62  ;;  %v3740_v13 = vsub.f32 %v6953_v49, %v7023_v62  ;;  %v3741_v25 = vsub.f32 %v6957_v27, %v7023_v62  ;;  %v3742_v56 = vsub.f32 %v6961_v18, %v7023_v62 }
0x196c   : > { %v7035_v3 = vpop.f32.mrf.mxu0  ;;  %v3751_v30 = vmul.f32 1.442695, %v3735_v9  ;;  %v3753_v54 = vmul.f32 1.442695, %v3736_v10  ;;  %v3755_v4 = vmul.f32 1.442695, %v3737_v22  ;;  %v3743_v49 = vsub.f32 %v6965_v16, %v7023_v62 }
0x196d   : > { %v4340_v42 = vmax.f32 %v4336_v33, %v7035_v3  ;;  %v3757_v14 = vmul.f32 1.442695, %v3738_v52  ;;  %v3759_v5 = vmul.f32 1.442695, %v3739_v35  ;;  %v3761_v45 = vmul.f32 1.442695, %v3740_v13 }
0x196e   : > { %5498 = vpow2.f32 %v3751_v30  ;;  %v3763_v33 = vmul.f32 1.442695, %v3741_v25  ;;  %v3744_v18 = vsub.f32 %v6969_v37, %v7023_v62  ;;  %v3765_v52 = vmul.f32 1.442695, %v3742_v56 }
0x196f   : > { %5500 = vpow2.f32 %v3753_v54  ;;  %v4342_v31 = vmax.f32 %v4339_v15, %v4340_v42  ;;  %v3745_v30 = vsub.f32 %v6973_v1, %v7023_v62  ;;  %v3749_v35 = vsub.f32 %v6989_v6, %v7023_v62 }
0x1970   : > { %5502 = vpow2.f32 %v3755_v4  ;;  %v3767_v4 = vmul.f32 1.442695, %v3743_v49  ;;  %v3750_v42 = vsub.f32 %v7006_v19, %v7023_v62  ;;  %v3746_v1 = vsub.f32 %v6977_v57, %v7023_v62 }
0x1971   : > { %5504 = vpow2.f32 %v3757_v14  ;;  %v4343_v9 = vmax.f32 %v4341_v38, %v4342_v31  ;;  %v3769_v14 = vmul.f32 1.442695, %v3744_v18  ;;  %v3771_v25 = vmul.f32 1.442695, %v3745_v30 }
0x1972   : > { %5506 = vpow2.f32 %v3759_v5  ;;  %v3747_v31 = vsub.f32 %v6981_v51, %v7023_v62  ;;  %v3779_v19 = vmul.f32 1.442695, %v3749_v35 }
0x1973   : > { %v4344_v22 = vrot.slane %v4343_v9, 4  ;;  %5508 = vpow2.f32 %v3761_v45  ;;  %v3748_v45 = vsub.f32 %v6985_v60, %v7023_v62 }
0x1974   : > { %v7051_v10 = vpop.eup %5498  ;;  %5510 = vpow2.f32 %v3763_v33  ;;  %v3773_v33 = vmul.f32 1.442695, %v3746_v1  ;;  %v3775_v51 = vmul.f32 1.442695, %v3747_v31 }
0x1975   : > { %v7053_v61 = vpop.eup %5500  ;;  %v4345_v0 = vmax.f32 %v4343_v9, %v4344_v22  ;;  %5512 = vpow2.f32 %v3765_v52  ;;  %v3781_v9 = vmul.f32 1.442695, %v3750_v42  ;;  %v3777_v62 = vmul.f32 1.442695, %v3748_v45 }
0x1976   : > { %v3783_v27 = vadd.f32 %v7053_v61, %v7051_v10  ;;  %v7059_v7 = vpop.eup %5502  ;;  %5514 = vpow2.f32 %v3767_v4 }
0x1977   : > { %v7066_v16 = vpop.eup %5504  ;;  %v4346_v15 = vrot.slane %v4345_v0, 2  ;;  %5516 = vpow2.f32 %v3769_v14 }
0x1978   : > { %v3784_v54 = vadd.f32 %v7059_v7, %v3783_v27  ;;  %v7073_v13 = vpop.eup %5506  ;;  %5518 = vpow2.f32 %v3771_v25 }
0x1979   : > { %v4347_v38 = vmax.f32 %v4345_v0, %v4346_v15  ;;  %v7078_v6 = vpop.eup %5508  ;;  %5520 = vpow2.f32 %v3779_v19 }
0x197a   : > { %v3785_v37 = vadd.f32 %v7066_v16, %v3784_v54  ;;  %v7085_v49 = vpop.eup %5510  ;;  %5522 = vpow2.f32 %v3781_v9 }
0x197b   : > { %v4348_v56 = vrot.slane %v4347_v38, 1  ;;  %v7090_v18 = vpop.eup %5512  ;;  %5524 = vpow2.f32 %v3773_v33 }
0x197c   : > { %v3786_v5 = vadd.f32 %v7073_v13, %v3785_v37  ;;  %v7099_v54 = vpop.eup %5514  ;;  %5526 = vpow2.f32 %v3775_v51 }
0x197d   : > { %v7087_v22 = vmax.f32 %v4347_v38, %v4348_v56  ;;  %v7104_v15 = vpop.eup %5516  ;;  %5528 = vpow2.f32 %v3777_v62 }
0x197e   : > { %v3787_v57 = vadd.f32 %v7078_v6, %v3786_v5  ;;  %v7106_v42 = vpop.eup %5518 }
0x197f   : > { %v4350_v52 = vsub.f32 %v6943_v23, %v7087_v22  ;;  %v4351_v60 = vsub.f32 %v6947_v12, %v7087_v22  ;;  %v4352_v30 = vsub.f32 %v6951_v39, %v7087_v22  ;;  %v4353_v4 = vsub.f32 %v6955_v53, %v7087_v22  ;;  %v5521_v14 = vpop.eup %5520 }
0x1980   : > { %v3788_v27 = vadd.f32 %v7085_v49, %v3787_v57  ;;  %v4354_v39 = vsub.f32 %v6959_v43, %v7087_v22  ;;  %v4355_v38 = vsub.f32 %v6963_v48, %v7087_v22  ;;  %v5523_v53 = vpop.eup %5522  ;;  %v4356_v5 = vsub.f32 %v6967_v44, %v7087_v22 }
0x1981   : > { %v4366_v23 = vmul.f32 1.442695, %v4350_v52  ;;  %v4368_v12 = vmul.f32 1.442695, %v4351_v60  ;;  %v4370_v1 = vmul.f32 1.442695, %v4352_v30  ;;  %v5525_v19 = vpop.eup %5524  ;;  %v4357_v56 = vsub.f32 %v6971_v50, %v7087_v22 }
0x1982   : > { %v3789_v0 = vadd.f32 %v7090_v18, %v3788_v27  ;;  %v4372_v31 = vmul.f32 1.442695, %v4353_v4  ;;  %v4358_v43 = vsub.f32 %v6975_v58, %v7087_v22  ;;  %v4374_v9 = vmul.f32 1.442695, %v4354_v39  ;;  %v5527_v48 = vpop.eup %5526 }
0x1983   : > { %5530 = vpow2.f32 %v4366_v23  ;;  %v4362_v57 = vsub.f32 %v7000_v32, %v7087_v22  ;;  %v4376_v33 = vmul.f32 1.442695, %v4355_v38  ;;  %v3812_v27 = vpack.c.bf16 %v5523_v53, %v5521_v14  ;;  %v5529_v51 = vpop.eup %5528 }
0x1984   : > { %v3790_v35 = vadd.f32 %v7099_v54, %v3789_v0  ;;  %5532 = vpow2.f32 %v4368_v12  ;;  %v4363_v52 = vsub.f32 %v7011_v2, %v7087_v22  ;;  %v4378_v60 = vmul.f32 1.442695, %v4356_v5 }
0x1985   : > { %5534 = vpow2.f32 %v4370_v1  ;;  %v4364_v58 = vsub.f32 %v7013_v36, %v7087_v22  ;;  %v4380_v62 = vmul.f32 1.442695, %v4357_v56  ;;  %3813 = vmatpush.bf16.msra.mxu2 %v3812_v27  ;;  %v4365_v32 = vsub.f32 %v7035_v3, %v7087_v22 }
0x1986   : > { %v3791_v37 = vadd.f32 %v7104_v15, %v3790_v35  ;;  %5536 = vpow2.f32 %v4372_v31  ;;  %v4382_v35 = vmul.f32 1.442695, %v4358_v43  ;;  %v4390_v4 = vmul.f32 1.442695, %v4362_v57 }
0x1987   : > { %5538 = vpow2.f32 %v4374_v9  ;;  %v3811_v23 = vpack.c.bf16 %v5529_v51, %v5527_v48  ;;  %v4359_v36 = vsub.f32 %v6979_v59, %v7087_v22  ;;  %v4392_v39 = vmul.f32 1.442695, %v4363_v52 }
0x1988   : > { %v3792_v25 = vadd.f32 %v7106_v42, %v3791_v37  ;;  %5540 = vpow2.f32 %v4376_v33  ;;  %v4360_v1 = vsub.f32 %v6983_v24, %v7087_v22  ;;  %v4394_v3 = vmul.f32 1.442695, %v4364_v58 }
0x1989   : > { %v7124_v50 = vpop.eup %5530  ;;  %5542 = vpow2.f32 %v4378_v60  ;;  %3814 = vmatpush.bf16.msra.mxu2 %v3811_v23  ;;  %v4396_v31 = vmul.f32 1.442695, %v4365_v32  ;;  %v3810_v56 = vpack.c.bf16 %v5525_v19, %v7106_v42  ;;  %v3808_v60 = vpack.c.bf16 %v7090_v18, %v7085_v49 }
0x198a   : > { %v3793_v45 = vadd.f32 %v5525_v19, %v3792_v25  ;;  %v7128_v0 = vpop.eup %5532  ;;  %5544 = vpow2.f32 %v4380_v62  ;;  %v4386_v9 = vmul.f32 1.442695, %v4360_v1  ;;  %v3611_v18 = vpack.c.bf16 %v6872_v26, %v6872_v26 }
0x198b   : > { %v4398_v2 = vadd.f32 %v7128_v0, %v7124_v50  ;;  %v7134_v12 = vpop.eup %5534  ;;  %5546 = vpow2.f32 %v4382_v35 }
0x198c   : > { %v3794_v44 = vadd.f32 %v5527_v48, %v3793_v45  ;;  %v7141_v25 = vpop.eup %5536  ;;  %5548 = vpow2.f32 %v4390_v4  ;;  %v4384_v45 = vmul.f32 1.442695, %v4359_v36  ;;  %v3806_v36 = vpack.c.bf16 %v7066_v16, %v7059_v7 }
0x198d   : > { %v4399_v38 = vadd.f32 %v7134_v12, %v4398_v2  ;;  %v5539_v24 = vpop.eup %5538  ;;  %5550 = vpow2.f32 %v4392_v39  ;;  %3815 = vmatpush.bf16.msra.mxu2 %v3810_v56  ;;  %v3868_v7 = vsel %vm610_vm1, %v3611_v18, 0 }
0x198e   : > { %v3795_v30 = vadd.f32 %v5529_v51, %v3794_v44  ;;  %v5541_v43 = vpop.eup %5540  ;;  %5552 = vpow2.f32 %v4394_v3  ;;  %v3618_v3 = vpack.c.bf16 %v6922_v29, %v6922_v29  ;;  %v3621_v29 = vpack.c.bf16 %v6939_v34, %v6939_v34 }
0x198f   : > { %v4400_v59 = vadd.f32 %v7141_v25, %v4399_v38  ;;  %5554 = vpow2.f32 %v4396_v31  ;;  %v4422_v26 = vpack.c.bf16 %v5541_v43, %v5539_v24  ;;  %v3835_v31 = vpop.trf.xlu0 }
0x1990   : > { %v3796_v37 = vadd.f32 %v5521_v14, %v3795_v30  ;;  %v4361_v14 = vsub.f32 %v6987_v41, %v7087_v22  ;;  %v3809_v22 = vpack.c.bf16 %v7104_v15, %v7099_v54  ;;  %5556 = vpow2.f32 %v4384_v45 }
0x1991   : > { %v4401_v48 = vadd.f32 %v5539_v24, %v4400_v59  ;;  %5558 = vpow2.f32 %v4386_v9  ;;  %v3807_v15 = vpack.c.bf16 %v7078_v6, %v7073_v13  ;;  %v3805_v13 = vpack.c.bf16 %v7053_v61, %v7051_v10 }
0x1992   : > { %v7143_v5 = vadd.f32 %v5523_v53, %v3796_v37  ;;  %v5543_v53 = vpop.eup %5542  ;;  %v4388_v57 = vmul.f32 1.442695, %v4361_v14  ;;  %3816 = vmatpush.bf16.msra.mxu2 %v3809_v22  ;;  %v4421_v10 = vpack.c.bf16 %v7141_v25, %v7134_v12  ;;  %v4420_v61 = vpack.c.bf16 %v7128_v0, %v7124_v50 }
0x1993   : > { %v5545_v33 = vpop.eup %5544  ;;  %v4402_v41 = vadd.f32 %v5541_v43, %v4401_v48 }
0x1994   : > { %v5547_v27 = vpop.eup %5546  ;;  %5560 = vpow2.f32 %v4388_v57  ;;  %v4423_v14 = vpack.c.bf16 %v5545_v33, %v5543_v53  ;;  %v3798_v34 = vrot.slane %v7143_v5, 4 }
0x1995   : > { %v5549_v51 = vpop.eup %5548  ;;  %v4403_v42 = vadd.f32 %v5543_v53, %v4402_v41 }
0x1996   : > { %v5551_v19 = vpop.eup %5550  ;;  %3817 = vmatpush.bf16.msra.mxu2 %v3808_v60  ;;  %v3799_v0 = vadd.f32 %v3798_v34, %v7143_v5 }
0x1997   : > { %v5553_v44 = vpop.eup %5552  ;;  %v4404_v52 = vadd.f32 %v5545_v33, %v4403_v42  ;;  %v4426_v4 = vpack.c.bf16 %v5551_v19, %v5549_v51  ;;  %v3836_v59 = vpop.trf.xlu0 }
0x1998   : > { %v5555_v58 = vpop.eup %5554  ;;  %v3800_v25 = vrot.slane %v3799_v0, 2 }
0x1999   : > { %v4405_v62 = vadd.f32 %v5547_v27, %v4404_v52  ;;  %v4427_v30 = vpack.c.bf16 %v5555_v58, %v5553_v44  ;;  %v5557_v32 = vpop.eup %5556 }
0x199a   : > { %v5559_v35 = vpop.eup %5558  ;;  %3818 = vmatpush.bf16.msra.mxu2 %v3807_v15  ;;  %v4424_v6 = vpack.c.bf16 %v5557_v32, %v5547_v27  ;;  %v3801_v9 = vadd.f32 %v3800_v25, %v3799_v0 }
0x199b   : > { %v4406_v54 = vadd.f32 %v5557_v32, %v4405_v62  ;;  %4428 = vmatpush.bf16.msra.mxu1 %v4427_v30  ;;  %v5561_v2 = vpop.eup %5560 }
0x199c   : > { %v4425_v49 = vpack.c.bf16 %v5561_v2, %v5559_v35  ;;  %v3802_v53 = vrot.slane %v3801_v9, 1 }
0x199d   : > { %v4407_v23 = vadd.f32 %v5559_v35, %v4406_v54 }
0x199e   : > { %3819 = vmatpush.bf16.msra.mxu2 %v3806_v36  ;;  %v3803_v33 = vadd.f32 %v3802_v53, %v3801_v9 }
0x199f   : > { %v4408_v37 = vadd.f32 %v5561_v2, %v4407_v23  ;;  %4429 = vmatpush.bf16.msra.mxu1 %v4426_v4  ;;  %v3837_v56 = vpop.trf.xlu0 }
0x19a0   : > { %5562 = vrcp.f32 %v3803_v33 }
0x19a1   : > { %v4409_v39 = vadd.f32 %v5549_v51, %v4408_v37 }
0x19a2   : > { %3820 = vmatpush.bf16.msra.mxu2 %v3805_v13 }
0x19a3   : > { %v4410_v1 = vadd.f32 %v5551_v19, %v4409_v39  ;;  %4430 = vmatpush.bf16.msra.mxu1 %v4425_v49 }
0x19a5   : > { %v4411_v38 = vadd.f32 %v5553_v44, %v4410_v1  ;;  %3821 = vmatmul.bf16.vlgmr.msra.gmra.mxu2 %v3618_v3 }
0x19a6   : > { %3877 = vmatpush.bf16.msrb.mxu2 %v3868_v7  ;;  %v5563_v51 = vpop.eup %5562 }
0x19a7   : > { %v4412_v16 = vadd.f32 %v5555_v58, %v4411_v38  ;;  %4431 = vmatpush.bf16.msra.mxu1 %v4424_v6  ;;  %v3838_v24 = vpop.trf.xlu0 }
0x19a9   : > { %v4413_v43 = vrot.slane %v4412_v16, 4 }
0x19ab   : > { %4432 = vmatpush.bf16.msra.mxu1 %v4423_v14  ;;  %v4414_v48 = vadd.f32 %v4413_v43, %v4412_v16 }
0x19ad   : > { %v4415_v57 = vrot.slane %v4414_v48, 2 }
0x19af   : > { %4433 = vmatpush.bf16.msra.mxu1 %v4422_v26  ;;  %v3839_v12 = vpop.trf.xlu0  ;;  %v4416_v41 = vadd.f32 %v4415_v57, %v4414_v48 }
0x19b1   : > { %v4417_v27 = vrot.slane %v4416_v41, 1 }
0x19b3   : > { %4434 = vmatpush.bf16.msra.mxu1 %v4421_v10  ;;  %v4418_v19 = vadd.f32 %v4417_v27, %v4416_v41 }
0x19b5   : > { %4934 = vmatmul.msk.bf16.vlgmr.msrb.gmra.mxu2 %vm585_vm2, %v3835_v31  ;;  %5564 = vrcp.f32 %v4418_v19 }
0x19b7   : > { %4435 = vmatpush.bf16.msra.mxu1 %v4420_v61  ;;  %v3840_v50 = vpop.trf.xlu0 }
0x19ba   : > { %4436 = vmatmul.bf16.vlgmr.msra.gmra.mxu1 %v3621_v29 }
0x19bb   : > { %v5565_v52 = vpop.eup %5564 }
0x19bf   : > { %v3841_v45 = vpop.trf.xlu0 }
0x19c5   : > { %4935 = vmatmul.msk.bf16.gmra.mxu2 %vm585_vm2, %v3836_v59 }
0x19c7   : > { %v3842_v22 = vpop.trf.xlu0 }
0x19d5   : > { %4936 = vmatmul.msk.bf16.gmra.mxu2 %vm585_vm2, %v3837_v56 }
0x19e5   : > { %4937 = vmatmul.msk.bf16.gmra.mxu2 %vm585_vm2, %v3838_v24 }
0x19f5   : > { %4938 = vmatmul.msk.bf16.gmra.mxu2 %vm585_vm2, %v3839_v12 }
0x1a05   : > { %4939 = vmatmul.msk.bf16.gmra.mxu2 %vm585_vm2, %v3840_v50 }
0x1a15   : > { %4940 = vmatmul.msk.bf16.gmra.mxu2 %vm585_vm2, %v3841_v45 }
0x1a25   : > { %4941 = vmatmul.msk.bf16.gmra.mxu2 %vm585_vm2, %v3842_v22 }
0x1a28   : > { %v3822_v42 = vpop.f32.mrf.mxu2 }
0x1a29   : > { %v7180_v5 = vmul.f32 %v5563_v51, %v3822_v42 }
0x1a30   : > { %v3824_v44 = vpop.f32.mrf.mxu2 }
0x1a37   : > { %v4437_v60 = vpop.f32.mrf.mxu1 }
0x1a38   : > { %v7182_v58 = vmul.f32 %v5565_v52, %v4437_v60  ;;  %v3879_v62 = vpop.f32.mrf.mxu2 }
0x1a3f   : > { %v4439_v30 = vpop.f32.mrf.mxu1 }
0x1a40   : > { %v3881_v32 = vpop.f32.mrf.mxu2 }
0x1a48   : > { %v3884_v35 = vpop.f32.mrf.mxu2 }
0x1a50   : > { %v3886_v54 = vpop.f32.mrf.mxu2 }
0x1a58   : > { %v3889_v15 = vpop.f32.mrf.mxu2 }
0x1a59   : > { %v3919_v3 = vmax.f32 %v3879_v62, %v3889_v15 }
0x1a60   : > { %v3891_v4 = vpop.f32.mrf.mxu2 }
0x1a61   : > { %v3920_v6 = vmax.f32 %v3881_v32, %v3891_v4 }
0x1a68   : > { %v3894_v2 = vpop.f32.mrf.mxu2 }
0x1a69   : > { %v3921_v38 = vmax.f32 %v3884_v35, %v3894_v2 }
0x1a70   : > { %v3896_v23 = vpop.f32.mrf.mxu2 }
0x1a71   : > { %v3922_v7 = vmax.f32 %v3886_v54, %v3896_v23 }
0x1a78   : > { %v3899_v37 = vpop.f32.mrf.mxu2 }
0x1a79   : > { %v3923_v14 = vmax.f32 %v3919_v3, %v3899_v37 }
0x1a80   : > { %v3901_v36 = vpop.f32.mrf.mxu2 }
0x1a81   : > { %v3924_v16 = vmax.f32 %v3920_v6, %v3901_v36 }
0x1a88   : > { %v7184_v49 = vpop.f32.mrf.mxu2 }
0x1a89   : > { %v3925_v26 = vmax.f32 %v3921_v38, %v7184_v49 }
0x1a90   : > { %v7186_v18 = vpop.f32.mrf.mxu2 }
0x1a91   : > { %v3926_v10 = vmax.f32 %v3922_v7, %v7186_v18 }
0x1a98   : > { %v7188_v39 = vpop.f32.mrf.mxu2 }
0x1a99   : > { %v3927_v31 = vmax.f32 %v3923_v14, %v7188_v39 }
0x1aa0   : > { %v7190_v1 = vpop.f32.mrf.mxu2 }
0x1aa1   : > { %v3928_v61 = vmax.f32 %v3924_v16, %v7190_v1 }
0x1aa3   : > { %v3931_v24 = vmax.f32 %v3927_v31, %v3928_v61 }
0x1aa8   : > { %v3914_v13 = vpop.f32.mrf.mxu2 }
0x1aa9   : > { %v3929_v59 = vmax.f32 %v3925_v26, %v3914_v13 }
0x1ab0   : > { %v3916_v29 = vpop.f32.mrf.mxu2 }
0x1ab1   : > { %v3930_v56 = vmax.f32 %v3926_v10, %v3916_v29 }
0x1ab3   : > { %v3932_v12 = vmax.f32 %v3929_v59, %v3930_v56 }
0x1ab5   : > { %v3933_v50 = vmax.f32 %v3931_v24, %v3932_v12 }
0x1ab7   : > { %v3934_v34 = vrot.slane %v3933_v50, 4 }
0x1ab9   : > { %v3935_v0 = vmax.f32 %v3933_v50, %v3934_v34 }
0x1abb   : > { %v3936_v25 = vrot.slane %v3935_v0, 2 }
0x1abd   : > { %v3937_v45 = vmax.f32 %v3935_v0, %v3936_v25 }
0x1abf   : > { %v3938_v43 = vrot.slane %v3937_v45, 1 }
0x1ac1   : > { %v3939_v9 = vmax.f32 %v3937_v45, %v3938_v43 }
0x1ac3   : > { %v3940_v48 = vsub.f32 %v3879_v62, %v3939_v9  ;;  %v3941_v53 = vsub.f32 %v3881_v32, %v3939_v9  ;;  %v3942_v57 = vsub.f32 %v3884_v35, %v3939_v9  ;;  %v3943_v33 = vsub.f32 %v3886_v54, %v3939_v9 }
0x1ac4   : > { %v3944_v27 = vsub.f32 %v3889_v15, %v3939_v9  ;;  %v3945_v42 = vsub.f32 %v3891_v4, %v3939_v9  ;;  %v3946_v44 = vsub.f32 %v3894_v2, %v3939_v9  ;;  %v3947_v52 = vsub.f32 %v3896_v23, %v3939_v9 }
0x1ac5   : > { %v3956_v41 = vmul.f32 1.442695, %v3940_v48  ;;  %v3958_v22 = vmul.f32 1.442695, %v3941_v53  ;;  %v3960_v51 = vmul.f32 1.442695, %v3942_v57  ;;  %v3948_v30 = vsub.f32 %v3899_v37, %v3939_v9 }
0x1ac6   : > { %v3962_v19 = vmul.f32 1.442695, %v3943_v33  ;;  %v3964_v60 = vmul.f32 1.442695, %v3944_v27  ;;  %v3949_v6 = vsub.f32 %v3901_v36, %v3939_v9  ;;  %v3966_v3 = vmul.f32 1.442695, %v3945_v42 }
0x1ac7   : > { %5566 = vpow2.f32 %v3956_v41  ;;  %v3954_v32 = vsub.f32 %v3914_v13, %v3939_v9  ;;  %v3968_v35 = vmul.f32 1.442695, %v3946_v44  ;;  %v3955_v15 = vsub.f32 %v3916_v29, %v3939_v9 }
0x1ac8   : > { %5568 = vpow2.f32 %v3958_v22  ;;  %v3970_v38 = vmul.f32 1.442695, %v3947_v52  ;;  %v3952_v4 = vsub.f32 %v7188_v39, %v3939_v9  ;;  %v3972_v7 = vmul.f32 1.442695, %v3948_v30 }
0x1ac9   : > { %5570 = vpow2.f32 %v3960_v51  ;;  %v3953_v37 = vsub.f32 %v7190_v1, %v3939_v9  ;;  %v3974_v36 = vmul.f32 1.442695, %v3949_v6  ;;  %v3984_v13 = vmul.f32 1.442695, %v3954_v32 }
0x1aca   : > { %5572 = vpow2.f32 %v3962_v19  ;;  %v3950_v26 = vsub.f32 %v7184_v49, %v3939_v9  ;;  %v3986_v10 = vmul.f32 1.442695, %v3955_v15  ;;  %v3980_v39 = vmul.f32 1.442695, %v3952_v4 }
0x1acb   : > { %5574 = vpow2.f32 %v3964_v60  ;;  %v3951_v31 = vsub.f32 %v7186_v18, %v3939_v9  ;;  %v3982_v59 = vmul.f32 1.442695, %v3953_v37  ;;  %v7239_v37 = vld [vmem:[%s6161_s26 + $0x48] sm:$0xff] }
0x1acc   : > { %5576 = vpow2.f32 %v3966_v3  ;;  %v3976_v24 = vmul.f32 1.442695, %v3950_v26 }
0x1acd   : > { %v7196_v62 = vpop.eup %5566  ;;  %5578 = vpow2.f32 %v3968_v35  ;;  %v3978_v49 = vmul.f32 1.442695, %v3951_v31 }
0x1ace   : > { %v7198_v54 = vpop.eup %5568  ;;  %5580 = vpow2.f32 %v3970_v38  ;;  %v3612_v38 = vpack.c.bf16 %v6874_v55, %v6874_v55 }
0x1acf   : > { %v3988_v2 = vadd.f32 %v7198_v54, %v7196_v62  ;;  %v7203_v23 = vpop.eup %5570  ;;  %5582 = vpow2.f32 %v3972_v7  ;;  %v4010_v4 = vpack.c.bf16 %v7198_v54, %v7196_v62 }
0x1ad0   : > { %v5573_v14 = vpop.eup %5572  ;;  %5584 = vpow2.f32 %v3974_v36  ;;  %v4073_v7 = vsel %vm610_vm1, %v3612_v38, 0 }
0x1ad1   : > { %v3989_v16 = vadd.f32 %v7203_v23, %v3988_v2  ;;  %v5575_v29 = vpop.eup %5574  ;;  %5586 = vpow2.f32 %v3984_v13  ;;  %v4011_v15 = vpack.c.bf16 %v5573_v14, %v7203_v23  ;;  %v3619_v2 = vpack.c.bf16 %v6927_v40, %v6927_v40  ;;  %v7234_v23 = vld [vmem:[%s6161_s26 + $0x40] sm:$0xff] }
0x1ad2   : > { %v5577_v56 = vpop.eup %5576  ;;  %5588 = vpow2.f32 %v3986_v10 }
0x1ad3   : > { %v3990_v61 = vadd.f32 %v5573_v14, %v3989_v16  ;;  %v5579_v12 = vpop.eup %5578  ;;  %5590 = vpow2.f32 %v3980_v39  ;;  %v4012_v35 = vpack.c.bf16 %v5577_v56, %v5575_v29 }
0x1ad4   : > { %v5581_v34 = vpop.eup %5580  ;;  %5592 = vpow2.f32 %v3982_v59 }
0x1ad5   : > { %v3991_v1 = vadd.f32 %v5575_v29, %v3990_v61  ;;  %v5583_v0 = vpop.eup %5582  ;;  %5594 = vpow2.f32 %v3976_v24  ;;  %v4013_v32 = vpack.c.bf16 %v5581_v34, %v5579_v12 }
0x1ad6   : > { %v5585_v45 = vpop.eup %5584  ;;  %5596 = vpow2.f32 %v3978_v49 }
0x1ad7   : > { %v3992_v50 = vadd.f32 %v5577_v56, %v3991_v1  ;;  %v5587_v43 = vpop.eup %5586  ;;  %v4014_v6 = vpack.c.bf16 %v5585_v45, %v5583_v0 }
0x1ad8   : > { %v5589_v18 = vpop.eup %5588 }
0x1ad9   : > { %v3993_v25 = vadd.f32 %v5579_v12, %v3992_v50  ;;  %v5591_v9 = vpop.eup %5590  ;;  %v4017_v57 = vpack.c.bf16 %v5589_v18, %v5587_v43 }
0x1ada   : > { %v5593_v33 = vpop.eup %5592 }
0x1adb   : > { %v3994_v48 = vadd.f32 %v5581_v34, %v3993_v25  ;;  %4018 = vmatpush.bf16.msrb.mxu3 %v4017_v57  ;;  %v5595_v22 = vpop.eup %5594  ;;  %v4016_v51 = vpack.c.bf16 %v5593_v33, %v5591_v9 }
0x1adc   : > { %v5597_v42 = vpop.eup %5596 }
0x1add   : > { %v3995_v53 = vadd.f32 %v5583_v0, %v3994_v48  ;;  %v4015_v52 = vpack.c.bf16 %v5597_v42, %v5595_v22 }
0x1adf   : > { %v3996_v41 = vadd.f32 %v5585_v45, %v3995_v53  ;;  %4019 = vmatpush.bf16.msrb.mxu3 %v4016_v51 }
0x1ae1   : > { %v3997_v27 = vadd.f32 %v5595_v22, %v3996_v41 }
0x1ae3   : > { %v3998_v19 = vadd.f32 %v5597_v42, %v3997_v27  ;;  %4020 = vmatpush.bf16.msrb.mxu3 %v4015_v52 }
0x1ae5   : > { %v3999_v44 = vadd.f32 %v5591_v9, %v3998_v19 }
0x1ae7   : > { %v4000_v60 = vadd.f32 %v5593_v33, %v3999_v44  ;;  %4021 = vmatpush.bf16.msrb.mxu3 %v4014_v6 }
0x1ae9   : > { %v4001_v30 = vadd.f32 %v5587_v43, %v4000_v60 }
0x1aeb   : > { %v4002_v3 = vadd.f32 %v5589_v18, %v4001_v30  ;;  %4022 = vmatpush.bf16.msrb.mxu3 %v4013_v32 }
0x1aed   : > { %v4003_v55 = vrot.slane %v4002_v3, 4 }
0x1aef   : > { %4023 = vmatpush.bf16.msrb.mxu3 %v4012_v35  ;;  %v4004_v40 = vadd.f32 %v4003_v55, %v4002_v3 }
0x1af3   : > { %4024 = vmatpush.bf16.msrb.mxu3 %v4011_v15 }
0x1af7   : > { %4025 = vmatpush.bf16.msrb.mxu3 %v4010_v4 }
0x1afa   : > { %4026 = vmatmul.bf16.vlgmr.msrb.gmra.mxu3 %v3619_v2 }
0x1afb   : > { %4082 = vmatpush.bf16.msra.mxu3 %v4073_v7 }
0x1b0a   : > { %4942 = vmatmul.msk.bf16.vlgmr.msra.gmra.mxu3 %vm585_vm2, %v6886_v46  ;;  %v4005_v46 = vrot.slane %v4004_v40, 2 }
0x1b1a   : > { %4943 = vmatmul.msk.bf16.gmra.mxu3 %vm585_vm2, %v6893_v11  ;;  %v4006_v11 = vadd.f32 %v4005_v46, %v4004_v40 }
0x1b1c   : > { %v4007_v62 = vrot.slane %v4006_v11, 1 }
0x1b2a   : > { %4944 = vmatmul.msk.bf16.gmra.mxu3 %vm585_vm2, %v6900_v17  ;;  %v4008_v17 = vadd.f32 %v4007_v62, %v4006_v11 }
0x1b2c   : > { %5598 = vrcp.f32 %v4008_v17 }
0x1b3a   : > { %4945 = vmatmul.msk.bf16.gmra.mxu3 %vm585_vm2, %v6907_v63  ;;  %v5599_v63 = vpop.eup %5598 }
0x1b4a   : > { %4946 = vmatmul.msk.bf16.gmra.mxu3 %vm585_vm2, %v6914_v21 }
0x1b5a   : > { %4947 = vmatmul.msk.bf16.gmra.mxu3 %vm585_vm2, %v6918_v28  ;;  %v4442_v28 = vsub.f32 %v7180_v5, %v7234_v23 }
0x1b6a   : > { %4948 = vmatmul.msk.bf16.gmra.mxu3 %vm585_vm2, %v6924_v47 }
0x1b7a   : > { %4949 = vmatmul.msk.bf16.gmra.mxu3 %vm585_vm2, %v6930_v8 }
0x1b7d   : > { %v4027_v54 = vpop.f32.mrf.mxu3 }
0x1b7e   : > { %v4031_v21 = vmul.f32 %v5599_v63, %v4027_v54 }
0x1b80   : > { %v4443_v36 = vsub.f32 %v4031_v21, %v7239_v37 }
0x1b82   : > { %v7242_v47 = vpack.c.bf16 %v4443_v36, %v4442_v28 }
0x1b85   : > { %v4029_v13 = vpop.f32.mrf.mxu3 }
0x1b8d   : > { %v4084_v16 = vpop.f32.mrf.mxu3 }
0x1b95   : > { %v4086_v14 = vpop.f32.mrf.mxu3 }
0x1b9d   : > { %v4089_v26 = vpop.f32.mrf.mxu3 }
0x1ba5   : > { %v4091_v10 = vpop.f32.mrf.mxu3 }
0x1bad   : > { %v4094_v8 = vpop.f32.mrf.mxu3 }
0x1bae   : > { %v4124_v34 = vmax.f32 %v4084_v16, %v4094_v8 }
0x1bb5   : > { %v4096_v39 = vpop.f32.mrf.mxu3 }
0x1bb6   : > { %v4125_v50 = vmax.f32 %v4086_v14, %v4096_v39 }
0x1bbd   : > { %v4099_v61 = vpop.f32.mrf.mxu3 }
0x1bbe   : > { %v4126_v49 = vmax.f32 %v4089_v26, %v4099_v61 }
0x1bc5   : > { %v4101_v29 = vpop.f32.mrf.mxu3 }
0x1bc6   : > { %v4127_v0 = vmax.f32 %v4091_v10, %v4101_v29 }
0x1bcd   : > { %v4104_v31 = vpop.f32.mrf.mxu3 }
0x1bce   : > { %v4128_v45 = vmax.f32 %v4124_v34, %v4104_v31 }
0x1bd5   : > { %v4106_v59 = vpop.f32.mrf.mxu3 }
0x1bd6   : > { %v4129_v25 = vmax.f32 %v4125_v50, %v4106_v59 }
0x1bdd   : > { %v7244_v1 = vpop.f32.mrf.mxu3 }
0x1bde   : > { %v4130_v43 = vmax.f32 %v4126_v49, %v7244_v1 }
0x1be5   : > { %v7246_v5 = vpop.f32.mrf.mxu3 }
0x1be6   : > { %v4131_v48 = vmax.f32 %v4127_v0, %v7246_v5 }
0x1bed   : > { %v7248_v56 = vpop.f32.mrf.mxu3 }
0x1bee   : > { %v4132_v53 = vmax.f32 %v4128_v45, %v7248_v56 }
0x1bf5   : > { %v7250_v24 = vpop.f32.mrf.mxu3 }
0x1bf6   : > { %v4133_v18 = vmax.f32 %v4129_v25, %v7250_v24 }
0x1bf8   : > { %v4136_v41 = vmax.f32 %v4132_v53, %v4133_v18 }
0x1bfd   : > { %v4119_v12 = vpop.f32.mrf.mxu3 }
0x1bfe   : > { %v4134_v57 = vmax.f32 %v4130_v43, %v4119_v12 }
0x1c05   : > { %v4121_v9 = vpop.f32.mrf.mxu3 }
0x1c06   : > { %v4135_v33 = vmax.f32 %v4131_v48, %v4121_v9 }
0x1c08   : > { %v4137_v22 = vmax.f32 %v4134_v57, %v4135_v33 }
0x1c0a   : > { %v4138_v27 = vmax.f32 %v4136_v41, %v4137_v22 }
0x1c0c   : > { %v4139_v51 = vrot.slane %v4138_v27, 4 }
0x1c0e   : > { %v4140_v42 = vmax.f32 %v4138_v27, %v4139_v51 }
0x1c10   : > { %v4141_v19 = vrot.slane %v4140_v42, 2 }
0x1c12   : > { %v4142_v44 = vmax.f32 %v4140_v42, %v4141_v19 }
0x1c14   : > { %v4143_v52 = vrot.slane %v4142_v44, 1 }
0x1c16   : > { %v4144_v60 = vmax.f32 %v4142_v44, %v4143_v52 }
0x1c18   : > { %v4145_v30 = vsub.f32 %v4084_v16, %v4144_v60  ;;  %v4146_v6 = vsub.f32 %v4086_v14, %v4144_v60  ;;  %v4147_v3 = vsub.f32 %v4089_v26, %v4144_v60  ;;  %v4148_v32 = vsub.f32 %v4091_v10, %v4144_v60 }
0x1c19   : > { %v4149_v38 = vsub.f32 %v4094_v8, %v4144_v60  ;;  %v4150_v7 = vsub.f32 %v4096_v39, %v4144_v60  ;;  %v4151_v55 = vsub.f32 %v4099_v61, %v4144_v60  ;;  %v4152_v40 = vsub.f32 %v4101_v29, %v4144_v60 }
0x1c1a   : > { %v4161_v35 = vmul.f32 1.442695, %v4145_v30  ;;  %v4163_v15 = vmul.f32 1.442695, %v4146_v6  ;;  %v4165_v4 = vmul.f32 1.442695, %v4147_v3  ;;  %v4153_v11 = vsub.f32 %v4104_v31, %v4144_v60 }
0x1c1b   : > { %v4167_v2 = vmul.f32 1.442695, %v4148_v32  ;;  %v4169_v46 = vmul.f32 1.442695, %v4149_v38  ;;  %v4154_v62 = vsub.f32 %v4106_v59, %v4144_v60  ;;  %v4171_v17 = vmul.f32 1.442695, %v4150_v7 }
0x1c1c   : > { %5600 = vpow2.f32 %v4161_v35  ;;  %v4159_v54 = vsub.f32 %v4119_v12, %v4144_v60  ;;  %v4173_v21 = vmul.f32 1.442695, %v4151_v55  ;;  %v4160_v36 = vsub.f32 %v4121_v9, %v4144_v60 }
0x1c1d   : > { %5602 = vpow2.f32 %v4163_v15  ;;  %v4175_v13 = vmul.f32 1.442695, %v4152_v40  ;;  %v4157_v16 = vsub.f32 %v7248_v56, %v4144_v60  ;;  %v4177_v14 = vmul.f32 1.442695, %v4153_v11 }
0x1c1e   : > { %5604 = vpow2.f32 %v4165_v4  ;;  %v4158_v8 = vsub.f32 %v7250_v24, %v4144_v60  ;;  %v4179_v39 = vmul.f32 1.442695, %v4154_v62  ;;  %v4189_v61 = vmul.f32 1.442695, %v4159_v54 }
0x1c1f   : > { %5606 = vpow2.f32 %v4167_v2  ;;  %v4155_v59 = vsub.f32 %v7244_v1, %v4144_v60  ;;  %v4191_v12 = vmul.f32 1.442695, %v4160_v36  ;;  %v4185_v50 = vmul.f32 1.442695, %v4157_v16 }
0x1c20   : > { %5608 = vpow2.f32 %v4169_v46  ;;  %v4156_v49 = vsub.f32 %v7246_v5, %v4144_v60  ;;  %v4187_v0 = vmul.f32 1.442695, %v4158_v8  ;;  %v3620_v46 = vpack.c.bf16 %v6934_v20, %v6934_v20 }
0x1c21   : > { %5610 = vpow2.f32 %v4171_v17  ;;  %v4181_v45 = vmul.f32 1.442695, %v4155_v59 }
0x1c22   : > { %v7256_v63 = vpop.eup %5600  ;;  %5612 = vpow2.f32 %v4173_v21  ;;  %v4183_v1 = vmul.f32 1.442695, %v4156_v49 }
0x1c23   : > { %v7258_v28 = vpop.eup %5602  ;;  %5614 = vpow2.f32 %v4175_v13 }
0x1c24   : > { %v4193_v26 = vadd.f32 %v7258_v28, %v7256_v63  ;;  %v5605_v10 = vpop.eup %5604  ;;  %5616 = vpow2.f32 %v4177_v14  ;;  %v4215_v40 = vpack.c.bf16 %v7258_v28, %v7256_v63  ;;  %v5645_v63 = vld [vmem:[%s6161_s26 + $0x50] sm:$0xff] }
0x1c25   : > { %v5607_v31 = vpop.eup %5606  ;;  %5618 = vpow2.f32 %v4179_v39  ;;  %v5008_v39 = vld [vmem:[%s7328_s6 + $0x30] sm:$0xff] }
0x1c26   : > { %v4194_v29 = vadd.f32 %v5605_v10, %v4193_v26  ;;  %v5609_v34 = vpop.eup %5608  ;;  %5620 = vpow2.f32 %v4189_v61  ;;  %v4216_v55 = vpack.c.bf16 %v5607_v31, %v5605_v10  ;;  %v5644_v26 = vld [vmem:[%s6161_s26 + $0x58] sm:$0xff] }
0x1c27   : > { %v5611_v25 = vpop.eup %5610  ;;  %5622 = vpow2.f32 %v4191_v12  ;;  %v4445_v10 = vsub.f32 %v7182_v58, %v5644_v26  ;;  %v5009_v61 = vld [vmem:[%s7328_s6 + $0x38] sm:$0xff]  ;;  %v4451_v58 = vpop.permute.xlu0 %4450 }
0x1c28   : > { %v4195_v56 = vadd.f32 %v5607_v31, %v4194_v29  ;;  %v5613_v43 = vpop.eup %5612  ;;  %5624 = vpow2.f32 %v4185_v50  ;;  %v4217_v2 = vpack.c.bf16 %v5611_v25, %v5609_v34  ;;  %v4456_v50 = vpop.permute.xlu2 %4455 }
0x1c29   : > { %v5615_v18 = vpop.eup %5614  ;;  %5626 = vpow2.f32 %v4187_v0  ;;  %v4461_v0 = vpop.permute.xlu1 %4460 }
0x1c2a   : > { %v4196_v24 = vadd.f32 %v5609_v34, %v4195_v56  ;;  %v5617_v9 = vpop.eup %5616  ;;  %5628 = vpow2.f32 %v4181_v45  ;;  %v4218_v7 = vpack.c.bf16 %v5615_v18, %v5613_v43 }
0x1c2b   : > { %v5619_v57 = vpop.eup %5618  ;;  %5630 = vpow2.f32 %v4183_v1 }
0x1c2c   : > { %v4197_v48 = vadd.f32 %v5611_v25, %v4196_v24  ;;  %v5621_v33 = vpop.eup %5620  ;;  %v4219_v38 = vpack.c.bf16 %v5619_v57, %v5617_v9 }
0x1c2d   : > { %v5623_v5 = vpop.eup %5622 }
0x1c2e   : > { %v4198_v53 = vadd.f32 %v5613_v43, %v4197_v48  ;;  %v5625_v22 = vpop.eup %5624  ;;  %v4222_v51 = vpack.c.bf16 %v5623_v5, %v5621_v33 }
0x1c2f   : > { %v5627_v42 = vpop.eup %5626 }
0x1c30   : > { %v4199_v41 = vadd.f32 %v5615_v18, %v4198_v53  ;;  %4223 = vmatpush.bf16.msra.mxu2 %v4222_v51  ;;  %v5629_v44 = vpop.eup %5628  ;;  %v4221_v60 = vpack.c.bf16 %v5627_v42, %v5625_v22 }
0x1c31   : > { %v5631_v30 = vpop.eup %5630 }
0x1c32   : > { %v4200_v27 = vadd.f32 %v5617_v9, %v4199_v41  ;;  %v4220_v32 = vpack.c.bf16 %v5631_v30, %v5629_v44 }
0x1c34   : > { %v4201_v19 = vadd.f32 %v5619_v57, %v4200_v27  ;;  %4224 = vmatpush.bf16.msra.mxu2 %v4221_v60 }
0x1c36   : > { %v4202_v52 = vadd.f32 %v5629_v44, %v4201_v19 }
0x1c38   : > { %v4203_v6 = vadd.f32 %v5631_v30, %v4202_v52  ;;  %4225 = vmatpush.bf16.msra.mxu2 %v4220_v32 }
0x1c3a   : > { %v4204_v3 = vadd.f32 %v5625_v22, %v4203_v6 }
0x1c3c   : > { %v4205_v35 = vadd.f32 %v5627_v42, %v4204_v3  ;;  %4226 = vmatpush.bf16.msra.mxu2 %v4219_v38 }
0x1c3e   : > { %v4206_v15 = vadd.f32 %v5621_v33, %v4205_v35 }
0x1c40   : > { %v4207_v4 = vadd.f32 %v5623_v5, %v4206_v15  ;;  %4227 = vmatpush.bf16.msra.mxu2 %v4218_v7 }
0x1c42   : > { %v4208_v11 = vrot.slane %v4207_v4, 4 }
0x1c44   : > { %4228 = vmatpush.bf16.msra.mxu2 %v4217_v2  ;;  %v4209_v62 = vadd.f32 %v4208_v11, %v4207_v4 }
0x1c46   : > { %v4210_v17 = vrot.slane %v4209_v62, 2 }
0x1c48   : > { %4229 = vmatpush.bf16.msra.mxu2 %v4216_v55  ;;  %v4211_v54 = vadd.f32 %v4210_v17, %v4209_v62 }
0x1c4a   : > { %v4212_v21 = vrot.slane %v4211_v54, 1 }
0x1c4c   : > { %4230 = vmatpush.bf16.msra.mxu2 %v4215_v40  ;;  %v4213_v36 = vadd.f32 %v4212_v21, %v4211_v54 }
0x1c4e   : > { %5632 = vrcp.f32 %v4213_v36 }
0x1c4f   : > { %4231 = vmatmul.bf16.vlgmr.msra.gmra.mxu2 %v3620_v46 }
0x1c54   : > { %v5633_v13 = vpop.eup %5632 }
0x1cd2   : > { %v4232_v16 = vpop.f32.mrf.mxu2 }
0x1cd3   : > { %v4236_v14 = vmul.f32 %v5633_v13, %v4232_v16 }
0x1cd5   : > { %v4444_v28 = vsub.f32 %v4236_v14, %v5645_v63 }
0x1cd7   : > { %v4447_v8 = vpack.c.bf16 %v4445_v10, %v4444_v28 }
0x1cd9   : > { %4490 = vmatpush.bf16.msrb.mxu1 %v4447_v8 }
0x1cda   : > { %v4234_v20 = vpop.f32.mrf.mxu2 }
0x1cdd   : > { %4491 = vmatpush.bf16.msrb.mxu1 %v7242_v47 }
0x1ce0   : > { %4966 = vmatmul.msk.bf16.vlgmr.msrb.gmra.mxu1 %vm349_vm0, %v5008_v39 }
0x1cf0   : > { %4967 = vmatmul.msk.bf16.gmra.mxu1 %vm349_vm0, %v5009_v61 }
0x1d5d   : > { %v4493_v29 = vpop.f32.mrf.mxu1 }
0x1d5e   : > { %v4494_v31 = vadd.f32 %v4493_v29, %v4451_v58 }
0x1d60   : > { %v4503_v59 = vmax.f32 %v4494_v31, 0.0 }
0x1d62   : > { %v4507_v12 = vadd.f32 %v7234_v23, %v4503_v59  ;;  %v4466_v23 = vpop.permute.xlu1 %4465 }
0x1d64   : > { %4511 = vst [vmem:[%s6161_s26 + $0x60] sm:$0xff] %v4507_v12 }
0x1d65   : > { %v4495_v47 = vpop.f32.mrf.mxu1 }
0x1d66   : > { %v4496_v56 = vadd.f32 %v4495_v47, %v4456_v50 }
0x1d68   : > { %v4504_v34 = vmax.f32 %v4496_v56, 0.0 }
0x1d6a   : > { %v4508_v49 = vadd.f32 %v7239_v37, %v4504_v34 }
0x1d6c   : > { %4512 = vst [vmem:[%s6161_s26 + $0x68] sm:$0xff] %v4508_v49 }
0x1d6d   : > { %v4498_v24 = vpop.f32.mrf.mxu1 }
0x1d6e   : > { %v4499_v25 = vadd.f32 %v4498_v24, %v4461_v0 }
0x1d70   : > { %v4505_v45 = vmax.f32 %v4499_v25, 0.0 }
0x1d72   : > { %v4509_v43 = vadd.f32 %v5645_v63, %v4505_v45 }
0x1d74   : > { %4513 = vst [vmem:[%s6161_s26 + $0x70] sm:$0xff] %v4509_v43 }
0x1d75   : > { %v4500_v48 = vpop.f32.mrf.mxu1 }
0x1d76   : > { %v4501_v18 = vadd.f32 %v4500_v48, %v4466_v23 }
0x1d78   : > { %v4506_v37 = vmax.f32 %v4501_v18, 0.0 }
0x1d7a   : > { %v4510_v1 = vadd.f32 %v5644_v26, %v4506_v37 }
0x1d7c   : > { %4514 = vst [vmem:[%s6161_s26 + $0x78] sm:$0xff] %v4510_v1 }
0x1d7d   : > { %5673 = shalt.err (!%p5670_p3)
}
0x1d7e   : > { %s5711_s24 = smov 128   ;;  %s5712_s26 = smov 8  }
0x1d7f   : > { %5011 = dma.vmem_to_hbm [thread:$0]  (%p5796_p5), %s4529_s18, 2048, %s4531_s19, %s4516_s20, %s5711_s24, %s5711_s24, %s5712_s26  }
0x1d80 PF: > { %p5017_p4 = scmp.ge.s32.totalorder %s5708_s30, 2  ;;  %s4545_s13 = sand.u32 1, %s5696_s27  }
0x1d81   : > { %s4546_s17 = scalar_lea.sflag [#allocation3], %s4545_s13 }
0x1d82   : > { %p5014_p7 = pnand %p5017_p4, %p5800_p6 }
0x1d84   : > { %p5015_p8 = pneg %p5014_p7 }
0x1d86   : > { %5691 = dma.done.wait (%p5015_p8), %s4546_s17, 2048  }
0x1d87   : > { %5693 = vsyncadd (%p5015_p8), %s4546_s17, 4294965248  ;;  %p18_p9 = scmp.ge.s32.totalorder %s5783_s11, 4   ;;  %s7333_s27 = smov %s5700_s28 }
0x1d88   : > { %s7334_s28 = smov %s5704_s29  ;;  %s7335_s29 = smov %s5794_s14 }
0x1d89   : > { %s7336_s30 = smov %s5783_s11  ;;  %20 = sbr.rel (!%p18_p9) target bundleno = 3 (0x3), region = 96 }
0x1d8e   :  { %4552 = vsyncpa [#allocation3], 1 }
0x1d8f   :  { %4554 = vsyncpa [#allocation3 + $0x1], 1 }

</bundles_post_ra>
